<compile_context>
chip_gen: v7x
topology: tpu7x:2x2x1
jax: 0.10.0
libtpu: 0.0.40
codegen_flags: <defaults>
</compile_context>

<pallas_src>
import functools

import numpy as np

import jax
import jax.numpy as jnp
from jax.experimental import pallas as pl
from jax.experimental.pallas import tpu as pltpu

_INV_SQRT2 = 0.7071067811865476


def _erf(x):
    # Abramowitz & Stegun 7.1.26 (|err| < 1.5e-7); built only from exp/abs/where.
    a1, a2, a3, a4, a5 = 0.254829592, -0.284496736, 1.421413741, -1.453152027, 1.061405429
    p = 0.3275911
    ax = jnp.abs(x)
    t = 1.0 / (1.0 + p * ax)
    poly = ((((a5 * t + a4) * t + a3) * t + a2) * t + a1) * t
    y = 1.0 - poly * jnp.exp(-ax * ax)
    return jnp.where(x >= 0, y, -y)


def _gelu(x):
    # erf-based GELU (matches torch.nn.GELU()).
    return 0.5 * x * (1.0 + _erf(x * _INV_SQRT2))


def _sigmoid(x):
    return 1.0 / (1.0 + jnp.exp(-x))


# ---------------------------------------------------------------------------
# Kernel: one grid step == one image, all activations (H, W*C) lane-dense.
# ---------------------------------------------------------------------------
def _attention_kernel(
    x_ref,
    bd_p1_ref, b_p1_ref,
    dw0_ref, b_dw0_ref,
    dw1_ref, b_dw1_ref,
    bd_c1_ref, bd_c2_ref, b_c12_ref,
    sq_own_ref, sq_cross_ref, b_sq_ref,
    bd_conv_ref, b_conv_ref,
    bd_p2_ref, b_p2_ref,
    o_ref,
    *, H, W, C, compute_dtype,
):
    WC = W * C
    f32 = jnp.float32

    x2 = x_ref[...].astype(f32)                                   # (H, WC)

    def mm(a, w_ref):
        # 1x1 conv as a block-diagonal (WC, WC) MXU matmul; f32 accumulation.
        return jnp.dot(a.astype(compute_dtype), w_ref[...].astype(compute_dtype),
                       preferred_element_type=f32)

    def shift_lanes(v, dx):
        # value at lane w*C+c  <-  lane (w+dx)*C+c  (wrapped junk is zeroed by
        # the x-mask folded into the tap weights).
        if dx == 0:
            return v
        return pltpu.roll(v, shift=(-dx * C) % WC, axis=1)

    def pad_rows(v, p):
        z = jnp.zeros((p, WC), f32)
        return jnp.concatenate([z, v, z], axis=0)                 # per-image halo rows

    def dw_conv(v, K, dilation, w_ref, b_ref):
        # Depthwise KxK conv; ky via sublane slices of the row-padded value,
        # kx via lane rolls, x-boundary mask pre-folded into w_ref rows.
        p = (K // 2) * dilation
        vp = pad_rows(v, p)
        w_taps = w_ref[...]                                       # hoisted (K*K, WC)
        acc = jnp.zeros((H, WC), f32)
        for ky in range(K):
            vy = vp[ky * dilation: ky * dilation + H, :]
            for kx in range(K):
                dx = (kx - K // 2) * dilation
                acc = acc + shift_lanes(vy, dx) * w_taps[ky * K + kx]
        return acc + b_ref[...]

    # ---- proj_1 (1x1) + GELU ------------------------------------------------
    u = _gelu(mm(x2, bd_p1_ref) + b_p1_ref[...])                  # (H, WC)

    # ---- conv0 (dw 5x5 pad 2)  ->  conv_spatial (dw 7x7 dil 3 pad 9) --------
    attn1 = dw_conv(u, 5, 1, dw0_ref, b_dw0_ref)
    attn2 = dw_conv(attn1, 7, 3, dw1_ref, b_dw1_ref)

    # ---- conv1/conv2 merged: per-pixel slot = [conv1(attn1) | conv2(attn2)] -
    a12 = mm(attn1, bd_c1_ref) + mm(attn2, bd_c2_ref) + b_c12_ref[...]

    # ---- channel mean/max per C-lane slot (XOR butterfly, stays in vregs) ---
    lane = jax.lax.broadcasted_iota(jnp.int32, (H, WC), 1)

    def seg_reduce(v, op):
        s = C // 2
        while s >= 1:
            hi = pltpu.roll(v, shift=(WC - s) % WC, axis=1)       # reads lane + s
            lo = pltpu.roll(v, shift=s, axis=1)                   # reads lane - s
            partner = jnp.where((lane & s) == 0, hi, lo)          # stays inside slot
            v = op(v, partner)
            s //= 2
        return v

    avg_full = seg_reduce(a12, jnp.add) * (1.0 / C)               # every lane = slot mean
    max_full = seg_reduce(a12, jnp.maximum)                       # every lane = slot max
    lower_half = (lane % C) < (C // 2)
    am = jnp.where(lower_half, avg_full, max_full)                # [avg xC/2 | max xC/2]
    ma = jnp.where(lower_half, max_full, avg_full)                # [max xC/2 | avg xC/2]

    # ---- conv_squeeze (2->2, 7x7, pad 3) in the expanded slot layout --------
    Ks = 7
    amp = pad_rows(am, Ks // 2)
    mam = pad_rows(ma, Ks // 2)
    own = sq_own_ref[...]                                         # (49, WC) hoisted
    cross = sq_cross_ref[...]
    accs = jnp.zeros((H, WC), f32)
    for ky in range(Ks):
        ay = amp[ky: ky + H, :]
        my = mam[ky: ky + H, :]
        for kx in range(Ks):
            dx = kx - Ks // 2
            t = ky * Ks + kx
            accs = accs + shift_lanes(ay, dx) * own[t] + shift_lanes(my, dx) * cross[t]
    sig = _sigmoid(accs + b_sq_ref[...])                          # [sig0 xC/2 | sig1 xC/2]

    # ---- combine + conv(C/2 -> C) (half-sum folded into the matmul), gate ---
    g = a12 * sig                                                 # [a1*sig0 | a2*sig1]
    dac = (mm(g, bd_conv_ref) + b_conv_ref[...]) * u              # DACblock: x * attn

    # ---- proj_2 + residual --------------------------------------------------
    out = mm(dac, bd_p2_ref) + b_p2_ref[...] + x2
    o_ref[...] = out.astype(o_ref.dtype)


# ---------------------------------------------------------------------------
# Wrapper-side weight packing into lane-dense forms (all static XLA ops).
# ---------------------------------------------------------------------------
def _x_valid_mask(K, dilation, W):
    mask = np.zeros((K * K, W), np.float32)
    wpos = np.arange(W)
    for ky in range(K):
        for kx in range(K):
            dx = (kx - K // 2) * dilation
            mask[ky * K + kx] = (wpos + dx >= 0) & (wpos + dx < W)
    return mask


def _dw_lane_weights(w_tap_c, K, dilation, W, C):
    # (K*K, C) per-channel taps -> (K*K, W*C) lane vectors with kx-boundary
    # zeroing folded in.
    mask = jnp.asarray(_x_valid_mask(K, dilation, W))             # (K*K, W)
    return (mask[:, :, None] * w_tap_c[:, None, :]).reshape(K * K, W * C)


def _sq_lane_weights(sq_w, K, W, C):
    # conv_squeeze torch weight (2, 2, K, K) -> "own"/"cross" lane vectors for
    # the [avg xC/2 | max xC/2] expanded slot layout.
    half = C // 2
    w00 = sq_w[0, 0].reshape(-1)
    w01 = sq_w[0, 1].reshape(-1)
    w10 = sq_w[1, 0].reshape(-1)
    w11 = sq_w[1, 1].reshape(-1)
    own_c = jnp.concatenate([jnp.repeat(w00[:, None], half, 1),
                             jnp.repeat(w11[:, None], half, 1)], axis=1)     # (K*K, C)
    cross_c = jnp.concatenate([jnp.repeat(w01[:, None], half, 1),
                               jnp.repeat(w10[:, None], half, 1)], axis=1)
    mask = jnp.asarray(_x_valid_mask(K, 1, W))
    own = (mask[:, :, None] * own_c[:, None, :]).reshape(K * K, W * C)
    cross = (mask[:, :, None] * cross_c[:, None, :]).reshape(K * K, W * C)
    return own, cross


def _pack_lane_params(p, W, C):
    f32 = jnp.float32
    eye_w = jnp.eye(W, dtype=f32)
    bd = lambda w: jnp.kron(eye_w, w.astype(f32))                 # block-diag (W*Cin, W*Cout)
    tile_b = lambda b: jnp.tile(b.astype(f32), W).reshape(1, W * C)
    half = C // 2
    zeros_half = jnp.zeros((C, half), f32)
    # conv1 -> lower half of slot, conv2 -> upper half of slot.
    c1_block = jnp.concatenate([p['conv1_w'], zeros_half], axis=1)
    c2_block = jnp.concatenate([zeros_half, p['conv2_w']], axis=1)
    # conv(C/2 -> C) with the [a1*s0 | a2*s1] half-sum folded in: row j uses conv_w[j % C/2].
    conv_block = jnp.concatenate([p['conv_w'], p['conv_w']], axis=0)         # (C, C)
    sq_own, sq_cross = _sq_lane_weights(p['sq_w'], 7, W, C)
    return dict(
        bd_p1=bd(p['proj1_w']), b_p1=tile_b(p['proj1_b']),
        dw0=_dw_lane_weights(p['conv0_w'], 5, 1, W, C), b_dw0=tile_b(p['conv0_b']),
        dw1=_dw_lane_weights(p['convsp_w'], 7, 3, W, C), b_dw1=tile_b(p['convsp_b']),
        bd_c1=bd(c1_block), bd_c2=bd(c2_block),
        b_c12=tile_b(jnp.concatenate([p['conv1_b'], p['conv2_b']])),
        sq_own=sq_own, sq_cross=sq_cross,
        b_sq=tile_b(jnp.repeat(p['sq_b'], half)),
        bd_conv=bd(conv_block), b_conv=tile_b(p['conv_b']),
        bd_p2=bd(p['proj2_w']), b_p2=tile_b(p['proj2_b']),
    )


# ---------------------------------------------------------------------------
# Public wrapper: NCHW in / NCHW out, one pallas_call, grid over batch.
# ---------------------------------------------------------------------------
def attention_forward(x_nchw, params, use_bf16_mxu=False):
    B, C, H, W = x_nchw.shape
    WC = W * C
    assert C >= 2 and (C & (C - 1)) == 0, "lane-slot reduction assumes power-of-two C"
    assert H % 8 == 0, "per-image row block must be sublane aligned"

    # TODO(synk): fold this NCHW <-> lane-dense transpose into the kernel DMA.
    x2 = jnp.transpose(x_nchw, (0, 2, 3, 1)).reshape(B * H, WC)

    pk = _pack_lane_params(params, W, C)
    weights = (
        pk['bd_p1'], pk['b_p1'],
        pk['dw0'], pk['b_dw0'],
        pk['dw1'], pk['b_dw1'],
        pk['bd_c1'], pk['bd_c2'], pk['b_c12'],
        pk['sq_own'], pk['sq_cross'], pk['b_sq'],
        pk['bd_conv'], pk['b_conv'],
        pk['bd_p2'], pk['b_p2'],
    )

    kern = functools.partial(
        _attention_kernel, H=H, W=W, C=C,
        compute_dtype=jnp.bfloat16 if use_bf16_mxu else jnp.float32)

    in_specs = [pl.BlockSpec((H, WC), lambda b: (b, 0))] + [
        pl.BlockSpec(w.shape, lambda b: (0, 0)) for w in weights]

    out2 = pl.pallas_call(
        kern,
        out_shape=jax.ShapeDtypeStruct((B * H, WC), x2.dtype),
        grid=(B,),
        in_specs=in_specs,
        out_specs=pl.BlockSpec((H, WC), lambda b: (b, 0)),
        compiler_params=pltpu.CompilerParams(
            dimension_semantics=("parallel",),          # megacore: one image per TC
            vmem_limit_bytes=32 * 1024 * 1024,
        ),
    )(x2, *weights)

    return jnp.transpose(out2.reshape(B, H, W, C), (0, 3, 1, 2))


# ---------------------------------------------------------------------------
# Parameter construction (random, deterministic).  Torch-equivalent layouts:
#   * 1x1 convs:  (Cin, Cout) matmul weights (= torch weight[:, :, 0, 0].T), bias (Cout,)
#   * depthwise:  (K*K, C) with row ky*K+kx = torch weight[:, 0, ky, kx], bias (C,)
#   * conv_squeeze: raw torch layout (2, 2, 7, 7), bias (2,)
# ---------------------------------------------------------------------------
def init_params(key, d):
    ks = jax.random.split(key, 16)

    def w(k, shape, scale=0.1):
        return (scale * jax.random.normal(k, shape)).astype(jnp.float32)

    d2 = d // 2
    return {
        'proj1_w': w(ks[0], (d, d)),     'proj1_b': w(ks[1], (d,)),
        'conv0_w': w(ks[2], (25, d)),    'conv0_b': w(ks[3], (d,)),
        'convsp_w': w(ks[4], (49, d)),   'convsp_b': w(ks[5], (d,)),
        'conv1_w': w(ks[6], (d, d2)),    'conv1_b': w(ks[7], (d2,)),
        'conv2_w': w(ks[8], (d, d2)),    'conv2_b': w(ks[9], (d2,)),
        'sq_w': w(ks[10], (2, 2, 7, 7)), 'sq_b': w(ks[11], (2,)),
        'conv_w': w(ks[12], (d2, d)),    'conv_b': w(ks[13], (d,)),
        'proj2_w': w(ks[14], (d, d)),    'proj2_b': w(ks[15], (d,)),
    }


if __name__ == "__main__":
    key = jax.random.PRNGKey(0)
    kx_, kp = jax.random.split(key)

    B, d_model, H, W = 2, 8, 16, 16          # W * d_model == 128 lanes
    x = jax.random.normal(kx_, (B, d_model, H, W), dtype=jnp.float32)
    params = init_params(kp, d_model)

    fwd = jax.jit(attention_forward)
    out = fwd(x, params)
    jax.block_until_ready(out)
    assert out.shape == (B, d_model, H, W)
    assert bool(jnp.all(jnp.isfinite(out)))
    print("KERNEL_OK")
</pallas_src>

<mosaic_0001>
module attributes {stable_mosaic.version = 11 : i64} {
  func.func @_attention_kernel(%arg0: i32, %arg1: memref<16x128xf32, #tpu.memory_space<vmem>>, %arg2: memref<128x128xf32, #tpu.memory_space<vmem>>, %arg3: memref<1x128xf32, #tpu.memory_space<vmem>>, %arg4: memref<25x128xf32, #tpu.memory_space<vmem>>, %arg5: memref<1x128xf32, #tpu.memory_space<vmem>>, %arg6: memref<49x128xf32, #tpu.memory_space<vmem>>, %arg7: memref<1x128xf32, #tpu.memory_space<vmem>>, %arg8: memref<128x128xf32, #tpu.memory_space<vmem>>, %arg9: memref<128x128xf32, #tpu.memory_space<vmem>>, %arg10: memref<1x128xf32, #tpu.memory_space<vmem>>, %arg11: memref<49x128xf32, #tpu.memory_space<vmem>>, %arg12: memref<49x128xf32, #tpu.memory_space<vmem>>, %arg13: memref<1x128xf32, #tpu.memory_space<vmem>>, %arg14: memref<128x128xf32, #tpu.memory_space<vmem>>, %arg15: memref<1x128xf32, #tpu.memory_space<vmem>>, %arg16: memref<128x128xf32, #tpu.memory_space<vmem>>, %arg17: memref<1x128xf32, #tpu.memory_space<vmem>>, %arg18: memref<16x128xf32, #tpu.memory_space<vmem>>) attributes {dimension_semantics = [#tpu.dimension_semantics<parallel>], iteration_bounds = array<i64: 2>, scalar_prefetch = 0 : i64, scratch_operands = 0 : i64, tpu.core_type = #tpu.core_type<tc>, window_params = [{transform_indices = @transform_0, window_bounds = array<i64: 16, 128>}, {pipeline_mode = #tpu.pipeline_mode<synchronous>, transform_indices = @transform_1, window_bounds = array<i64: 128, 128>}, {pipeline_mode = #tpu.pipeline_mode<synchronous>, transform_indices = @transform_2, window_bounds = array<i64: 1, 128>}, {pipeline_mode = #tpu.pipeline_mode<synchronous>, transform_indices = @transform_3, window_bounds = array<i64: 25, 128>}, {pipeline_mode = #tpu.pipeline_mode<synchronous>, transform_indices = @transform_4, window_bounds = array<i64: 1, 128>}, {pipeline_mode = #tpu.pipeline_mode<synchronous>, transform_indices = @transform_5, window_bounds = array<i64: 49, 128>}, {pipeline_mode = #tpu.pipeline_mode<synchronous>, transform_indices = @transform_6, window_bounds = array<i64: 1, 128>}, {pipeline_mode = #tpu.pipeline_mode<synchronous>, transform_indices = @transform_7, window_bounds = array<i64: 128, 128>}, {pipeline_mode = #tpu.pipeline_mode<synchronous>, transform_indices = @transform_8, window_bounds = array<i64: 128, 128>}, {pipeline_mode = #tpu.pipeline_mode<synchronous>, transform_indices = @transform_9, window_bounds = array<i64: 1, 128>}, {pipeline_mode = #tpu.pipeline_mode<synchronous>, transform_indices = @transform_10, window_bounds = array<i64: 49, 128>}, {pipeline_mode = #tpu.pipeline_mode<synchronous>, transform_indices = @transform_11, window_bounds = array<i64: 49, 128>}, {pipeline_mode = #tpu.pipeline_mode<synchronous>, transform_indices = @transform_12, window_bounds = array<i64: 1, 128>}, {pipeline_mode = #tpu.pipeline_mode<synchronous>, transform_indices = @transform_13, window_bounds = array<i64: 128, 128>}, {pipeline_mode = #tpu.pipeline_mode<synchronous>, transform_indices = @transform_14, window_bounds = array<i64: 1, 128>}, {pipeline_mode = #tpu.pipeline_mode<synchronous>, transform_indices = @transform_15, window_bounds = array<i64: 128, 128>}, {pipeline_mode = #tpu.pipeline_mode<synchronous>, transform_indices = @transform_16, window_bounds = array<i64: 1, 128>}, {transform_indices = @transform_17, window_bounds = array<i64: 16, 128>}]} {
    %c0 = arith.constant 0 : index
    %c0_0 = arith.constant 0 : index
    %0 = vector.load %arg1[%c0, %c0_0] : memref<16x128xf32, #tpu.memory_space<vmem>>, vector<16x128xf32>
    %c0_1 = arith.constant 0 : index
    %c0_2 = arith.constant 0 : index
    %1 = vector.load %arg2[%c0_1, %c0_2] : memref<128x128xf32, #tpu.memory_space<vmem>>, vector<128x128xf32>
    %cst = arith.constant dense<0.000000e+00> : vector<16x128xf32>
    %2 = tpu.matmul %0, %1, %cst {dimension_numbers = #tpu.dot_dimension_numbers<[1], [0], [0], [1], [0, 0, 1, 1], [], []>} : vector<16x128xf32>, vector<128x128xf32>, vector<16x128xf32> -> vector<16x128xf32>
    %c0_3 = arith.constant 0 : index
    %c0_4 = arith.constant 0 : index
    %3 = vector.load %arg3[%c0_3, %c0_4] : memref<1x128xf32, #tpu.memory_space<vmem>>, vector<1x128xf32>
    %4 = vector.broadcast %3 : vector<1x128xf32> to vector<16x128xf32>
    %5 = arith.addf %2, %4 : vector<16x128xf32>
    %cst_5 = arith.constant 5.000000e-01 : f32
    %6 = vector.broadcast %cst_5 : f32 to vector<16x128xf32>
    %7 = arith.mulf %6, %5 : vector<16x128xf32>
    %cst_6 = arith.constant 0.707106769 : f32
    %8 = vector.broadcast %cst_6 : f32 to vector<16x128xf32>
    %9 = arith.mulf %5, %8 : vector<16x128xf32>
    %10 = math.absf %9 : vector<16x128xf32>
    %cst_7 = arith.constant 0.327591091 : f32
    %11 = vector.broadcast %cst_7 : f32 to vector<16x128xf32>
    %12 = arith.mulf %11, %10 : vector<16x128xf32>
    %cst_8 = arith.constant 1.000000e+00 : f32
    %13 = vector.broadcast %cst_8 : f32 to vector<16x128xf32>
    %14 = arith.addf %13, %12 : vector<16x128xf32>
    %cst_9 = arith.constant 1.000000e+00 : f32
    %15 = vector.broadcast %cst_9 : f32 to vector<16x128xf32>
    %16 = arith.divf %15, %14 : vector<16x128xf32>
    %cst_10 = arith.constant 1.06140542 : f32
    %17 = vector.broadcast %cst_10 : f32 to vector<16x128xf32>
    %18 = arith.mulf %17, %16 : vector<16x128xf32>
    %cst_11 = arith.constant -1.45315206 : f32
    %19 = vector.broadcast %cst_11 : f32 to vector<16x128xf32>
    %20 = arith.addf %18, %19 : vector<16x128xf32>
    %21 = arith.mulf %20, %16 : vector<16x128xf32>
    %cst_12 = arith.constant 1.42141378 : f32
    %22 = vector.broadcast %cst_12 : f32 to vector<16x128xf32>
    %23 = arith.addf %21, %22 : vector<16x128xf32>
    %24 = arith.mulf %23, %16 : vector<16x128xf32>
    %cst_13 = arith.constant -0.284496725 : f32
    %25 = vector.broadcast %cst_13 : f32 to vector<16x128xf32>
    %26 = arith.addf %24, %25 : vector<16x128xf32>
    %27 = arith.mulf %26, %16 : vector<16x128xf32>
    %cst_14 = arith.constant 0.254829586 : f32
    %28 = vector.broadcast %cst_14 : f32 to vector<16x128xf32>
    %29 = arith.addf %27, %28 : vector<16x128xf32>
    %30 = arith.mulf %29, %16 : vector<16x128xf32>
    %cst_15 = arith.constant 0.000000e+00 : f32
    %31 = vector.broadcast %cst_15 : f32 to vector<16x128xf32>
    %32 = arith.subf %31, %10 : vector<16x128xf32>
    %33 = arith.mulf %32, %10 : vector<16x128xf32>
    %34 = math.exp %33 : vector<16x128xf32>
    %35 = arith.mulf %30, %34 : vector<16x128xf32>
    %cst_16 = arith.constant 1.000000e+00 : f32
    %36 = vector.broadcast %cst_16 : f32 to vector<16x128xf32>
    %37 = arith.subf %36, %35 : vector<16x128xf32>
    %cst_17 = arith.constant 0.000000e+00 : f32
    %38 = vector.broadcast %cst_17 : f32 to vector<16x128xf32>
    %39 = arith.cmpf oge, %9, %38 : vector<16x128xf32>
    %cst_18 = arith.constant 0.000000e+00 : f32
    %40 = vector.broadcast %cst_18 : f32 to vector<16x128xf32>
    %41 = arith.subf %40, %37 : vector<16x128xf32>
    %42 = arith.select %39, %37, %41 : vector<16x128xi1>, vector<16x128xf32>
    %cst_19 = arith.constant 1.000000e+00 : f32
    %43 = vector.broadcast %cst_19 : f32 to vector<16x128xf32>
    %44 = arith.addf %43, %42 : vector<16x128xf32>
    %45 = arith.mulf %7, %44 : vector<16x128xf32>
    %cst_20 = arith.constant 0.000000e+00 : f32
    %46 = vector.broadcast %cst_20 : f32 to vector<2x128xf32>
    %47 = tpu.concatenate %46, %45, %46 in 0 : vector<2x128xf32>, vector<16x128xf32>, vector<2x128xf32> -> vector<20x128xf32>
    %c0_21 = arith.constant 0 : index
    %c0_22 = arith.constant 0 : index
    %48 = vector.load %arg4[%c0_21, %c0_22] : memref<25x128xf32, #tpu.memory_space<vmem>>, vector<25x128xf32>
    %cst_23 = arith.constant 0.000000e+00 : f32
    %49 = vector.broadcast %cst_23 : f32 to vector<16x128xf32>
    %50 = vector.extract_strided_slice %47 {offsets = [0, 0], sizes = [16, 128], strides = [1, 1]} : vector<20x128xf32> to vector<16x128xf32>
    %c16_i32 = arith.constant 16 : i32
    %51 = tpu.dynamic_rotate %50 by %c16_i32 dim 1 : vector<16x128xf32>, i32 -> vector<16x128xf32>
    %52 = vector.extract_strided_slice %48 {offsets = [0, 0], sizes = [1, 128], strides = [1, 1]} : vector<25x128xf32> to vector<1x128xf32>
    %53 = vector.shape_cast %52 : vector<1x128xf32> to vector<128xf32>
    %54 = vector.shape_cast %53 : vector<128xf32> to vector<1x128xf32>
    %55 = vector.broadcast %54 : vector<1x128xf32> to vector<16x128xf32>
    %56 = arith.mulf %51, %55 : vector<16x128xf32>
    %57 = arith.addf %49, %56 : vector<16x128xf32>
    %c8_i32 = arith.constant 8 : i32
    %58 = tpu.dynamic_rotate %50 by %c8_i32 dim 1 : vector<16x128xf32>, i32 -> vector<16x128xf32>
    %59 = vector.extract_strided_slice %48 {offsets = [1, 0], sizes = [1, 128], strides = [1, 1]} : vector<25x128xf32> to vector<1x128xf32>
    %60 = vector.shape_cast %59 : vector<1x128xf32> to vector<128xf32>
    %61 = vector.shape_cast %60 : vector<128xf32> to vector<1x128xf32>
    %62 = vector.broadcast %61 : vector<1x128xf32> to vector<16x128xf32>
    %63 = arith.mulf %58, %62 : vector<16x128xf32>
    %64 = arith.addf %57, %63 : vector<16x128xf32>
    %65 = vector.extract_strided_slice %48 {offsets = [2, 0], sizes = [1, 128], strides = [1, 1]} : vector<25x128xf32> to vector<1x128xf32>
    %66 = vector.shape_cast %65 : vector<1x128xf32> to vector<128xf32>
    %67 = vector.shape_cast %66 : vector<128xf32> to vector<1x128xf32>
    %68 = vector.broadcast %67 : vector<1x128xf32> to vector<16x128xf32>
    %69 = arith.mulf %50, %68 : vector<16x128xf32>
    %70 = arith.addf %64, %69 : vector<16x128xf32>
    %c120_i32 = arith.constant 120 : i32
    %71 = tpu.dynamic_rotate %50 by %c120_i32 dim 1 : vector<16x128xf32>, i32 -> vector<16x128xf32>
    %72 = vector.extract_strided_slice %48 {offsets = [3, 0], sizes = [1, 128], strides = [1, 1]} : vector<25x128xf32> to vector<1x128xf32>
    %73 = vector.shape_cast %72 : vector<1x128xf32> to vector<128xf32>
    %74 = vector.shape_cast %73 : vector<128xf32> to vector<1x128xf32>
    %75 = vector.broadcast %74 : vector<1x128xf32> to vector<16x128xf32>
    %76 = arith.mulf %71, %75 : vector<16x128xf32>
    %77 = arith.addf %70, %76 : vector<16x128xf32>
    %c112_i32 = arith.constant 112 : i32
    %78 = tpu.dynamic_rotate %50 by %c112_i32 dim 1 : vector<16x128xf32>, i32 -> vector<16x128xf32>
    %79 = vector.extract_strided_slice %48 {offsets = [4, 0], sizes = [1, 128], strides = [1, 1]} : vector<25x128xf32> to vector<1x128xf32>
    %80 = vector.shape_cast %79 : vector<1x128xf32> to vector<128xf32>
    %81 = vector.shape_cast %80 : vector<128xf32> to vector<1x128xf32>
    %82 = vector.broadcast %81 : vector<1x128xf32> to vector<16x128xf32>
    %83 = arith.mulf %78, %82 : vector<16x128xf32>
    %84 = arith.addf %77, %83 : vector<16x128xf32>
    %85 = vector.extract_strided_slice %47 {offsets = [1, 0], sizes = [16, 128], strides = [1, 1]} : vector<20x128xf32> to vector<16x128xf32>
    %c16_i32_24 = arith.constant 16 : i32
    %86 = tpu.dynamic_rotate %85 by %c16_i32_24 dim 1 : vector<16x128xf32>, i32 -> vector<16x128xf32>
    %87 = vector.extract_strided_slice %48 {offsets = [5, 0], sizes = [1, 128], strides = [1, 1]} : vector<25x128xf32> to vector<1x128xf32>
    %88 = vector.shape_cast %87 : vector<1x128xf32> to vector<128xf32>
    %89 = vector.shape_cast %88 : vector<128xf32> to vector<1x128xf32>
    %90 = vector.broadcast %89 : vector<1x128xf32> to vector<16x128xf32>
    %91 = arith.mulf %86, %90 : vector<16x128xf32>
    %92 = arith.addf %84, %91 : vector<16x128xf32>
    %c8_i32_25 = arith.constant 8 : i32
    %93 = tpu.dynamic_rotate %85 by %c8_i32_25 dim 1 : vector<16x128xf32>, i32 -> vector<16x128xf32>
    %94 = vector.extract_strided_slice %48 {offsets = [6, 0], sizes = [1, 128], strides = [1, 1]} : vector<25x128xf32> to vector<1x128xf32>
    %95 = vector.shape_cast %94 : vector<1x128xf32> to vector<128xf32>
    %96 = vector.shape_cast %95 : vector<128xf32> to vector<1x128xf32>
    %97 = vector.broadcast %96 : vector<1x128xf32> to vector<16x128xf32>
    %98 = arith.mulf %93, %97 : vector<16x128xf32>
    %99 = arith.addf %92, %98 : vector<16x128xf32>
    %100 = vector.extract_strided_slice %48 {offsets = [7, 0], sizes = [1, 128], strides = [1, 1]} : vector<25x128xf32> to vector<1x128xf32>
    %101 = vector.shape_cast %100 : vector<1x128xf32> to vector<128xf32>
    %102 = vector.shape_cast %101 : vector<128xf32> to vector<1x128xf32>
    %103 = vector.broadcast %102 : vector<1x128xf32> to vector<16x128xf32>
    %104 = arith.mulf %85, %103 : vector<16x128xf32>
    %105 = arith.addf %99, %104 : vector<16x128xf32>
    %c120_i32_26 = arith.constant 120 : i32
    %106 = tpu.dynamic_rotate %85 by %c120_i32_26 dim 1 : vector<16x128xf32>, i32 -> vector<16x128xf32>
    %107 = vector.extract_strided_slice %48 {offsets = [8, 0], sizes = [1, 128], strides = [1, 1]} : vector<25x128xf32> to vector<1x128xf32>
    %108 = vector.shape_cast %107 : vector<1x128xf32> to vector<128xf32>
    %109 = vector.shape_cast %108 : vector<128xf32> to vector<1x128xf32>
    %110 = vector.broadcast %109 : vector<1x128xf32> to vector<16x128xf32>
    %111 = arith.mulf %106, %110 : vector<16x128xf32>
    %112 = arith.addf %105, %111 : vector<16x128xf32>
    %c112_i32_27 = arith.constant 112 : i32
    %113 = tpu.dynamic_rotate %85 by %c112_i32_27 dim 1 : vector<16x128xf32>, i32 -> vector<16x128xf32>
    %114 = vector.extract_strided_slice %48 {offsets = [9, 0], sizes = [1, 128], strides = [1, 1]} : vector<25x128xf32> to vector<1x128xf32>
    %115 = vector.shape_cast %114 : vector<1x128xf32> to vector<128xf32>
    %116 = vector.shape_cast %115 : vector<128xf32> to vector<1x128xf32>
    %117 = vector.broadcast %116 : vector<1x128xf32> to vector<16x128xf32>
    %118 = arith.mulf %113, %117 : vector<16x128xf32>
    %119 = arith.addf %112, %118 : vector<16x128xf32>
    %120 = vector.extract_strided_slice %47 {offsets = [2, 0], sizes = [16, 128], strides = [1, 1]} : vector<20x128xf32> to vector<16x128xf32>
    %c16_i32_28 = arith.constant 16 : i32
    %121 = tpu.dynamic_rotate %120 by %c16_i32_28 dim 1 : vector<16x128xf32>, i32 -> vector<16x128xf32>
    %122 = vector.extract_strided_slice %48 {offsets = [10, 0], sizes = [1, 128], strides = [1, 1]} : vector<25x128xf32> to vector<1x128xf32>
    %123 = vector.shape_cast %122 : vector<1x128xf32> to vector<128xf32>
    %124 = vector.shape_cast %123 : vector<128xf32> to vector<1x128xf32>
    %125 = vector.broadcast %124 : vector<1x128xf32> to vector<16x128xf32>
    %126 = arith.mulf %121, %125 : vector<16x128xf32>
    %127 = arith.addf %119, %126 : vector<16x128xf32>
    %c8_i32_29 = arith.constant 8 : i32
    %128 = tpu.dynamic_rotate %120 by %c8_i32_29 dim 1 : vector<16x128xf32>, i32 -> vector<16x128xf32>
    %129 = vector.extract_strided_slice %48 {offsets = [11, 0], sizes = [1, 128], strides = [1, 1]} : vector<25x128xf32> to vector<1x128xf32>
    %130 = vector.shape_cast %129 : vector<1x128xf32> to vector<128xf32>
    %131 = vector.shape_cast %130 : vector<128xf32> to vector<1x128xf32>
    %132 = vector.broadcast %131 : vector<1x128xf32> to vector<16x128xf32>
    %133 = arith.mulf %128, %132 : vector<16x128xf32>
    %134 = arith.addf %127, %133 : vector<16x128xf32>
    %135 = vector.extract_strided_slice %48 {offsets = [12, 0], sizes = [1, 128], strides = [1, 1]} : vector<25x128xf32> to vector<1x128xf32>
    %136 = vector.shape_cast %135 : vector<1x128xf32> to vector<128xf32>
    %137 = vector.shape_cast %136 : vector<128xf32> to vector<1x128xf32>
    %138 = vector.broadcast %137 : vector<1x128xf32> to vector<16x128xf32>
    %139 = arith.mulf %120, %138 : vector<16x128xf32>
    %140 = arith.addf %134, %139 : vector<16x128xf32>
    %c120_i32_30 = arith.constant 120 : i32
    %141 = tpu.dynamic_rotate %120 by %c120_i32_30 dim 1 : vector<16x128xf32>, i32 -> vector<16x128xf32>
    %142 = vector.extract_strided_slice %48 {offsets = [13, 0], sizes = [1, 128], strides = [1, 1]} : vector<25x128xf32> to vector<1x128xf32>
    %143 = vector.shape_cast %142 : vector<1x128xf32> to vector<128xf32>
    %144 = vector.shape_cast %143 : vector<128xf32> to vector<1x128xf32>
    %145 = vector.broadcast %144 : vector<1x128xf32> to vector<16x128xf32>
    %146 = arith.mulf %141, %145 : vector<16x128xf32>
    %147 = arith.addf %140, %146 : vector<16x128xf32>
    %c112_i32_31 = arith.constant 112 : i32
    %148 = tpu.dynamic_rotate %120 by %c112_i32_31 dim 1 : vector<16x128xf32>, i32 -> vector<16x128xf32>
    %149 = vector.extract_strided_slice %48 {offsets = [14, 0], sizes = [1, 128], strides = [1, 1]} : vector<25x128xf32> to vector<1x128xf32>
    %150 = vector.shape_cast %149 : vector<1x128xf32> to vector<128xf32>
    %151 = vector.shape_cast %150 : vector<128xf32> to vector<1x128xf32>
    %152 = vector.broadcast %151 : vector<1x128xf32> to vector<16x128xf32>
    %153 = arith.mulf %148, %152 : vector<16x128xf32>
    %154 = arith.addf %147, %153 : vector<16x128xf32>
    %155 = vector.extract_strided_slice %47 {offsets = [3, 0], sizes = [16, 128], strides = [1, 1]} : vector<20x128xf32> to vector<16x128xf32>
    %c16_i32_32 = arith.constant 16 : i32
    %156 = tpu.dynamic_rotate %155 by %c16_i32_32 dim 1 : vector<16x128xf32>, i32 -> vector<16x128xf32>
    %157 = vector.extract_strided_slice %48 {offsets = [15, 0], sizes = [1, 128], strides = [1, 1]} : vector<25x128xf32> to vector<1x128xf32>
    %158 = vector.shape_cast %157 : vector<1x128xf32> to vector<128xf32>
    %159 = vector.shape_cast %158 : vector<128xf32> to vector<1x128xf32>
    %160 = vector.broadcast %159 : vector<1x128xf32> to vector<16x128xf32>
    %161 = arith.mulf %156, %160 : vector<16x128xf32>
    %162 = arith.addf %154, %161 : vector<16x128xf32>
    %c8_i32_33 = arith.constant 8 : i32
    %163 = tpu.dynamic_rotate %155 by %c8_i32_33 dim 1 : vector<16x128xf32>, i32 -> vector<16x128xf32>
    %164 = vector.extract_strided_slice %48 {offsets = [16, 0], sizes = [1, 128], strides = [1, 1]} : vector<25x128xf32> to vector<1x128xf32>
    %165 = vector.shape_cast %164 : vector<1x128xf32> to vector<128xf32>
    %166 = vector.shape_cast %165 : vector<128xf32> to vector<1x128xf32>
    %167 = vector.broadcast %166 : vector<1x128xf32> to vector<16x128xf32>
    %168 = arith.mulf %163, %167 : vector<16x128xf32>
    %169 = arith.addf %162, %168 : vector<16x128xf32>
    %170 = vector.extract_strided_slice %48 {offsets = [17, 0], sizes = [1, 128], strides = [1, 1]} : vector<25x128xf32> to vector<1x128xf32>
    %171 = vector.shape_cast %170 : vector<1x128xf32> to vector<128xf32>
    %172 = vector.shape_cast %171 : vector<128xf32> to vector<1x128xf32>
    %173 = vector.broadcast %172 : vector<1x128xf32> to vector<16x128xf32>
    %174 = arith.mulf %155, %173 : vector<16x128xf32>
    %175 = arith.addf %169, %174 : vector<16x128xf32>
    %c120_i32_34 = arith.constant 120 : i32
    %176 = tpu.dynamic_rotate %155 by %c120_i32_34 dim 1 : vector<16x128xf32>, i32 -> vector<16x128xf32>
    %177 = vector.extract_strided_slice %48 {offsets = [18, 0], sizes = [1, 128], strides = [1, 1]} : vector<25x128xf32> to vector<1x128xf32>
    %178 = vector.shape_cast %177 : vector<1x128xf32> to vector<128xf32>
    %179 = vector.shape_cast %178 : vector<128xf32> to vector<1x128xf32>
    %180 = vector.broadcast %179 : vector<1x128xf32> to vector<16x128xf32>
    %181 = arith.mulf %176, %180 : vector<16x128xf32>
    %182 = arith.addf %175, %181 : vector<16x128xf32>
    %c112_i32_35 = arith.constant 112 : i32
    %183 = tpu.dynamic_rotate %155 by %c112_i32_35 dim 1 : vector<16x128xf32>, i32 -> vector<16x128xf32>
    %184 = vector.extract_strided_slice %48 {offsets = [19, 0], sizes = [1, 128], strides = [1, 1]} : vector<25x128xf32> to vector<1x128xf32>
    %185 = vector.shape_cast %184 : vector<1x128xf32> to vector<128xf32>
    %186 = vector.shape_cast %185 : vector<128xf32> to vector<1x128xf32>
    %187 = vector.broadcast %186 : vector<1x128xf32> to vector<16x128xf32>
    %188 = arith.mulf %183, %187 : vector<16x128xf32>
    %189 = arith.addf %182, %188 : vector<16x128xf32>
    %190 = vector.extract_strided_slice %47 {offsets = [4, 0], sizes = [16, 128], strides = [1, 1]} : vector<20x128xf32> to vector<16x128xf32>
    %c16_i32_36 = arith.constant 16 : i32
    %191 = tpu.dynamic_rotate %190 by %c16_i32_36 dim 1 : vector<16x128xf32>, i32 -> vector<16x128xf32>
    %192 = vector.extract_strided_slice %48 {offsets = [20, 0], sizes = [1, 128], strides = [1, 1]} : vector<25x128xf32> to vector<1x128xf32>
    %193 = vector.shape_cast %192 : vector<1x128xf32> to vector<128xf32>
    %194 = vector.shape_cast %193 : vector<128xf32> to vector<1x128xf32>
    %195 = vector.broadcast %194 : vector<1x128xf32> to vector<16x128xf32>
    %196 = arith.mulf %191, %195 : vector<16x128xf32>
    %197 = arith.addf %189, %196 : vector<16x128xf32>
    %c8_i32_37 = arith.constant 8 : i32
    %198 = tpu.dynamic_rotate %190 by %c8_i32_37 dim 1 : vector<16x128xf32>, i32 -> vector<16x128xf32>
    %199 = vector.extract_strided_slice %48 {offsets = [21, 0], sizes = [1, 128], strides = [1, 1]} : vector<25x128xf32> to vector<1x128xf32>
    %200 = vector.shape_cast %199 : vector<1x128xf32> to vector<128xf32>
    %201 = vector.shape_cast %200 : vector<128xf32> to vector<1x128xf32>
    %202 = vector.broadcast %201 : vector<1x128xf32> to vector<16x128xf32>
    %203 = arith.mulf %198, %202 : vector<16x128xf32>
    %204 = arith.addf %197, %203 : vector<16x128xf32>
    %205 = vector.extract_strided_slice %48 {offsets = [22, 0], sizes = [1, 128], strides = [1, 1]} : vector<25x128xf32> to vector<1x128xf32>
    %206 = vector.shape_cast %205 : vector<1x128xf32> to vector<128xf32>
    %207 = vector.shape_cast %206 : vector<128xf32> to vector<1x128xf32>
    %208 = vector.broadcast %207 : vector<1x128xf32> to vector<16x128xf32>
    %209 = arith.mulf %190, %208 : vector<16x128xf32>
    %210 = arith.addf %204, %209 : vector<16x128xf32>
    %c120_i32_38 = arith.constant 120 : i32
    %211 = tpu.dynamic_rotate %190 by %c120_i32_38 dim 1 : vector<16x128xf32>, i32 -> vector<16x128xf32>
    %212 = vector.extract_strided_slice %48 {offsets = [23, 0], sizes = [1, 128], strides = [1, 1]} : vector<25x128xf32> to vector<1x128xf32>
    %213 = vector.shape_cast %212 : vector<1x128xf32> to vector<128xf32>
    %214 = vector.shape_cast %213 : vector<128xf32> to vector<1x128xf32>
    %215 = vector.broadcast %214 : vector<1x128xf32> to vector<16x128xf32>
    %216 = arith.mulf %211, %215 : vector<16x128xf32>
    %217 = arith.addf %210, %216 : vector<16x128xf32>
    %c112_i32_39 = arith.constant 112 : i32
    %218 = tpu.dynamic_rotate %190 by %c112_i32_39 dim 1 : vector<16x128xf32>, i32 -> vector<16x128xf32>
    %219 = vector.extract_strided_slice %48 {offsets = [24, 0], sizes = [1, 128], strides = [1, 1]} : vector<25x128xf32> to vector<1x128xf32>
    %220 = vector.shape_cast %219 : vector<1x128xf32> to vector<128xf32>
    %221 = vector.shape_cast %220 : vector<128xf32> to vector<1x128xf32>
    %222 = vector.broadcast %221 : vector<1x128xf32> to vector<16x128xf32>
    %223 = arith.mulf %218, %222 : vector<16x128xf32>
    %224 = arith.addf %217, %223 : vector<16x128xf32>
    %c0_40 = arith.constant 0 : index
    %c0_41 = arith.constant 0 : index
    %225 = vector.load %arg5[%c0_40, %c0_41] : memref<1x128xf32, #tpu.memory_space<vmem>>, vector<1x128xf32>
    %226 = vector.broadcast %225 : vector<1x128xf32> to vector<16x128xf32>
    %227 = arith.addf %224, %226 : vector<16x128xf32>
    %cst_42 = arith.constant 0.000000e+00 : f32
    %228 = vector.broadcast %cst_42 : f32 to vector<9x128xf32>
    %229 = tpu.concatenate %228, %227, %228 in 0 : vector<9x128xf32>, vector<16x128xf32>, vector<9x128xf32> -> vector<34x128xf32>
    %c0_43 = arith.constant 0 : index
    %c0_44 = arith.constant 0 : index
    %230 = vector.load %arg6[%c0_43, %c0_44] : memref<49x128xf32, #tpu.memory_space<vmem>>, vector<49x128xf32>
    %cst_45 = arith.constant 0.000000e+00 : f32
    %231 = vector.broadcast %cst_45 : f32 to vector<16x128xf32>
    %232 = vector.extract_strided_slice %229 {offsets = [0, 0], sizes = [16, 128], strides = [1, 1]} : vector<34x128xf32> to vector<16x128xf32>
    %c72_i32 = arith.constant 72 : i32
    %233 = tpu.dynamic_rotate %232 by %c72_i32 dim 1 : vector<16x128xf32>, i32 -> vector<16x128xf32>
    %234 = vector.extract_strided_slice %230 {offsets = [0, 0], sizes = [1, 128], strides = [1, 1]} : vector<49x128xf32> to vector<1x128xf32>
    %235 = vector.shape_cast %234 : vector<1x128xf32> to vector<128xf32>
    %236 = vector.shape_cast %235 : vector<128xf32> to vector<1x128xf32>
    %237 = vector.broadcast %236 : vector<1x128xf32> to vector<16x128xf32>
    %238 = arith.mulf %233, %237 : vector<16x128xf32>
    %239 = arith.addf %231, %238 : vector<16x128xf32>
    %c48_i32 = arith.constant 48 : i32
    %240 = tpu.dynamic_rotate %232 by %c48_i32 dim 1 : vector<16x128xf32>, i32 -> vector<16x128xf32>
    %241 = vector.extract_strided_slice %230 {offsets = [1, 0], sizes = [1, 128], strides = [1, 1]} : vector<49x128xf32> to vector<1x128xf32>
    %242 = vector.shape_cast %241 : vector<1x128xf32> to vector<128xf32>
    %243 = vector.shape_cast %242 : vector<128xf32> to vector<1x128xf32>
    %244 = vector.broadcast %243 : vector<1x128xf32> to vector<16x128xf32>
    %245 = arith.mulf %240, %244 : vector<16x128xf32>
    %246 = arith.addf %239, %245 : vector<16x128xf32>
    %c24_i32 = arith.constant 24 : i32
    %247 = tpu.dynamic_rotate %232 by %c24_i32 dim 1 : vector<16x128xf32>, i32 -> vector<16x128xf32>
    %248 = vector.extract_strided_slice %230 {offsets = [2, 0], sizes = [1, 128], strides = [1, 1]} : vector<49x128xf32> to vector<1x128xf32>
    %249 = vector.shape_cast %248 : vector<1x128xf32> to vector<128xf32>
    %250 = vector.shape_cast %249 : vector<128xf32> to vector<1x128xf32>
    %251 = vector.broadcast %250 : vector<1x128xf32> to vector<16x128xf32>
    %252 = arith.mulf %247, %251 : vector<16x128xf32>
    %253 = arith.addf %246, %252 : vector<16x128xf32>
    %254 = vector.extract_strided_slice %230 {offsets = [3, 0], sizes = [1, 128], strides = [1, 1]} : vector<49x128xf32> to vector<1x128xf32>
    %255 = vector.shape_cast %254 : vector<1x128xf32> to vector<128xf32>
    %256 = vector.shape_cast %255 : vector<128xf32> to vector<1x128xf32>
    %257 = vector.broadcast %256 : vector<1x128xf32> to vector<16x128xf32>
    %258 = arith.mulf %232, %257 : vector<16x128xf32>
    %259 = arith.addf %253, %258 : vector<16x128xf32>
    %c104_i32 = arith.constant 104 : i32
    %260 = tpu.dynamic_rotate %232 by %c104_i32 dim 1 : vector<16x128xf32>, i32 -> vector<16x128xf32>
    %261 = vector.extract_strided_slice %230 {offsets = [4, 0], sizes = [1, 128], strides = [1, 1]} : vector<49x128xf32> to vector<1x128xf32>
    %262 = vector.shape_cast %261 : vector<1x128xf32> to vector<128xf32>
    %263 = vector.shape_cast %262 : vector<128xf32> to vector<1x128xf32>
    %264 = vector.broadcast %263 : vector<1x128xf32> to vector<16x128xf32>
    %265 = arith.mulf %260, %264 : vector<16x128xf32>
    %266 = arith.addf %259, %265 : vector<16x128xf32>
    %c80_i32 = arith.constant 80 : i32
    %267 = tpu.dynamic_rotate %232 by %c80_i32 dim 1 : vector<16x128xf32>, i32 -> vector<16x128xf32>
    %268 = vector.extract_strided_slice %230 {offsets = [5, 0], sizes = [1, 128], strides = [1, 1]} : vector<49x128xf32> to vector<1x128xf32>
    %269 = vector.shape_cast %268 : vector<1x128xf32> to vector<128xf32>
    %270 = vector.shape_cast %269 : vector<128xf32> to vector<1x128xf32>
    %271 = vector.broadcast %270 : vector<1x128xf32> to vector<16x128xf32>
    %272 = arith.mulf %267, %271 : vector<16x128xf32>
    %273 = arith.addf %266, %272 : vector<16x128xf32>
    %c56_i32 = arith.constant 56 : i32
    %274 = tpu.dynamic_rotate %232 by %c56_i32 dim 1 : vector<16x128xf32>, i32 -> vector<16x128xf32>
    %275 = vector.extract_strided_slice %230 {offsets = [6, 0], sizes = [1, 128], strides = [1, 1]} : vector<49x128xf32> to vector<1x128xf32>
    %276 = vector.shape_cast %275 : vector<1x128xf32> to vector<128xf32>
    %277 = vector.shape_cast %276 : vector<128xf32> to vector<1x128xf32>
    %278 = vector.broadcast %277 : vector<1x128xf32> to vector<16x128xf32>
    %279 = arith.mulf %274, %278 : vector<16x128xf32>
    %280 = arith.addf %273, %279 : vector<16x128xf32>
    %281 = vector.extract_strided_slice %229 {offsets = [3, 0], sizes = [16, 128], strides = [1, 1]} : vector<34x128xf32> to vector<16x128xf32>
    %c72_i32_46 = arith.constant 72 : i32
    %282 = tpu.dynamic_rotate %281 by %c72_i32_46 dim 1 : vector<16x128xf32>, i32 -> vector<16x128xf32>
    %283 = vector.extract_strided_slice %230 {offsets = [7, 0], sizes = [1, 128], strides = [1, 1]} : vector<49x128xf32> to vector<1x128xf32>
    %284 = vector.shape_cast %283 : vector<1x128xf32> to vector<128xf32>
    %285 = vector.shape_cast %284 : vector<128xf32> to vector<1x128xf32>
    %286 = vector.broadcast %285 : vector<1x128xf32> to vector<16x128xf32>
    %287 = arith.mulf %282, %286 : vector<16x128xf32>
    %288 = arith.addf %280, %287 : vector<16x128xf32>
    %c48_i32_47 = arith.constant 48 : i32
    %289 = tpu.dynamic_rotate %281 by %c48_i32_47 dim 1 : vector<16x128xf32>, i32 -> vector<16x128xf32>
    %290 = vector.extract_strided_slice %230 {offsets = [8, 0], sizes = [1, 128], strides = [1, 1]} : vector<49x128xf32> to vector<1x128xf32>
    %291 = vector.shape_cast %290 : vector<1x128xf32> to vector<128xf32>
    %292 = vector.shape_cast %291 : vector<128xf32> to vector<1x128xf32>
    %293 = vector.broadcast %292 : vector<1x128xf32> to vector<16x128xf32>
    %294 = arith.mulf %289, %293 : vector<16x128xf32>
    %295 = arith.addf %288, %294 : vector<16x128xf32>
    %c24_i32_48 = arith.constant 24 : i32
    %296 = tpu.dynamic_rotate %281 by %c24_i32_48 dim 1 : vector<16x128xf32>, i32 -> vector<16x128xf32>
    %297 = vector.extract_strided_slice %230 {offsets = [9, 0], sizes = [1, 128], strides = [1, 1]} : vector<49x128xf32> to vector<1x128xf32>
    %298 = vector.shape_cast %297 : vector<1x128xf32> to vector<128xf32>
    %299 = vector.shape_cast %298 : vector<128xf32> to vector<1x128xf32>
    %300 = vector.broadcast %299 : vector<1x128xf32> to vector<16x128xf32>
    %301 = arith.mulf %296, %300 : vector<16x128xf32>
    %302 = arith.addf %295, %301 : vector<16x128xf32>
    %303 = vector.extract_strided_slice %230 {offsets = [10, 0], sizes = [1, 128], strides = [1, 1]} : vector<49x128xf32> to vector<1x128xf32>
    %304 = vector.shape_cast %303 : vector<1x128xf32> to vector<128xf32>
    %305 = vector.shape_cast %304 : vector<128xf32> to vector<1x128xf32>
    %306 = vector.broadcast %305 : vector<1x128xf32> to vector<16x128xf32>
    %307 = arith.mulf %281, %306 : vector<16x128xf32>
    %308 = arith.addf %302, %307 : vector<16x128xf32>
    %c104_i32_49 = arith.constant 104 : i32
    %309 = tpu.dynamic_rotate %281 by %c104_i32_49 dim 1 : vector<16x128xf32>, i32 -> vector<16x128xf32>
    %310 = vector.extract_strided_slice %230 {offsets = [11, 0], sizes = [1, 128], strides = [1, 1]} : vector<49x128xf32> to vector<1x128xf32>
    %311 = vector.shape_cast %310 : vector<1x128xf32> to vector<128xf32>
    %312 = vector.shape_cast %311 : vector<128xf32> to vector<1x128xf32>
    %313 = vector.broadcast %312 : vector<1x128xf32> to vector<16x128xf32>
    %314 = arith.mulf %309, %313 : vector<16x128xf32>
    %315 = arith.addf %308, %314 : vector<16x128xf32>
    %c80_i32_50 = arith.constant 80 : i32
    %316 = tpu.dynamic_rotate %281 by %c80_i32_50 dim 1 : vector<16x128xf32>, i32 -> vector<16x128xf32>
    %317 = vector.extract_strided_slice %230 {offsets = [12, 0], sizes = [1, 128], strides = [1, 1]} : vector<49x128xf32> to vector<1x128xf32>
    %318 = vector.shape_cast %317 : vector<1x128xf32> to vector<128xf32>
    %319 = vector.shape_cast %318 : vector<128xf32> to vector<1x128xf32>
    %320 = vector.broadcast %319 : vector<1x128xf32> to vector<16x128xf32>
    %321 = arith.mulf %316, %320 : vector<16x128xf32>
    %322 = arith.addf %315, %321 : vector<16x128xf32>
    %c56_i32_51 = arith.constant 56 : i32
    %323 = tpu.dynamic_rotate %281 by %c56_i32_51 dim 1 : vector<16x128xf32>, i32 -> vector<16x128xf32>
    %324 = vector.extract_strided_slice %230 {offsets = [13, 0], sizes = [1, 128], strides = [1, 1]} : vector<49x128xf32> to vector<1x128xf32>
    %325 = vector.shape_cast %324 : vector<1x128xf32> to vector<128xf32>
    %326 = vector.shape_cast %325 : vector<128xf32> to vector<1x128xf32>
    %327 = vector.broadcast %326 : vector<1x128xf32> to vector<16x128xf32>
    %328 = arith.mulf %323, %327 : vector<16x128xf32>
    %329 = arith.addf %322, %328 : vector<16x128xf32>
    %330 = vector.extract_strided_slice %229 {offsets = [6, 0], sizes = [16, 128], strides = [1, 1]} : vector<34x128xf32> to vector<16x128xf32>
    %c72_i32_52 = arith.constant 72 : i32
    %331 = tpu.dynamic_rotate %330 by %c72_i32_52 dim 1 : vector<16x128xf32>, i32 -> vector<16x128xf32>
    %332 = vector.extract_strided_slice %230 {offsets = [14, 0], sizes = [1, 128], strides = [1, 1]} : vector<49x128xf32> to vector<1x128xf32>
    %333 = vector.shape_cast %332 : vector<1x128xf32> to vector<128xf32>
    %334 = vector.shape_cast %333 : vector<128xf32> to vector<1x128xf32>
    %335 = vector.broadcast %334 : vector<1x128xf32> to vector<16x128xf32>
    %336 = arith.mulf %331, %335 : vector<16x128xf32>
    %337 = arith.addf %329, %336 : vector<16x128xf32>
    %c48_i32_53 = arith.constant 48 : i32
    %338 = tpu.dynamic_rotate %330 by %c48_i32_53 dim 1 : vector<16x128xf32>, i32 -> vector<16x128xf32>
    %339 = vector.extract_strided_slice %230 {offsets = [15, 0], sizes = [1, 128], strides = [1, 1]} : vector<49x128xf32> to vector<1x128xf32>
    %340 = vector.shape_cast %339 : vector<1x128xf32> to vector<128xf32>
    %341 = vector.shape_cast %340 : vector<128xf32> to vector<1x128xf32>
    %342 = vector.broadcast %341 : vector<1x128xf32> to vector<16x128xf32>
    %343 = arith.mulf %338, %342 : vector<16x128xf32>
    %344 = arith.addf %337, %343 : vector<16x128xf32>
    %c24_i32_54 = arith.constant 24 : i32
    %345 = tpu.dynamic_rotate %330 by %c24_i32_54 dim 1 : vector<16x128xf32>, i32 -> vector<16x128xf32>
    %346 = vector.extract_strided_slice %230 {offsets = [16, 0], sizes = [1, 128], strides = [1, 1]} : vector<49x128xf32> to vector<1x128xf32>
    %347 = vector.shape_cast %346 : vector<1x128xf32> to vector<128xf32>
    %348 = vector.shape_cast %347 : vector<128xf32> to vector<1x128xf32>
    %349 = vector.broadcast %348 : vector<1x128xf32> to vector<16x128xf32>
    %350 = arith.mulf %345, %349 : vector<16x128xf32>
    %351 = arith.addf %344, %350 : vector<16x128xf32>
    %352 = vector.extract_strided_slice %230 {offsets = [17, 0], sizes = [1, 128], strides = [1, 1]} : vector<49x128xf32> to vector<1x128xf32>
    %353 = vector.shape_cast %352 : vector<1x128xf32> to vector<128xf32>
    %354 = vector.shape_cast %353 : vector<128xf32> to vector<1x128xf32>
    %355 = vector.broadcast %354 : vector<1x128xf32> to vector<16x128xf32>
    %356 = arith.mulf %330, %355 : vector<16x128xf32>
    %357 = arith.addf %351, %356 : vector<16x128xf32>
    %c104_i32_55 = arith.constant 104 : i32
    %358 = tpu.dynamic_rotate %330 by %c104_i32_55 dim 1 : vector<16x128xf32>, i32 -> vector<16x128xf32>
    %359 = vector.extract_strided_slice %230 {offsets = [18, 0], sizes = [1, 128], strides = [1, 1]} : vector<49x128xf32> to vector<1x128xf32>
    %360 = vector.shape_cast %359 : vector<1x128xf32> to vector<128xf32>
    %361 = vector.shape_cast %360 : vector<128xf32> to vector<1x128xf32>
    %362 = vector.broadcast %361 : vector<1x128xf32> to vector<16x128xf32>
    %363 = arith.mulf %358, %362 : vector<16x128xf32>
    %364 = arith.addf %357, %363 : vector<16x128xf32>
    %c80_i32_56 = arith.constant 80 : i32
    %365 = tpu.dynamic_rotate %330 by %c80_i32_56 dim 1 : vector<16x128xf32>, i32 -> vector<16x128xf32>
    %366 = vector.extract_strided_slice %230 {offsets = [19, 0], sizes = [1, 128], strides = [1, 1]} : vector<49x128xf32> to vector<1x128xf32>
    %367 = vector.shape_cast %366 : vector<1x128xf32> to vector<128xf32>
    %368 = vector.shape_cast %367 : vector<128xf32> to vector<1x128xf32>
    %369 = vector.broadcast %368 : vector<1x128xf32> to vector<16x128xf32>
    %370 = arith.mulf %365, %369 : vector<16x128xf32>
    %371 = arith.addf %364, %370 : vector<16x128xf32>
    %c56_i32_57 = arith.constant 56 : i32
    %372 = tpu.dynamic_rotate %330 by %c56_i32_57 dim 1 : vector<16x128xf32>, i32 -> vector<16x128xf32>
    %373 = vector.extract_strided_slice %230 {offsets = [20, 0], sizes = [1, 128], strides = [1, 1]} : vector<49x128xf32> to vector<1x128xf32>
    %374 = vector.shape_cast %373 : vector<1x128xf32> to vector<128xf32>
    %375 = vector.shape_cast %374 : vector<128xf32> to vector<1x128xf32>
    %376 = vector.broadcast %375 : vector<1x128xf32> to vector<16x128xf32>
    %377 = arith.mulf %372, %376 : vector<16x128xf32>
    %378 = arith.addf %371, %377 : vector<16x128xf32>
    %379 = vector.extract_strided_slice %229 {offsets = [9, 0], sizes = [16, 128], strides = [1, 1]} : vector<34x128xf32> to vector<16x128xf32>
    %c72_i32_58 = arith.constant 72 : i32
    %380 = tpu.dynamic_rotate %379 by %c72_i32_58 dim 1 : vector<16x128xf32>, i32 -> vector<16x128xf32>
    %381 = vector.extract_strided_slice %230 {offsets = [21, 0], sizes = [1, 128], strides = [1, 1]} : vector<49x128xf32> to vector<1x128xf32>
    %382 = vector.shape_cast %381 : vector<1x128xf32> to vector<128xf32>
    %383 = vector.shape_cast %382 : vector<128xf32> to vector<1x128xf32>
    %384 = vector.broadcast %383 : vector<1x128xf32> to vector<16x128xf32>
    %385 = arith.mulf %380, %384 : vector<16x128xf32>
    %386 = arith.addf %378, %385 : vector<16x128xf32>
    %c48_i32_59 = arith.constant 48 : i32
    %387 = tpu.dynamic_rotate %379 by %c48_i32_59 dim 1 : vector<16x128xf32>, i32 -> vector<16x128xf32>
    %388 = vector.extract_strided_slice %230 {offsets = [22, 0], sizes = [1, 128], strides = [1, 1]} : vector<49x128xf32> to vector<1x128xf32>
    %389 = vector.shape_cast %388 : vector<1x128xf32> to vector<128xf32>
    %390 = vector.shape_cast %389 : vector<128xf32> to vector<1x128xf32>
    %391 = vector.broadcast %390 : vector<1x128xf32> to vector<16x128xf32>
    %392 = arith.mulf %387, %391 : vector<16x128xf32>
    %393 = arith.addf %386, %392 : vector<16x128xf32>
    %c24_i32_60 = arith.constant 24 : i32
    %394 = tpu.dynamic_rotate %379 by %c24_i32_60 dim 1 : vector<16x128xf32>, i32 -> vector<16x128xf32>
    %395 = vector.extract_strided_slice %230 {offsets = [23, 0], sizes = [1, 128], strides = [1, 1]} : vector<49x128xf32> to vector<1x128xf32>
    %396 = vector.shape_cast %395 : vector<1x128xf32> to vector<128xf32>
    %397 = vector.shape_cast %396 : vector<128xf32> to vector<1x128xf32>
    %398 = vector.broadcast %397 : vector<1x128xf32> to vector<16x128xf32>
    %399 = arith.mulf %394, %398 : vector<16x128xf32>
    %400 = arith.addf %393, %399 : vector<16x128xf32>
    %401 = vector.extract_strided_slice %230 {offsets = [24, 0], sizes = [1, 128], strides = [1, 1]} : vector<49x128xf32> to vector<1x128xf32>
    %402 = vector.shape_cast %401 : vector<1x128xf32> to vector<128xf32>
    %403 = vector.shape_cast %402 : vector<128xf32> to vector<1x128xf32>
    %404 = vector.broadcast %403 : vector<1x128xf32> to vector<16x128xf32>
    %405 = arith.mulf %379, %404 : vector<16x128xf32>
    %406 = arith.addf %400, %405 : vector<16x128xf32>
    %c104_i32_61 = arith.constant 104 : i32
    %407 = tpu.dynamic_rotate %379 by %c104_i32_61 dim 1 : vector<16x128xf32>, i32 -> vector<16x128xf32>
    %408 = vector.extract_strided_slice %230 {offsets = [25, 0], sizes = [1, 128], strides = [1, 1]} : vector<49x128xf32> to vector<1x128xf32>
    %409 = vector.shape_cast %408 : vector<1x128xf32> to vector<128xf32>
    %410 = vector.shape_cast %409 : vector<128xf32> to vector<1x128xf32>
    %411 = vector.broadcast %410 : vector<1x128xf32> to vector<16x128xf32>
    %412 = arith.mulf %407, %411 : vector<16x128xf32>
    %413 = arith.addf %406, %412 : vector<16x128xf32>
    %c80_i32_62 = arith.constant 80 : i32
    %414 = tpu.dynamic_rotate %379 by %c80_i32_62 dim 1 : vector<16x128xf32>, i32 -> vector<16x128xf32>
    %415 = vector.extract_strided_slice %230 {offsets = [26, 0], sizes = [1, 128], strides = [1, 1]} : vector<49x128xf32> to vector<1x128xf32>
    %416 = vector.shape_cast %415 : vector<1x128xf32> to vector<128xf32>
    %417 = vector.shape_cast %416 : vector<128xf32> to vector<1x128xf32>
    %418 = vector.broadcast %417 : vector<1x128xf32> to vector<16x128xf32>
    %419 = arith.mulf %414, %418 : vector<16x128xf32>
    %420 = arith.addf %413, %419 : vector<16x128xf32>
    %c56_i32_63 = arith.constant 56 : i32
    %421 = tpu.dynamic_rotate %379 by %c56_i32_63 dim 1 : vector<16x128xf32>, i32 -> vector<16x128xf32>
    %422 = vector.extract_strided_slice %230 {offsets = [27, 0], sizes = [1, 128], strides = [1, 1]} : vector<49x128xf32> to vector<1x128xf32>
    %423 = vector.shape_cast %422 : vector<1x128xf32> to vector<128xf32>
    %424 = vector.shape_cast %423 : vector<128xf32> to vector<1x128xf32>
    %425 = vector.broadcast %424 : vector<1x128xf32> to vector<16x128xf32>
    %426 = arith.mulf %421, %425 : vector<16x128xf32>
    %427 = arith.addf %420, %426 : vector<16x128xf32>
    %428 = vector.extract_strided_slice %229 {offsets = [12, 0], sizes = [16, 128], strides = [1, 1]} : vector<34x128xf32> to vector<16x128xf32>
    %c72_i32_64 = arith.constant 72 : i32
    %429 = tpu.dynamic_rotate %428 by %c72_i32_64 dim 1 : vector<16x128xf32>, i32 -> vector<16x128xf32>
    %430 = vector.extract_strided_slice %230 {offsets = [28, 0], sizes = [1, 128], strides = [1, 1]} : vector<49x128xf32> to vector<1x128xf32>
    %431 = vector.shape_cast %430 : vector<1x128xf32> to vector<128xf32>
    %432 = vector.shape_cast %431 : vector<128xf32> to vector<1x128xf32>
    %433 = vector.broadcast %432 : vector<1x128xf32> to vector<16x128xf32>
    %434 = arith.mulf %429, %433 : vector<16x128xf32>
    %435 = arith.addf %427, %434 : vector<16x128xf32>
    %c48_i32_65 = arith.constant 48 : i32
    %436 = tpu.dynamic_rotate %428 by %c48_i32_65 dim 1 : vector<16x128xf32>, i32 -> vector<16x128xf32>
    %437 = vector.extract_strided_slice %230 {offsets = [29, 0], sizes = [1, 128], strides = [1, 1]} : vector<49x128xf32> to vector<1x128xf32>
    %438 = vector.shape_cast %437 : vector<1x128xf32> to vector<128xf32>
    %439 = vector.shape_cast %438 : vector<128xf32> to vector<1x128xf32>
    %440 = vector.broadcast %439 : vector<1x128xf32> to vector<16x128xf32>
    %441 = arith.mulf %436, %440 : vector<16x128xf32>
    %442 = arith.addf %435, %441 : vector<16x128xf32>
    %c24_i32_66 = arith.constant 24 : i32
    %443 = tpu.dynamic_rotate %428 by %c24_i32_66 dim 1 : vector<16x128xf32>, i32 -> vector<16x128xf32>
    %444 = vector.extract_strided_slice %230 {offsets = [30, 0], sizes = [1, 128], strides = [1, 1]} : vector<49x128xf32> to vector<1x128xf32>
    %445 = vector.shape_cast %444 : vector<1x128xf32> to vector<128xf32>
    %446 = vector.shape_cast %445 : vector<128xf32> to vector<1x128xf32>
    %447 = vector.broadcast %446 : vector<1x128xf32> to vector<16x128xf32>
    %448 = arith.mulf %443, %447 : vector<16x128xf32>
    %449 = arith.addf %442, %448 : vector<16x128xf32>
    %450 = vector.extract_strided_slice %230 {offsets = [31, 0], sizes = [1, 128], strides = [1, 1]} : vector<49x128xf32> to vector<1x128xf32>
    %451 = vector.shape_cast %450 : vector<1x128xf32> to vector<128xf32>
    %452 = vector.shape_cast %451 : vector<128xf32> to vector<1x128xf32>
    %453 = vector.broadcast %452 : vector<1x128xf32> to vector<16x128xf32>
    %454 = arith.mulf %428, %453 : vector<16x128xf32>
    %455 = arith.addf %449, %454 : vector<16x128xf32>
    %c104_i32_67 = arith.constant 104 : i32
    %456 = tpu.dynamic_rotate %428 by %c104_i32_67 dim 1 : vector<16x128xf32>, i32 -> vector<16x128xf32>
    %457 = vector.extract_strided_slice %230 {offsets = [32, 0], sizes = [1, 128], strides = [1, 1]} : vector<49x128xf32> to vector<1x128xf32>
    %458 = vector.shape_cast %457 : vector<1x128xf32> to vector<128xf32>
    %459 = vector.shape_cast %458 : vector<128xf32> to vector<1x128xf32>
    %460 = vector.broadcast %459 : vector<1x128xf32> to vector<16x128xf32>
    %461 = arith.mulf %456, %460 : vector<16x128xf32>
    %462 = arith.addf %455, %461 : vector<16x128xf32>
    %c80_i32_68 = arith.constant 80 : i32
    %463 = tpu.dynamic_rotate %428 by %c80_i32_68 dim 1 : vector<16x128xf32>, i32 -> vector<16x128xf32>
    %464 = vector.extract_strided_slice %230 {offsets = [33, 0], sizes = [1, 128], strides = [1, 1]} : vector<49x128xf32> to vector<1x128xf32>
    %465 = vector.shape_cast %464 : vector<1x128xf32> to vector<128xf32>
    %466 = vector.shape_cast %465 : vector<128xf32> to vector<1x128xf32>
    %467 = vector.broadcast %466 : vector<1x128xf32> to vector<16x128xf32>
    %468 = arith.mulf %463, %467 : vector<16x128xf32>
    %469 = arith.addf %462, %468 : vector<16x128xf32>
    %c56_i32_69 = arith.constant 56 : i32
    %470 = tpu.dynamic_rotate %428 by %c56_i32_69 dim 1 : vector<16x128xf32>, i32 -> vector<16x128xf32>
    %471 = vector.extract_strided_slice %230 {offsets = [34, 0], sizes = [1, 128], strides = [1, 1]} : vector<49x128xf32> to vector<1x128xf32>
    %472 = vector.shape_cast %471 : vector<1x128xf32> to vector<128xf32>
    %473 = vector.shape_cast %472 : vector<128xf32> to vector<1x128xf32>
    %474 = vector.broadcast %473 : vector<1x128xf32> to vector<16x128xf32>
    %475 = arith.mulf %470, %474 : vector<16x128xf32>
    %476 = arith.addf %469, %475 : vector<16x128xf32>
    %477 = vector.extract_strided_slice %229 {offsets = [15, 0], sizes = [16, 128], strides = [1, 1]} : vector<34x128xf32> to vector<16x128xf32>
    %c72_i32_70 = arith.constant 72 : i32
    %478 = tpu.dynamic_rotate %477 by %c72_i32_70 dim 1 : vector<16x128xf32>, i32 -> vector<16x128xf32>
    %479 = vector.extract_strided_slice %230 {offsets = [35, 0], sizes = [1, 128], strides = [1, 1]} : vector<49x128xf32> to vector<1x128xf32>
    %480 = vector.shape_cast %479 : vector<1x128xf32> to vector<128xf32>
    %481 = vector.shape_cast %480 : vector<128xf32> to vector<1x128xf32>
    %482 = vector.broadcast %481 : vector<1x128xf32> to vector<16x128xf32>
    %483 = arith.mulf %478, %482 : vector<16x128xf32>
    %484 = arith.addf %476, %483 : vector<16x128xf32>
    %c48_i32_71 = arith.constant 48 : i32
    %485 = tpu.dynamic_rotate %477 by %c48_i32_71 dim 1 : vector<16x128xf32>, i32 -> vector<16x128xf32>
    %486 = vector.extract_strided_slice %230 {offsets = [36, 0], sizes = [1, 128], strides = [1, 1]} : vector<49x128xf32> to vector<1x128xf32>
    %487 = vector.shape_cast %486 : vector<1x128xf32> to vector<128xf32>
    %488 = vector.shape_cast %487 : vector<128xf32> to vector<1x128xf32>
    %489 = vector.broadcast %488 : vector<1x128xf32> to vector<16x128xf32>
    %490 = arith.mulf %485, %489 : vector<16x128xf32>
    %491 = arith.addf %484, %490 : vector<16x128xf32>
    %c24_i32_72 = arith.constant 24 : i32
    %492 = tpu.dynamic_rotate %477 by %c24_i32_72 dim 1 : vector<16x128xf32>, i32 -> vector<16x128xf32>
    %493 = vector.extract_strided_slice %230 {offsets = [37, 0], sizes = [1, 128], strides = [1, 1]} : vector<49x128xf32> to vector<1x128xf32>
    %494 = vector.shape_cast %493 : vector<1x128xf32> to vector<128xf32>
    %495 = vector.shape_cast %494 : vector<128xf32> to vector<1x128xf32>
    %496 = vector.broadcast %495 : vector<1x128xf32> to vector<16x128xf32>
    %497 = arith.mulf %492, %496 : vector<16x128xf32>
    %498 = arith.addf %491, %497 : vector<16x128xf32>
    %499 = vector.extract_strided_slice %230 {offsets = [38, 0], sizes = [1, 128], strides = [1, 1]} : vector<49x128xf32> to vector<1x128xf32>
    %500 = vector.shape_cast %499 : vector<1x128xf32> to vector<128xf32>
    %501 = vector.shape_cast %500 : vector<128xf32> to vector<1x128xf32>
    %502 = vector.broadcast %501 : vector<1x128xf32> to vector<16x128xf32>
    %503 = arith.mulf %477, %502 : vector<16x128xf32>
    %504 = arith.addf %498, %503 : vector<16x128xf32>
    %c104_i32_73 = arith.constant 104 : i32
    %505 = tpu.dynamic_rotate %477 by %c104_i32_73 dim 1 : vector<16x128xf32>, i32 -> vector<16x128xf32>
    %506 = vector.extract_strided_slice %230 {offsets = [39, 0], sizes = [1, 128], strides = [1, 1]} : vector<49x128xf32> to vector<1x128xf32>
    %507 = vector.shape_cast %506 : vector<1x128xf32> to vector<128xf32>
    %508 = vector.shape_cast %507 : vector<128xf32> to vector<1x128xf32>
    %509 = vector.broadcast %508 : vector<1x128xf32> to vector<16x128xf32>
    %510 = arith.mulf %505, %509 : vector<16x128xf32>
    %511 = arith.addf %504, %510 : vector<16x128xf32>
    %c80_i32_74 = arith.constant 80 : i32
    %512 = tpu.dynamic_rotate %477 by %c80_i32_74 dim 1 : vector<16x128xf32>, i32 -> vector<16x128xf32>
    %513 = vector.extract_strided_slice %230 {offsets = [40, 0], sizes = [1, 128], strides = [1, 1]} : vector<49x128xf32> to vector<1x128xf32>
    %514 = vector.shape_cast %513 : vector<1x128xf32> to vector<128xf32>
    %515 = vector.shape_cast %514 : vector<128xf32> to vector<1x128xf32>
    %516 = vector.broadcast %515 : vector<1x128xf32> to vector<16x128xf32>
    %517 = arith.mulf %512, %516 : vector<16x128xf32>
    %518 = arith.addf %511, %517 : vector<16x128xf32>
    %c56_i32_75 = arith.constant 56 : i32
    %519 = tpu.dynamic_rotate %477 by %c56_i32_75 dim 1 : vector<16x128xf32>, i32 -> vector<16x128xf32>
    %520 = vector.extract_strided_slice %230 {offsets = [41, 0], sizes = [1, 128], strides = [1, 1]} : vector<49x128xf32> to vector<1x128xf32>
    %521 = vector.shape_cast %520 : vector<1x128xf32> to vector<128xf32>
    %522 = vector.shape_cast %521 : vector<128xf32> to vector<1x128xf32>
    %523 = vector.broadcast %522 : vector<1x128xf32> to vector<16x128xf32>
    %524 = arith.mulf %519, %523 : vector<16x128xf32>
    %525 = arith.addf %518, %524 : vector<16x128xf32>
    %526 = vector.extract_strided_slice %229 {offsets = [18, 0], sizes = [16, 128], strides = [1, 1]} : vector<34x128xf32> to vector<16x128xf32>
    %c72_i32_76 = arith.constant 72 : i32
    %527 = tpu.dynamic_rotate %526 by %c72_i32_76 dim 1 : vector<16x128xf32>, i32 -> vector<16x128xf32>
    %528 = vector.extract_strided_slice %230 {offsets = [42, 0], sizes = [1, 128], strides = [1, 1]} : vector<49x128xf32> to vector<1x128xf32>
    %529 = vector.shape_cast %528 : vector<1x128xf32> to vector<128xf32>
    %530 = vector.shape_cast %529 : vector<128xf32> to vector<1x128xf32>
    %531 = vector.broadcast %530 : vector<1x128xf32> to vector<16x128xf32>
    %532 = arith.mulf %527, %531 : vector<16x128xf32>
    %533 = arith.addf %525, %532 : vector<16x128xf32>
    %c48_i32_77 = arith.constant 48 : i32
    %534 = tpu.dynamic_rotate %526 by %c48_i32_77 dim 1 : vector<16x128xf32>, i32 -> vector<16x128xf32>
    %535 = vector.extract_strided_slice %230 {offsets = [43, 0], sizes = [1, 128], strides = [1, 1]} : vector<49x128xf32> to vector<1x128xf32>
    %536 = vector.shape_cast %535 : vector<1x128xf32> to vector<128xf32>
    %537 = vector.shape_cast %536 : vector<128xf32> to vector<1x128xf32>
    %538 = vector.broadcast %537 : vector<1x128xf32> to vector<16x128xf32>
    %539 = arith.mulf %534, %538 : vector<16x128xf32>
    %540 = arith.addf %533, %539 : vector<16x128xf32>
    %c24_i32_78 = arith.constant 24 : i32
    %541 = tpu.dynamic_rotate %526 by %c24_i32_78 dim 1 : vector<16x128xf32>, i32 -> vector<16x128xf32>
    %542 = vector.extract_strided_slice %230 {offsets = [44, 0], sizes = [1, 128], strides = [1, 1]} : vector<49x128xf32> to vector<1x128xf32>
    %543 = vector.shape_cast %542 : vector<1x128xf32> to vector<128xf32>
    %544 = vector.shape_cast %543 : vector<128xf32> to vector<1x128xf32>
    %545 = vector.broadcast %544 : vector<1x128xf32> to vector<16x128xf32>
    %546 = arith.mulf %541, %545 : vector<16x128xf32>
    %547 = arith.addf %540, %546 : vector<16x128xf32>
    %548 = vector.extract_strided_slice %230 {offsets = [45, 0], sizes = [1, 128], strides = [1, 1]} : vector<49x128xf32> to vector<1x128xf32>
    %549 = vector.shape_cast %548 : vector<1x128xf32> to vector<128xf32>
    %550 = vector.shape_cast %549 : vector<128xf32> to vector<1x128xf32>
    %551 = vector.broadcast %550 : vector<1x128xf32> to vector<16x128xf32>
    %552 = arith.mulf %526, %551 : vector<16x128xf32>
    %553 = arith.addf %547, %552 : vector<16x128xf32>
    %c104_i32_79 = arith.constant 104 : i32
    %554 = tpu.dynamic_rotate %526 by %c104_i32_79 dim 1 : vector<16x128xf32>, i32 -> vector<16x128xf32>
    %555 = vector.extract_strided_slice %230 {offsets = [46, 0], sizes = [1, 128], strides = [1, 1]} : vector<49x128xf32> to vector<1x128xf32>
    %556 = vector.shape_cast %555 : vector<1x128xf32> to vector<128xf32>
    %557 = vector.shape_cast %556 : vector<128xf32> to vector<1x128xf32>
    %558 = vector.broadcast %557 : vector<1x128xf32> to vector<16x128xf32>
    %559 = arith.mulf %554, %558 : vector<16x128xf32>
    %560 = arith.addf %553, %559 : vector<16x128xf32>
    %c80_i32_80 = arith.constant 80 : i32
    %561 = tpu.dynamic_rotate %526 by %c80_i32_80 dim 1 : vector<16x128xf32>, i32 -> vector<16x128xf32>
    %562 = vector.extract_strided_slice %230 {offsets = [47, 0], sizes = [1, 128], strides = [1, 1]} : vector<49x128xf32> to vector<1x128xf32>
    %563 = vector.shape_cast %562 : vector<1x128xf32> to vector<128xf32>
    %564 = vector.shape_cast %563 : vector<128xf32> to vector<1x128xf32>
    %565 = vector.broadcast %564 : vector<1x128xf32> to vector<16x128xf32>
    %566 = arith.mulf %561, %565 : vector<16x128xf32>
    %567 = arith.addf %560, %566 : vector<16x128xf32>
    %c56_i32_81 = arith.constant 56 : i32
    %568 = tpu.dynamic_rotate %526 by %c56_i32_81 dim 1 : vector<16x128xf32>, i32 -> vector<16x128xf32>
    %569 = vector.extract_strided_slice %230 {offsets = [48, 0], sizes = [1, 128], strides = [1, 1]} : vector<49x128xf32> to vector<1x128xf32>
    %570 = vector.shape_cast %569 : vector<1x128xf32> to vector<128xf32>
    %571 = vector.shape_cast %570 : vector<128xf32> to vector<1x128xf32>
    %572 = vector.broadcast %571 : vector<1x128xf32> to vector<16x128xf32>
    %573 = arith.mulf %568, %572 : vector<16x128xf32>
    %574 = arith.addf %567, %573 : vector<16x128xf32>
    %c0_82 = arith.constant 0 : index
    %c0_83 = arith.constant 0 : index
    %575 = vector.load %arg7[%c0_82, %c0_83] : memref<1x128xf32, #tpu.memory_space<vmem>>, vector<1x128xf32>
    %576 = vector.broadcast %575 : vector<1x128xf32> to vector<16x128xf32>
    %577 = arith.addf %574, %576 : vector<16x128xf32>
    %c0_84 = arith.constant 0 : index
    %c0_85 = arith.constant 0 : index
    %578 = vector.load %arg8[%c0_84, %c0_85] : memref<128x128xf32, #tpu.memory_space<vmem>>, vector<128x128xf32>
    %cst_86 = arith.constant dense<0.000000e+00> : vector<16x128xf32>
    %579 = tpu.matmul %227, %578, %cst_86 {dimension_numbers = #tpu.dot_dimension_numbers<[1], [0], [0], [1], [0, 0, 1, 1], [], []>} : vector<16x128xf32>, vector<128x128xf32>, vector<16x128xf32> -> vector<16x128xf32>
    %c0_87 = arith.constant 0 : index
    %c0_88 = arith.constant 0 : index
    %580 = vector.load %arg9[%c0_87, %c0_88] : memref<128x128xf32, #tpu.memory_space<vmem>>, vector<128x128xf32>
    %cst_89 = arith.constant dense<0.000000e+00> : vector<16x128xf32>
    %581 = tpu.matmul %577, %580, %cst_89 {dimension_numbers = #tpu.dot_dimension_numbers<[1], [0], [0], [1], [0, 0, 1, 1], [], []>} : vector<16x128xf32>, vector<128x128xf32>, vector<16x128xf32> -> vector<16x128xf32>
    %582 = arith.addf %579, %581 : vector<16x128xf32>
    %c0_90 = arith.constant 0 : index
    %c0_91 = arith.constant 0 : index
    %583 = vector.load %arg10[%c0_90, %c0_91] : memref<1x128xf32, #tpu.memory_space<vmem>>, vector<1x128xf32>
    %584 = vector.broadcast %583 : vector<1x128xf32> to vector<16x128xf32>
    %585 = arith.addf %582, %584 : vector<16x128xf32>
    %586 = tpu.iota {dimensions = array<i32: 1>} : vector<16x128xi32>
    %c124_i32 = arith.constant 124 : i32
    %587 = tpu.dynamic_rotate %585 by %c124_i32 dim 1 : vector<16x128xf32>, i32 -> vector<16x128xf32>
    %c4_i32 = arith.constant 4 : i32
    %588 = tpu.dynamic_rotate %585 by %c4_i32 dim 1 : vector<16x128xf32>, i32 -> vector<16x128xf32>
    %c4_i32_92 = arith.constant 4 : i32
    %589 = vector.broadcast %c4_i32_92 : i32 to vector<16x128xi32>
    %590 = arith.andi %586, %589 : vector<16x128xi32>
    %c0_i32 = arith.constant 0 : i32
    %591 = vector.broadcast %c0_i32 : i32 to vector<16x128xi32>
    %592 = arith.cmpi eq, %590, %591 : vector<16x128xi32>
    %593 = arith.select %592, %587, %588 : vector<16x128xi1>, vector<16x128xf32>
    %594 = arith.addf %585, %593 : vector<16x128xf32>
    %c126_i32 = arith.constant 126 : i32
    %595 = tpu.dynamic_rotate %594 by %c126_i32 dim 1 : vector<16x128xf32>, i32 -> vector<16x128xf32>
    %c2_i32 = arith.constant 2 : i32
    %596 = tpu.dynamic_rotate %594 by %c2_i32 dim 1 : vector<16x128xf32>, i32 -> vector<16x128xf32>
    %c2_i32_93 = arith.constant 2 : i32
    %597 = vector.broadcast %c2_i32_93 : i32 to vector<16x128xi32>
    %598 = arith.andi %586, %597 : vector<16x128xi32>
    %c0_i32_94 = arith.constant 0 : i32
    %599 = vector.broadcast %c0_i32_94 : i32 to vector<16x128xi32>
    %600 = arith.cmpi eq, %598, %599 : vector<16x128xi32>
    %601 = arith.select %600, %595, %596 : vector<16x128xi1>, vector<16x128xf32>
    %602 = arith.addf %594, %601 : vector<16x128xf32>
    %c127_i32 = arith.constant 127 : i32
    %603 = tpu.dynamic_rotate %602 by %c127_i32 dim 1 : vector<16x128xf32>, i32 -> vector<16x128xf32>
    %c1_i32 = arith.constant 1 : i32
    %604 = tpu.dynamic_rotate %602 by %c1_i32 dim 1 : vector<16x128xf32>, i32 -> vector<16x128xf32>
    %c1_i32_95 = arith.constant 1 : i32
    %605 = vector.broadcast %c1_i32_95 : i32 to vector<16x128xi32>
    %606 = arith.andi %586, %605 : vector<16x128xi32>
    %c0_i32_96 = arith.constant 0 : i32
    %607 = vector.broadcast %c0_i32_96 : i32 to vector<16x128xi32>
    %608 = arith.cmpi eq, %606, %607 : vector<16x128xi32>
    %609 = arith.select %608, %603, %604 : vector<16x128xi1>, vector<16x128xf32>
    %610 = arith.addf %602, %609 : vector<16x128xf32>
    %cst_97 = arith.constant 1.250000e-01 : f32
    %611 = vector.broadcast %cst_97 : f32 to vector<16x128xf32>
    %612 = arith.mulf %610, %611 : vector<16x128xf32>
    %c124_i32_98 = arith.constant 124 : i32
    %613 = tpu.dynamic_rotate %585 by %c124_i32_98 dim 1 : vector<16x128xf32>, i32 -> vector<16x128xf32>
    %c4_i32_99 = arith.constant 4 : i32
    %614 = tpu.dynamic_rotate %585 by %c4_i32_99 dim 1 : vector<16x128xf32>, i32 -> vector<16x128xf32>
    %c4_i32_100 = arith.constant 4 : i32
    %615 = vector.broadcast %c4_i32_100 : i32 to vector<16x128xi32>
    %616 = arith.andi %586, %615 : vector<16x128xi32>
    %c0_i32_101 = arith.constant 0 : i32
    %617 = vector.broadcast %c0_i32_101 : i32 to vector<16x128xi32>
    %618 = arith.cmpi eq, %616, %617 : vector<16x128xi32>
    %619 = arith.select %618, %613, %614 : vector<16x128xi1>, vector<16x128xf32>
    %620 = arith.maximumf %585, %619 : vector<16x128xf32>
    %c126_i32_102 = arith.constant 126 : i32
    %621 = tpu.dynamic_rotate %620 by %c126_i32_102 dim 1 : vector<16x128xf32>, i32 -> vector<16x128xf32>
    %c2_i32_103 = arith.constant 2 : i32
    %622 = tpu.dynamic_rotate %620 by %c2_i32_103 dim 1 : vector<16x128xf32>, i32 -> vector<16x128xf32>
    %c2_i32_104 = arith.constant 2 : i32
    %623 = vector.broadcast %c2_i32_104 : i32 to vector<16x128xi32>
    %624 = arith.andi %586, %623 : vector<16x128xi32>
    %c0_i32_105 = arith.constant 0 : i32
    %625 = vector.broadcast %c0_i32_105 : i32 to vector<16x128xi32>
    %626 = arith.cmpi eq, %624, %625 : vector<16x128xi32>
    %627 = arith.select %626, %621, %622 : vector<16x128xi1>, vector<16x128xf32>
    %628 = arith.maximumf %620, %627 : vector<16x128xf32>
    %c127_i32_106 = arith.constant 127 : i32
    %629 = tpu.dynamic_rotate %628 by %c127_i32_106 dim 1 : vector<16x128xf32>, i32 -> vector<16x128xf32>
    %c1_i32_107 = arith.constant 1 : i32
    %630 = tpu.dynamic_rotate %628 by %c1_i32_107 dim 1 : vector<16x128xf32>, i32 -> vector<16x128xf32>
    %c1_i32_108 = arith.constant 1 : i32
    %631 = vector.broadcast %c1_i32_108 : i32 to vector<16x128xi32>
    %632 = arith.andi %586, %631 : vector<16x128xi32>
    %c0_i32_109 = arith.constant 0 : i32
    %633 = vector.broadcast %c0_i32_109 : i32 to vector<16x128xi32>
    %634 = arith.cmpi eq, %632, %633 : vector<16x128xi32>
    %635 = arith.select %634, %629, %630 : vector<16x128xi1>, vector<16x128xf32>
    %636 = arith.maximumf %628, %635 : vector<16x128xf32>
    %c8_i32_110 = arith.constant 8 : i32
    %c0_i32_111 = arith.constant 0 : i32
    %637 = arith.cmpi eq, %c8_i32_110, %c0_i32_111 : i32
    %c1_i32_112 = arith.constant 1 : i32
    %638 = arith.select %637, %c1_i32_112, %c8_i32_110 : i32
    %639 = vector.broadcast %638 : i32 to vector<16x128xi32>
    %640 = arith.remsi %586, %639 : vector<16x128xi32>
    %c0_i32_113 = arith.constant 0 : i32
    %641 = vector.broadcast %c0_i32_113 : i32 to vector<16x128xi32>
    %642 = arith.cmpi ne, %640, %641 : vector<16x128xi32>
    %c0_i32_114 = arith.constant 0 : i32
    %643 = vector.broadcast %c0_i32_114 : i32 to vector<16x128xi32>
    %644 = arith.cmpi slt, %640, %643 : vector<16x128xi32>
    %c0_i32_115 = arith.constant 0 : i32
    %645 = arith.cmpi slt, %638, %c0_i32_115 : i32
    %646 = vector.broadcast %645 : i1 to vector<16x128xi1>
    %647 = vector.broadcast %646 : vector<16x128xi1> to vector<16x128xi1>
    %648 = arith.xori %644, %647 : vector<16x128xi1>
    %649 = arith.andi %648, %642 : vector<16x128xi1>
    %650 = vector.broadcast %638 : i32 to vector<16x128xi32>
    %651 = arith.addi %640, %650 : vector<16x128xi32>
    %652 = arith.select %649, %651, %640 : vector<16x128xi1>, vector<16x128xi32>
    %c4_i32_116 = arith.constant 4 : i32
    %653 = vector.broadcast %c4_i32_116 : i32 to vector<16x128xi32>
    %654 = arith.cmpi slt, %652, %653 : vector<16x128xi32>
    %655 = arith.select %654, %612, %636 : vector<16x128xi1>, vector<16x128xf32>
    %656 = arith.select %654, %636, %612 : vector<16x128xi1>, vector<16x128xf32>
    %cst_117 = arith.constant 0.000000e+00 : f32
    %657 = vector.broadcast %cst_117 : f32 to vector<3x128xf32>
    %658 = tpu.concatenate %657, %655, %657 in 0 : vector<3x128xf32>, vector<16x128xf32>, vector<3x128xf32> -> vector<22x128xf32>
    %cst_118 = arith.constant 0.000000e+00 : f32
    %659 = vector.broadcast %cst_118 : f32 to vector<3x128xf32>
    %660 = tpu.concatenate %659, %656, %659 in 0 : vector<3x128xf32>, vector<16x128xf32>, vector<3x128xf32> -> vector<22x128xf32>
    %c0_119 = arith.constant 0 : index
    %c0_120 = arith.constant 0 : index
    %661 = vector.load %arg11[%c0_119, %c0_120] : memref<49x128xf32, #tpu.memory_space<vmem>>, vector<49x128xf32>
    %c0_121 = arith.constant 0 : index
    %c0_122 = arith.constant 0 : index
    %662 = vector.load %arg12[%c0_121, %c0_122] : memref<49x128xf32, #tpu.memory_space<vmem>>, vector<49x128xf32>
    %cst_123 = arith.constant 0.000000e+00 : f32
    %663 = vector.broadcast %cst_123 : f32 to vector<16x128xf32>
    %664 = vector.extract_strided_slice %658 {offsets = [0, 0], sizes = [16, 128], strides = [1, 1]} : vector<22x128xf32> to vector<16x128xf32>
    %665 = vector.extract_strided_slice %660 {offsets = [0, 0], sizes = [16, 128], strides = [1, 1]} : vector<22x128xf32> to vector<16x128xf32>
    %c24_i32_124 = arith.constant 24 : i32
    %666 = tpu.dynamic_rotate %664 by %c24_i32_124 dim 1 : vector<16x128xf32>, i32 -> vector<16x128xf32>
    %667 = vector.extract_strided_slice %661 {offsets = [0, 0], sizes = [1, 128], strides = [1, 1]} : vector<49x128xf32> to vector<1x128xf32>
    %668 = vector.shape_cast %667 : vector<1x128xf32> to vector<128xf32>
    %669 = vector.shape_cast %668 : vector<128xf32> to vector<1x128xf32>
    %670 = vector.broadcast %669 : vector<1x128xf32> to vector<16x128xf32>
    %671 = arith.mulf %666, %670 : vector<16x128xf32>
    %672 = arith.addf %663, %671 : vector<16x128xf32>
    %c24_i32_125 = arith.constant 24 : i32
    %673 = tpu.dynamic_rotate %665 by %c24_i32_125 dim 1 : vector<16x128xf32>, i32 -> vector<16x128xf32>
    %674 = vector.extract_strided_slice %662 {offsets = [0, 0], sizes = [1, 128], strides = [1, 1]} : vector<49x128xf32> to vector<1x128xf32>
    %675 = vector.shape_cast %674 : vector<1x128xf32> to vector<128xf32>
    %676 = vector.shape_cast %675 : vector<128xf32> to vector<1x128xf32>
    %677 = vector.broadcast %676 : vector<1x128xf32> to vector<16x128xf32>
    %678 = arith.mulf %673, %677 : vector<16x128xf32>
    %679 = arith.addf %672, %678 : vector<16x128xf32>
    %c16_i32_126 = arith.constant 16 : i32
    %680 = tpu.dynamic_rotate %664 by %c16_i32_126 dim 1 : vector<16x128xf32>, i32 -> vector<16x128xf32>
    %681 = vector.extract_strided_slice %661 {offsets = [1, 0], sizes = [1, 128], strides = [1, 1]} : vector<49x128xf32> to vector<1x128xf32>
    %682 = vector.shape_cast %681 : vector<1x128xf32> to vector<128xf32>
    %683 = vector.shape_cast %682 : vector<128xf32> to vector<1x128xf32>
    %684 = vector.broadcast %683 : vector<1x128xf32> to vector<16x128xf32>
    %685 = arith.mulf %680, %684 : vector<16x128xf32>
    %686 = arith.addf %679, %685 : vector<16x128xf32>
    %c16_i32_127 = arith.constant 16 : i32
    %687 = tpu.dynamic_rotate %665 by %c16_i32_127 dim 1 : vector<16x128xf32>, i32 -> vector<16x128xf32>
    %688 = vector.extract_strided_slice %662 {offsets = [1, 0], sizes = [1, 128], strides = [1, 1]} : vector<49x128xf32> to vector<1x128xf32>
    %689 = vector.shape_cast %688 : vector<1x128xf32> to vector<128xf32>
    %690 = vector.shape_cast %689 : vector<128xf32> to vector<1x128xf32>
    %691 = vector.broadcast %690 : vector<1x128xf32> to vector<16x128xf32>
    %692 = arith.mulf %687, %691 : vector<16x128xf32>
    %693 = arith.addf %686, %692 : vector<16x128xf32>
    %c8_i32_128 = arith.constant 8 : i32
    %694 = tpu.dynamic_rotate %664 by %c8_i32_128 dim 1 : vector<16x128xf32>, i32 -> vector<16x128xf32>
    %695 = vector.extract_strided_slice %661 {offsets = [2, 0], sizes = [1, 128], strides = [1, 1]} : vector<49x128xf32> to vector<1x128xf32>
    %696 = vector.shape_cast %695 : vector<1x128xf32> to vector<128xf32>
    %697 = vector.shape_cast %696 : vector<128xf32> to vector<1x128xf32>
    %698 = vector.broadcast %697 : vector<1x128xf32> to vector<16x128xf32>
    %699 = arith.mulf %694, %698 : vector<16x128xf32>
    %700 = arith.addf %693, %699 : vector<16x128xf32>
    %c8_i32_129 = arith.constant 8 : i32
    %701 = tpu.dynamic_rotate %665 by %c8_i32_129 dim 1 : vector<16x128xf32>, i32 -> vector<16x128xf32>
    %702 = vector.extract_strided_slice %662 {offsets = [2, 0], sizes = [1, 128], strides = [1, 1]} : vector<49x128xf32> to vector<1x128xf32>
    %703 = vector.shape_cast %702 : vector<1x128xf32> to vector<128xf32>
    %704 = vector.shape_cast %703 : vector<128xf32> to vector<1x128xf32>
    %705 = vector.broadcast %704 : vector<1x128xf32> to vector<16x128xf32>
    %706 = arith.mulf %701, %705 : vector<16x128xf32>
    %707 = arith.addf %700, %706 : vector<16x128xf32>
    %708 = vector.extract_strided_slice %661 {offsets = [3, 0], sizes = [1, 128], strides = [1, 1]} : vector<49x128xf32> to vector<1x128xf32>
    %709 = vector.shape_cast %708 : vector<1x128xf32> to vector<128xf32>
    %710 = vector.shape_cast %709 : vector<128xf32> to vector<1x128xf32>
    %711 = vector.broadcast %710 : vector<1x128xf32> to vector<16x128xf32>
    %712 = arith.mulf %664, %711 : vector<16x128xf32>
    %713 = arith.addf %707, %712 : vector<16x128xf32>
    %714 = vector.extract_strided_slice %662 {offsets = [3, 0], sizes = [1, 128], strides = [1, 1]} : vector<49x128xf32> to vector<1x128xf32>
    %715 = vector.shape_cast %714 : vector<1x128xf32> to vector<128xf32>
    %716 = vector.shape_cast %715 : vector<128xf32> to vector<1x128xf32>
    %717 = vector.broadcast %716 : vector<1x128xf32> to vector<16x128xf32>
    %718 = arith.mulf %665, %717 : vector<16x128xf32>
    %719 = arith.addf %713, %718 : vector<16x128xf32>
    %c120_i32_130 = arith.constant 120 : i32
    %720 = tpu.dynamic_rotate %664 by %c120_i32_130 dim 1 : vector<16x128xf32>, i32 -> vector<16x128xf32>
    %721 = vector.extract_strided_slice %661 {offsets = [4, 0], sizes = [1, 128], strides = [1, 1]} : vector<49x128xf32> to vector<1x128xf32>
    %722 = vector.shape_cast %721 : vector<1x128xf32> to vector<128xf32>
    %723 = vector.shape_cast %722 : vector<128xf32> to vector<1x128xf32>
    %724 = vector.broadcast %723 : vector<1x128xf32> to vector<16x128xf32>
    %725 = arith.mulf %720, %724 : vector<16x128xf32>
    %726 = arith.addf %719, %725 : vector<16x128xf32>
    %c120_i32_131 = arith.constant 120 : i32
    %727 = tpu.dynamic_rotate %665 by %c120_i32_131 dim 1 : vector<16x128xf32>, i32 -> vector<16x128xf32>
    %728 = vector.extract_strided_slice %662 {offsets = [4, 0], sizes = [1, 128], strides = [1, 1]} : vector<49x128xf32> to vector<1x128xf32>
    %729 = vector.shape_cast %728 : vector<1x128xf32> to vector<128xf32>
    %730 = vector.shape_cast %729 : vector<128xf32> to vector<1x128xf32>
    %731 = vector.broadcast %730 : vector<1x128xf32> to vector<16x128xf32>
    %732 = arith.mulf %727, %731 : vector<16x128xf32>
    %733 = arith.addf %726, %732 : vector<16x128xf32>
    %c112_i32_132 = arith.constant 112 : i32
    %734 = tpu.dynamic_rotate %664 by %c112_i32_132 dim 1 : vector<16x128xf32>, i32 -> vector<16x128xf32>
    %735 = vector.extract_strided_slice %661 {offsets = [5, 0], sizes = [1, 128], strides = [1, 1]} : vector<49x128xf32> to vector<1x128xf32>
    %736 = vector.shape_cast %735 : vector<1x128xf32> to vector<128xf32>
    %737 = vector.shape_cast %736 : vector<128xf32> to vector<1x128xf32>
    %738 = vector.broadcast %737 : vector<1x128xf32> to vector<16x128xf32>
    %739 = arith.mulf %734, %738 : vector<16x128xf32>
    %740 = arith.addf %733, %739 : vector<16x128xf32>
    %c112_i32_133 = arith.constant 112 : i32
    %741 = tpu.dynamic_rotate %665 by %c112_i32_133 dim 1 : vector<16x128xf32>, i32 -> vector<16x128xf32>
    %742 = vector.extract_strided_slice %662 {offsets = [5, 0], sizes = [1, 128], strides = [1, 1]} : vector<49x128xf32> to vector<1x128xf32>
    %743 = vector.shape_cast %742 : vector<1x128xf32> to vector<128xf32>
    %744 = vector.shape_cast %743 : vector<128xf32> to vector<1x128xf32>
    %745 = vector.broadcast %744 : vector<1x128xf32> to vector<16x128xf32>
    %746 = arith.mulf %741, %745 : vector<16x128xf32>
    %747 = arith.addf %740, %746 : vector<16x128xf32>
    %c104_i32_134 = arith.constant 104 : i32
    %748 = tpu.dynamic_rotate %664 by %c104_i32_134 dim 1 : vector<16x128xf32>, i32 -> vector<16x128xf32>
    %749 = vector.extract_strided_slice %661 {offsets = [6, 0], sizes = [1, 128], strides = [1, 1]} : vector<49x128xf32> to vector<1x128xf32>
    %750 = vector.shape_cast %749 : vector<1x128xf32> to vector<128xf32>
    %751 = vector.shape_cast %750 : vector<128xf32> to vector<1x128xf32>
    %752 = vector.broadcast %751 : vector<1x128xf32> to vector<16x128xf32>
    %753 = arith.mulf %748, %752 : vector<16x128xf32>
    %754 = arith.addf %747, %753 : vector<16x128xf32>
    %c104_i32_135 = arith.constant 104 : i32
    %755 = tpu.dynamic_rotate %665 by %c104_i32_135 dim 1 : vector<16x128xf32>, i32 -> vector<16x128xf32>
    %756 = vector.extract_strided_slice %662 {offsets = [6, 0], sizes = [1, 128], strides = [1, 1]} : vector<49x128xf32> to vector<1x128xf32>
    %757 = vector.shape_cast %756 : vector<1x128xf32> to vector<128xf32>
    %758 = vector.shape_cast %757 : vector<128xf32> to vector<1x128xf32>
    %759 = vector.broadcast %758 : vector<1x128xf32> to vector<16x128xf32>
    %760 = arith.mulf %755, %759 : vector<16x128xf32>
    %761 = arith.addf %754, %760 : vector<16x128xf32>
    %762 = vector.extract_strided_slice %658 {offsets = [1, 0], sizes = [16, 128], strides = [1, 1]} : vector<22x128xf32> to vector<16x128xf32>
    %763 = vector.extract_strided_slice %660 {offsets = [1, 0], sizes = [16, 128], strides = [1, 1]} : vector<22x128xf32> to vector<16x128xf32>
    %c24_i32_136 = arith.constant 24 : i32
    %764 = tpu.dynamic_rotate %762 by %c24_i32_136 dim 1 : vector<16x128xf32>, i32 -> vector<16x128xf32>
    %765 = vector.extract_strided_slice %661 {offsets = [7, 0], sizes = [1, 128], strides = [1, 1]} : vector<49x128xf32> to vector<1x128xf32>
    %766 = vector.shape_cast %765 : vector<1x128xf32> to vector<128xf32>
    %767 = vector.shape_cast %766 : vector<128xf32> to vector<1x128xf32>
    %768 = vector.broadcast %767 : vector<1x128xf32> to vector<16x128xf32>
    %769 = arith.mulf %764, %768 : vector<16x128xf32>
    %770 = arith.addf %761, %769 : vector<16x128xf32>
    %c24_i32_137 = arith.constant 24 : i32
    %771 = tpu.dynamic_rotate %763 by %c24_i32_137 dim 1 : vector<16x128xf32>, i32 -> vector<16x128xf32>
    %772 = vector.extract_strided_slice %662 {offsets = [7, 0], sizes = [1, 128], strides = [1, 1]} : vector<49x128xf32> to vector<1x128xf32>
    %773 = vector.shape_cast %772 : vector<1x128xf32> to vector<128xf32>
    %774 = vector.shape_cast %773 : vector<128xf32> to vector<1x128xf32>
    %775 = vector.broadcast %774 : vector<1x128xf32> to vector<16x128xf32>
    %776 = arith.mulf %771, %775 : vector<16x128xf32>
    %777 = arith.addf %770, %776 : vector<16x128xf32>
    %c16_i32_138 = arith.constant 16 : i32
    %778 = tpu.dynamic_rotate %762 by %c16_i32_138 dim 1 : vector<16x128xf32>, i32 -> vector<16x128xf32>
    %779 = vector.extract_strided_slice %661 {offsets = [8, 0], sizes = [1, 128], strides = [1, 1]} : vector<49x128xf32> to vector<1x128xf32>
    %780 = vector.shape_cast %779 : vector<1x128xf32> to vector<128xf32>
    %781 = vector.shape_cast %780 : vector<128xf32> to vector<1x128xf32>
    %782 = vector.broadcast %781 : vector<1x128xf32> to vector<16x128xf32>
    %783 = arith.mulf %778, %782 : vector<16x128xf32>
    %784 = arith.addf %777, %783 : vector<16x128xf32>
    %c16_i32_139 = arith.constant 16 : i32
    %785 = tpu.dynamic_rotate %763 by %c16_i32_139 dim 1 : vector<16x128xf32>, i32 -> vector<16x128xf32>
    %786 = vector.extract_strided_slice %662 {offsets = [8, 0], sizes = [1, 128], strides = [1, 1]} : vector<49x128xf32> to vector<1x128xf32>
    %787 = vector.shape_cast %786 : vector<1x128xf32> to vector<128xf32>
    %788 = vector.shape_cast %787 : vector<128xf32> to vector<1x128xf32>
    %789 = vector.broadcast %788 : vector<1x128xf32> to vector<16x128xf32>
    %790 = arith.mulf %785, %789 : vector<16x128xf32>
    %791 = arith.addf %784, %790 : vector<16x128xf32>
    %c8_i32_140 = arith.constant 8 : i32
    %792 = tpu.dynamic_rotate %762 by %c8_i32_140 dim 1 : vector<16x128xf32>, i32 -> vector<16x128xf32>
    %793 = vector.extract_strided_slice %661 {offsets = [9, 0], sizes = [1, 128], strides = [1, 1]} : vector<49x128xf32> to vector<1x128xf32>
    %794 = vector.shape_cast %793 : vector<1x128xf32> to vector<128xf32>
    %795 = vector.shape_cast %794 : vector<128xf32> to vector<1x128xf32>
    %796 = vector.broadcast %795 : vector<1x128xf32> to vector<16x128xf32>
    %797 = arith.mulf %792, %796 : vector<16x128xf32>
    %798 = arith.addf %791, %797 : vector<16x128xf32>
    %c8_i32_141 = arith.constant 8 : i32
    %799 = tpu.dynamic_rotate %763 by %c8_i32_141 dim 1 : vector<16x128xf32>, i32 -> vector<16x128xf32>
    %800 = vector.extract_strided_slice %662 {offsets = [9, 0], sizes = [1, 128], strides = [1, 1]} : vector<49x128xf32> to vector<1x128xf32>
    %801 = vector.shape_cast %800 : vector<1x128xf32> to vector<128xf32>
    %802 = vector.shape_cast %801 : vector<128xf32> to vector<1x128xf32>
    %803 = vector.broadcast %802 : vector<1x128xf32> to vector<16x128xf32>
    %804 = arith.mulf %799, %803 : vector<16x128xf32>
    %805 = arith.addf %798, %804 : vector<16x128xf32>
    %806 = vector.extract_strided_slice %661 {offsets = [10, 0], sizes = [1, 128], strides = [1, 1]} : vector<49x128xf32> to vector<1x128xf32>
    %807 = vector.shape_cast %806 : vector<1x128xf32> to vector<128xf32>
    %808 = vector.shape_cast %807 : vector<128xf32> to vector<1x128xf32>
    %809 = vector.broadcast %808 : vector<1x128xf32> to vector<16x128xf32>
    %810 = arith.mulf %762, %809 : vector<16x128xf32>
    %811 = arith.addf %805, %810 : vector<16x128xf32>
    %812 = vector.extract_strided_slice %662 {offsets = [10, 0], sizes = [1, 128], strides = [1, 1]} : vector<49x128xf32> to vector<1x128xf32>
    %813 = vector.shape_cast %812 : vector<1x128xf32> to vector<128xf32>
    %814 = vector.shape_cast %813 : vector<128xf32> to vector<1x128xf32>
    %815 = vector.broadcast %814 : vector<1x128xf32> to vector<16x128xf32>
    %816 = arith.mulf %763, %815 : vector<16x128xf32>
    %817 = arith.addf %811, %816 : vector<16x128xf32>
    %c120_i32_142 = arith.constant 120 : i32
    %818 = tpu.dynamic_rotate %762 by %c120_i32_142 dim 1 : vector<16x128xf32>, i32 -> vector<16x128xf32>
    %819 = vector.extract_strided_slice %661 {offsets = [11, 0], sizes = [1, 128], strides = [1, 1]} : vector<49x128xf32> to vector<1x128xf32>
    %820 = vector.shape_cast %819 : vector<1x128xf32> to vector<128xf32>
    %821 = vector.shape_cast %820 : vector<128xf32> to vector<1x128xf32>
    %822 = vector.broadcast %821 : vector<1x128xf32> to vector<16x128xf32>
    %823 = arith.mulf %818, %822 : vector<16x128xf32>
    %824 = arith.addf %817, %823 : vector<16x128xf32>
    %c120_i32_143 = arith.constant 120 : i32
    %825 = tpu.dynamic_rotate %763 by %c120_i32_143 dim 1 : vector<16x128xf32>, i32 -> vector<16x128xf32>
    %826 = vector.extract_strided_slice %662 {offsets = [11, 0], sizes = [1, 128], strides = [1, 1]} : vector<49x128xf32> to vector<1x128xf32>
    %827 = vector.shape_cast %826 : vector<1x128xf32> to vector<128xf32>
    %828 = vector.shape_cast %827 : vector<128xf32> to vector<1x128xf32>
    %829 = vector.broadcast %828 : vector<1x128xf32> to vector<16x128xf32>
    %830 = arith.mulf %825, %829 : vector<16x128xf32>
    %831 = arith.addf %824, %830 : vector<16x128xf32>
    %c112_i32_144 = arith.constant 112 : i32
    %832 = tpu.dynamic_rotate %762 by %c112_i32_144 dim 1 : vector<16x128xf32>, i32 -> vector<16x128xf32>
    %833 = vector.extract_strided_slice %661 {offsets = [12, 0], sizes = [1, 128], strides = [1, 1]} : vector<49x128xf32> to vector<1x128xf32>
    %834 = vector.shape_cast %833 : vector<1x128xf32> to vector<128xf32>
    %835 = vector.shape_cast %834 : vector<128xf32> to vector<1x128xf32>
    %836 = vector.broadcast %835 : vector<1x128xf32> to vector<16x128xf32>
    %837 = arith.mulf %832, %836 : vector<16x128xf32>
    %838 = arith.addf %831, %837 : vector<16x128xf32>
    %c112_i32_145 = arith.constant 112 : i32
    %839 = tpu.dynamic_rotate %763 by %c112_i32_145 dim 1 : vector<16x128xf32>, i32 -> vector<16x128xf32>
    %840 = vector.extract_strided_slice %662 {offsets = [12, 0], sizes = [1, 128], strides = [1, 1]} : vector<49x128xf32> to vector<1x128xf32>
    %841 = vector.shape_cast %840 : vector<1x128xf32> to vector<128xf32>
    %842 = vector.shape_cast %841 : vector<128xf32> to vector<1x128xf32>
    %843 = vector.broadcast %842 : vector<1x128xf32> to vector<16x128xf32>
    %844 = arith.mulf %839, %843 : vector<16x128xf32>
    %845 = arith.addf %838, %844 : vector<16x128xf32>
    %c104_i32_146 = arith.constant 104 : i32
    %846 = tpu.dynamic_rotate %762 by %c104_i32_146 dim 1 : vector<16x128xf32>, i32 -> vector<16x128xf32>
    %847 = vector.extract_strided_slice %661 {offsets = [13, 0], sizes = [1, 128], strides = [1, 1]} : vector<49x128xf32> to vector<1x128xf32>
    %848 = vector.shape_cast %847 : vector<1x128xf32> to vector<128xf32>
    %849 = vector.shape_cast %848 : vector<128xf32> to vector<1x128xf32>
    %850 = vector.broadcast %849 : vector<1x128xf32> to vector<16x128xf32>
    %851 = arith.mulf %846, %850 : vector<16x128xf32>
    %852 = arith.addf %845, %851 : vector<16x128xf32>
    %c104_i32_147 = arith.constant 104 : i32
    %853 = tpu.dynamic_rotate %763 by %c104_i32_147 dim 1 : vector<16x128xf32>, i32 -> vector<16x128xf32>
    %854 = vector.extract_strided_slice %662 {offsets = [13, 0], sizes = [1, 128], strides = [1, 1]} : vector<49x128xf32> to vector<1x128xf32>
    %855 = vector.shape_cast %854 : vector<1x128xf32> to vector<128xf32>
    %856 = vector.shape_cast %855 : vector<128xf32> to vector<1x128xf32>
    %857 = vector.broadcast %856 : vector<1x128xf32> to vector<16x128xf32>
    %858 = arith.mulf %853, %857 : vector<16x128xf32>
    %859 = arith.addf %852, %858 : vector<16x128xf32>
    %860 = vector.extract_strided_slice %658 {offsets = [2, 0], sizes = [16, 128], strides = [1, 1]} : vector<22x128xf32> to vector<16x128xf32>
    %861 = vector.extract_strided_slice %660 {offsets = [2, 0], sizes = [16, 128], strides = [1, 1]} : vector<22x128xf32> to vector<16x128xf32>
    %c24_i32_148 = arith.constant 24 : i32
    %862 = tpu.dynamic_rotate %860 by %c24_i32_148 dim 1 : vector<16x128xf32>, i32 -> vector<16x128xf32>
    %863 = vector.extract_strided_slice %661 {offsets = [14, 0], sizes = [1, 128], strides = [1, 1]} : vector<49x128xf32> to vector<1x128xf32>
    %864 = vector.shape_cast %863 : vector<1x128xf32> to vector<128xf32>
    %865 = vector.shape_cast %864 : vector<128xf32> to vector<1x128xf32>
    %866 = vector.broadcast %865 : vector<1x128xf32> to vector<16x128xf32>
    %867 = arith.mulf %862, %866 : vector<16x128xf32>
    %868 = arith.addf %859, %867 : vector<16x128xf32>
    %c24_i32_149 = arith.constant 24 : i32
    %869 = tpu.dynamic_rotate %861 by %c24_i32_149 dim 1 : vector<16x128xf32>, i32 -> vector<16x128xf32>
    %870 = vector.extract_strided_slice %662 {offsets = [14, 0], sizes = [1, 128], strides = [1, 1]} : vector<49x128xf32> to vector<1x128xf32>
    %871 = vector.shape_cast %870 : vector<1x128xf32> to vector<128xf32>
    %872 = vector.shape_cast %871 : vector<128xf32> to vector<1x128xf32>
    %873 = vector.broadcast %872 : vector<1x128xf32> to vector<16x128xf32>
    %874 = arith.mulf %869, %873 : vector<16x128xf32>
    %875 = arith.addf %868, %874 : vector<16x128xf32>
    %c16_i32_150 = arith.constant 16 : i32
    %876 = tpu.dynamic_rotate %860 by %c16_i32_150 dim 1 : vector<16x128xf32>, i32 -> vector<16x128xf32>
    %877 = vector.extract_strided_slice %661 {offsets = [15, 0], sizes = [1, 128], strides = [1, 1]} : vector<49x128xf32> to vector<1x128xf32>
    %878 = vector.shape_cast %877 : vector<1x128xf32> to vector<128xf32>
    %879 = vector.shape_cast %878 : vector<128xf32> to vector<1x128xf32>
    %880 = vector.broadcast %879 : vector<1x128xf32> to vector<16x128xf32>
    %881 = arith.mulf %876, %880 : vector<16x128xf32>
    %882 = arith.addf %875, %881 : vector<16x128xf32>
    %c16_i32_151 = arith.constant 16 : i32
    %883 = tpu.dynamic_rotate %861 by %c16_i32_151 dim 1 : vector<16x128xf32>, i32 -> vector<16x128xf32>
    %884 = vector.extract_strided_slice %662 {offsets = [15, 0], sizes = [1, 128], strides = [1, 1]} : vector<49x128xf32> to vector<1x128xf32>
    %885 = vector.shape_cast %884 : vector<1x128xf32> to vector<128xf32>
    %886 = vector.shape_cast %885 : vector<128xf32> to vector<1x128xf32>
    %887 = vector.broadcast %886 : vector<1x128xf32> to vector<16x128xf32>
    %888 = arith.mulf %883, %887 : vector<16x128xf32>
    %889 = arith.addf %882, %888 : vector<16x128xf32>
    %c8_i32_152 = arith.constant 8 : i32
    %890 = tpu.dynamic_rotate %860 by %c8_i32_152 dim 1 : vector<16x128xf32>, i32 -> vector<16x128xf32>
    %891 = vector.extract_strided_slice %661 {offsets = [16, 0], sizes = [1, 128], strides = [1, 1]} : vector<49x128xf32> to vector<1x128xf32>
    %892 = vector.shape_cast %891 : vector<1x128xf32> to vector<128xf32>
    %893 = vector.shape_cast %892 : vector<128xf32> to vector<1x128xf32>
    %894 = vector.broadcast %893 : vector<1x128xf32> to vector<16x128xf32>
    %895 = arith.mulf %890, %894 : vector<16x128xf32>
    %896 = arith.addf %889, %895 : vector<16x128xf32>
    %c8_i32_153 = arith.constant 8 : i32
    %897 = tpu.dynamic_rotate %861 by %c8_i32_153 dim 1 : vector<16x128xf32>, i32 -> vector<16x128xf32>
    %898 = vector.extract_strided_slice %662 {offsets = [16, 0], sizes = [1, 128], strides = [1, 1]} : vector<49x128xf32> to vector<1x128xf32>
    %899 = vector.shape_cast %898 : vector<1x128xf32> to vector<128xf32>
    %900 = vector.shape_cast %899 : vector<128xf32> to vector<1x128xf32>
    %901 = vector.broadcast %900 : vector<1x128xf32> to vector<16x128xf32>
    %902 = arith.mulf %897, %901 : vector<16x128xf32>
    %903 = arith.addf %896, %902 : vector<16x128xf32>
    %904 = vector.extract_strided_slice %661 {offsets = [17, 0], sizes = [1, 128], strides = [1, 1]} : vector<49x128xf32> to vector<1x128xf32>
    %905 = vector.shape_cast %904 : vector<1x128xf32> to vector<128xf32>
    %906 = vector.shape_cast %905 : vector<128xf32> to vector<1x128xf32>
    %907 = vector.broadcast %906 : vector<1x128xf32> to vector<16x128xf32>
    %908 = arith.mulf %860, %907 : vector<16x128xf32>
    %909 = arith.addf %903, %908 : vector<16x128xf32>
    %910 = vector.extract_strided_slice %662 {offsets = [17, 0], sizes = [1, 128], strides = [1, 1]} : vector<49x128xf32> to vector<1x128xf32>
    %911 = vector.shape_cast %910 : vector<1x128xf32> to vector<128xf32>
    %912 = vector.shape_cast %911 : vector<128xf32> to vector<1x128xf32>
    %913 = vector.broadcast %912 : vector<1x128xf32> to vector<16x128xf32>
    %914 = arith.mulf %861, %913 : vector<16x128xf32>
    %915 = arith.addf %909, %914 : vector<16x128xf32>
    %c120_i32_154 = arith.constant 120 : i32
    %916 = tpu.dynamic_rotate %860 by %c120_i32_154 dim 1 : vector<16x128xf32>, i32 -> vector<16x128xf32>
    %917 = vector.extract_strided_slice %661 {offsets = [18, 0], sizes = [1, 128], strides = [1, 1]} : vector<49x128xf32> to vector<1x128xf32>
    %918 = vector.shape_cast %917 : vector<1x128xf32> to vector<128xf32>
    %919 = vector.shape_cast %918 : vector<128xf32> to vector<1x128xf32>
    %920 = vector.broadcast %919 : vector<1x128xf32> to vector<16x128xf32>
    %921 = arith.mulf %916, %920 : vector<16x128xf32>
    %922 = arith.addf %915, %921 : vector<16x128xf32>
    %c120_i32_155 = arith.constant 120 : i32
    %923 = tpu.dynamic_rotate %861 by %c120_i32_155 dim 1 : vector<16x128xf32>, i32 -> vector<16x128xf32>
    %924 = vector.extract_strided_slice %662 {offsets = [18, 0], sizes = [1, 128], strides = [1, 1]} : vector<49x128xf32> to vector<1x128xf32>
    %925 = vector.shape_cast %924 : vector<1x128xf32> to vector<128xf32>
    %926 = vector.shape_cast %925 : vector<128xf32> to vector<1x128xf32>
    %927 = vector.broadcast %926 : vector<1x128xf32> to vector<16x128xf32>
    %928 = arith.mulf %923, %927 : vector<16x128xf32>
    %929 = arith.addf %922, %928 : vector<16x128xf32>
    %c112_i32_156 = arith.constant 112 : i32
    %930 = tpu.dynamic_rotate %860 by %c112_i32_156 dim 1 : vector<16x128xf32>, i32 -> vector<16x128xf32>
    %931 = vector.extract_strided_slice %661 {offsets = [19, 0], sizes = [1, 128], strides = [1, 1]} : vector<49x128xf32> to vector<1x128xf32>
    %932 = vector.shape_cast %931 : vector<1x128xf32> to vector<128xf32>
    %933 = vector.shape_cast %932 : vector<128xf32> to vector<1x128xf32>
    %934 = vector.broadcast %933 : vector<1x128xf32> to vector<16x128xf32>
    %935 = arith.mulf %930, %934 : vector<16x128xf32>
    %936 = arith.addf %929, %935 : vector<16x128xf32>
    %c112_i32_157 = arith.constant 112 : i32
    %937 = tpu.dynamic_rotate %861 by %c112_i32_157 dim 1 : vector<16x128xf32>, i32 -> vector<16x128xf32>
    %938 = vector.extract_strided_slice %662 {offsets = [19, 0], sizes = [1, 128], strides = [1, 1]} : vector<49x128xf32> to vector<1x128xf32>
    %939 = vector.shape_cast %938 : vector<1x128xf32> to vector<128xf32>
    %940 = vector.shape_cast %939 : vector<128xf32> to vector<1x128xf32>
    %941 = vector.broadcast %940 : vector<1x128xf32> to vector<16x128xf32>
    %942 = arith.mulf %937, %941 : vector<16x128xf32>
    %943 = arith.addf %936, %942 : vector<16x128xf32>
    %c104_i32_158 = arith.constant 104 : i32
    %944 = tpu.dynamic_rotate %860 by %c104_i32_158 dim 1 : vector<16x128xf32>, i32 -> vector<16x128xf32>
    %945 = vector.extract_strided_slice %661 {offsets = [20, 0], sizes = [1, 128], strides = [1, 1]} : vector<49x128xf32> to vector<1x128xf32>
    %946 = vector.shape_cast %945 : vector<1x128xf32> to vector<128xf32>
    %947 = vector.shape_cast %946 : vector<128xf32> to vector<1x128xf32>
    %948 = vector.broadcast %947 : vector<1x128xf32> to vector<16x128xf32>
    %949 = arith.mulf %944, %948 : vector<16x128xf32>
    %950 = arith.addf %943, %949 : vector<16x128xf32>
    %c104_i32_159 = arith.constant 104 : i32
    %951 = tpu.dynamic_rotate %861 by %c104_i32_159 dim 1 : vector<16x128xf32>, i32 -> vector<16x128xf32>
    %952 = vector.extract_strided_slice %662 {offsets = [20, 0], sizes = [1, 128], strides = [1, 1]} : vector<49x128xf32> to vector<1x128xf32>
    %953 = vector.shape_cast %952 : vector<1x128xf32> to vector<128xf32>
    %954 = vector.shape_cast %953 : vector<128xf32> to vector<1x128xf32>
    %955 = vector.broadcast %954 : vector<1x128xf32> to vector<16x128xf32>
    %956 = arith.mulf %951, %955 : vector<16x128xf32>
    %957 = arith.addf %950, %956 : vector<16x128xf32>
    %958 = vector.extract_strided_slice %658 {offsets = [3, 0], sizes = [16, 128], strides = [1, 1]} : vector<22x128xf32> to vector<16x128xf32>
    %959 = vector.extract_strided_slice %660 {offsets = [3, 0], sizes = [16, 128], strides = [1, 1]} : vector<22x128xf32> to vector<16x128xf32>
    %c24_i32_160 = arith.constant 24 : i32
    %960 = tpu.dynamic_rotate %958 by %c24_i32_160 dim 1 : vector<16x128xf32>, i32 -> vector<16x128xf32>
    %961 = vector.extract_strided_slice %661 {offsets = [21, 0], sizes = [1, 128], strides = [1, 1]} : vector<49x128xf32> to vector<1x128xf32>
    %962 = vector.shape_cast %961 : vector<1x128xf32> to vector<128xf32>
    %963 = vector.shape_cast %962 : vector<128xf32> to vector<1x128xf32>
    %964 = vector.broadcast %963 : vector<1x128xf32> to vector<16x128xf32>
    %965 = arith.mulf %960, %964 : vector<16x128xf32>
    %966 = arith.addf %957, %965 : vector<16x128xf32>
    %c24_i32_161 = arith.constant 24 : i32
    %967 = tpu.dynamic_rotate %959 by %c24_i32_161 dim 1 : vector<16x128xf32>, i32 -> vector<16x128xf32>
    %968 = vector.extract_strided_slice %662 {offsets = [21, 0], sizes = [1, 128], strides = [1, 1]} : vector<49x128xf32> to vector<1x128xf32>
    %969 = vector.shape_cast %968 : vector<1x128xf32> to vector<128xf32>
    %970 = vector.shape_cast %969 : vector<128xf32> to vector<1x128xf32>
    %971 = vector.broadcast %970 : vector<1x128xf32> to vector<16x128xf32>
    %972 = arith.mulf %967, %971 : vector<16x128xf32>
    %973 = arith.addf %966, %972 : vector<16x128xf32>
    %c16_i32_162 = arith.constant 16 : i32
    %974 = tpu.dynamic_rotate %958 by %c16_i32_162 dim 1 : vector<16x128xf32>, i32 -> vector<16x128xf32>
    %975 = vector.extract_strided_slice %661 {offsets = [22, 0], sizes = [1, 128], strides = [1, 1]} : vector<49x128xf32> to vector<1x128xf32>
    %976 = vector.shape_cast %975 : vector<1x128xf32> to vector<128xf32>
    %977 = vector.shape_cast %976 : vector<128xf32> to vector<1x128xf32>
    %978 = vector.broadcast %977 : vector<1x128xf32> to vector<16x128xf32>
    %979 = arith.mulf %974, %978 : vector<16x128xf32>
    %980 = arith.addf %973, %979 : vector<16x128xf32>
    %c16_i32_163 = arith.constant 16 : i32
    %981 = tpu.dynamic_rotate %959 by %c16_i32_163 dim 1 : vector<16x128xf32>, i32 -> vector<16x128xf32>
    %982 = vector.extract_strided_slice %662 {offsets = [22, 0], sizes = [1, 128], strides = [1, 1]} : vector<49x128xf32> to vector<1x128xf32>
    %983 = vector.shape_cast %982 : vector<1x128xf32> to vector<128xf32>
    %984 = vector.shape_cast %983 : vector<128xf32> to vector<1x128xf32>
    %985 = vector.broadcast %984 : vector<1x128xf32> to vector<16x128xf32>
    %986 = arith.mulf %981, %985 : vector<16x128xf32>
    %987 = arith.addf %980, %986 : vector<16x128xf32>
    %c8_i32_164 = arith.constant 8 : i32
    %988 = tpu.dynamic_rotate %958 by %c8_i32_164 dim 1 : vector<16x128xf32>, i32 -> vector<16x128xf32>
    %989 = vector.extract_strided_slice %661 {offsets = [23, 0], sizes = [1, 128], strides = [1, 1]} : vector<49x128xf32> to vector<1x128xf32>
    %990 = vector.shape_cast %989 : vector<1x128xf32> to vector<128xf32>
    %991 = vector.shape_cast %990 : vector<128xf32> to vector<1x128xf32>
    %992 = vector.broadcast %991 : vector<1x128xf32> to vector<16x128xf32>
    %993 = arith.mulf %988, %992 : vector<16x128xf32>
    %994 = arith.addf %987, %993 : vector<16x128xf32>
    %c8_i32_165 = arith.constant 8 : i32
    %995 = tpu.dynamic_rotate %959 by %c8_i32_165 dim 1 : vector<16x128xf32>, i32 -> vector<16x128xf32>
    %996 = vector.extract_strided_slice %662 {offsets = [23, 0], sizes = [1, 128], strides = [1, 1]} : vector<49x128xf32> to vector<1x128xf32>
    %997 = vector.shape_cast %996 : vector<1x128xf32> to vector<128xf32>
    %998 = vector.shape_cast %997 : vector<128xf32> to vector<1x128xf32>
    %999 = vector.broadcast %998 : vector<1x128xf32> to vector<16x128xf32>
    %1000 = arith.mulf %995, %999 : vector<16x128xf32>
    %1001 = arith.addf %994, %1000 : vector<16x128xf32>
    %1002 = vector.extract_strided_slice %661 {offsets = [24, 0], sizes = [1, 128], strides = [1, 1]} : vector<49x128xf32> to vector<1x128xf32>
    %1003 = vector.shape_cast %1002 : vector<1x128xf32> to vector<128xf32>
    %1004 = vector.shape_cast %1003 : vector<128xf32> to vector<1x128xf32>
    %1005 = vector.broadcast %1004 : vector<1x128xf32> to vector<16x128xf32>
    %1006 = arith.mulf %958, %1005 : vector<16x128xf32>
    %1007 = arith.addf %1001, %1006 : vector<16x128xf32>
    %1008 = vector.extract_strided_slice %662 {offsets = [24, 0], sizes = [1, 128], strides = [1, 1]} : vector<49x128xf32> to vector<1x128xf32>
    %1009 = vector.shape_cast %1008 : vector<1x128xf32> to vector<128xf32>
    %1010 = vector.shape_cast %1009 : vector<128xf32> to vector<1x128xf32>
    %1011 = vector.broadcast %1010 : vector<1x128xf32> to vector<16x128xf32>
    %1012 = arith.mulf %959, %1011 : vector<16x128xf32>
    %1013 = arith.addf %1007, %1012 : vector<16x128xf32>
    %c120_i32_166 = arith.constant 120 : i32
    %1014 = tpu.dynamic_rotate %958 by %c120_i32_166 dim 1 : vector<16x128xf32>, i32 -> vector<16x128xf32>
    %1015 = vector.extract_strided_slice %661 {offsets = [25, 0], sizes = [1, 128], strides = [1, 1]} : vector<49x128xf32> to vector<1x128xf32>
    %1016 = vector.shape_cast %1015 : vector<1x128xf32> to vector<128xf32>
    %1017 = vector.shape_cast %1016 : vector<128xf32> to vector<1x128xf32>
    %1018 = vector.broadcast %1017 : vector<1x128xf32> to vector<16x128xf32>
    %1019 = arith.mulf %1014, %1018 : vector<16x128xf32>
    %1020 = arith.addf %1013, %1019 : vector<16x128xf32>
    %c120_i32_167 = arith.constant 120 : i32
    %1021 = tpu.dynamic_rotate %959 by %c120_i32_167 dim 1 : vector<16x128xf32>, i32 -> vector<16x128xf32>
    %1022 = vector.extract_strided_slice %662 {offsets = [25, 0], sizes = [1, 128], strides = [1, 1]} : vector<49x128xf32> to vector<1x128xf32>
    %1023 = vector.shape_cast %1022 : vector<1x128xf32> to vector<128xf32>
    %1024 = vector.shape_cast %1023 : vector<128xf32> to vector<1x128xf32>
    %1025 = vector.broadcast %1024 : vector<1x128xf32> to vector<16x128xf32>
    %1026 = arith.mulf %1021, %1025 : vector<16x128xf32>
    %1027 = arith.addf %1020, %1026 : vector<16x128xf32>
    %c112_i32_168 = arith.constant 112 : i32
    %1028 = tpu.dynamic_rotate %958 by %c112_i32_168 dim 1 : vector<16x128xf32>, i32 -> vector<16x128xf32>
    %1029 = vector.extract_strided_slice %661 {offsets = [26, 0], sizes = [1, 128], strides = [1, 1]} : vector<49x128xf32> to vector<1x128xf32>
    %1030 = vector.shape_cast %1029 : vector<1x128xf32> to vector<128xf32>
    %1031 = vector.shape_cast %1030 : vector<128xf32> to vector<1x128xf32>
    %1032 = vector.broadcast %1031 : vector<1x128xf32> to vector<16x128xf32>
    %1033 = arith.mulf %1028, %1032 : vector<16x128xf32>
    %1034 = arith.addf %1027, %1033 : vector<16x128xf32>
    %c112_i32_169 = arith.constant 112 : i32
    %1035 = tpu.dynamic_rotate %959 by %c112_i32_169 dim 1 : vector<16x128xf32>, i32 -> vector<16x128xf32>
    %1036 = vector.extract_strided_slice %662 {offsets = [26, 0], sizes = [1, 128], strides = [1, 1]} : vector<49x128xf32> to vector<1x128xf32>
    %1037 = vector.shape_cast %1036 : vector<1x128xf32> to vector<128xf32>
    %1038 = vector.shape_cast %1037 : vector<128xf32> to vector<1x128xf32>
    %1039 = vector.broadcast %1038 : vector<1x128xf32> to vector<16x128xf32>
    %1040 = arith.mulf %1035, %1039 : vector<16x128xf32>
    %1041 = arith.addf %1034, %1040 : vector<16x128xf32>
    %c104_i32_170 = arith.constant 104 : i32
    %1042 = tpu.dynamic_rotate %958 by %c104_i32_170 dim 1 : vector<16x128xf32>, i32 -> vector<16x128xf32>
    %1043 = vector.extract_strided_slice %661 {offsets = [27, 0], sizes = [1, 128], strides = [1, 1]} : vector<49x128xf32> to vector<1x128xf32>
    %1044 = vector.shape_cast %1043 : vector<1x128xf32> to vector<128xf32>
    %1045 = vector.shape_cast %1044 : vector<128xf32> to vector<1x128xf32>
    %1046 = vector.broadcast %1045 : vector<1x128xf32> to vector<16x128xf32>
    %1047 = arith.mulf %1042, %1046 : vector<16x128xf32>
    %1048 = arith.addf %1041, %1047 : vector<16x128xf32>
    %c104_i32_171 = arith.constant 104 : i32
    %1049 = tpu.dynamic_rotate %959 by %c104_i32_171 dim 1 : vector<16x128xf32>, i32 -> vector<16x128xf32>
    %1050 = vector.extract_strided_slice %662 {offsets = [27, 0], sizes = [1, 128], strides = [1, 1]} : vector<49x128xf32> to vector<1x128xf32>
    %1051 = vector.shape_cast %1050 : vector<1x128xf32> to vector<128xf32>
    %1052 = vector.shape_cast %1051 : vector<128xf32> to vector<1x128xf32>
    %1053 = vector.broadcast %1052 : vector<1x128xf32> to vector<16x128xf32>
    %1054 = arith.mulf %1049, %1053 : vector<16x128xf32>
    %1055 = arith.addf %1048, %1054 : vector<16x128xf32>
    %1056 = vector.extract_strided_slice %658 {offsets = [4, 0], sizes = [16, 128], strides = [1, 1]} : vector<22x128xf32> to vector<16x128xf32>
    %1057 = vector.extract_strided_slice %660 {offsets = [4, 0], sizes = [16, 128], strides = [1, 1]} : vector<22x128xf32> to vector<16x128xf32>
    %c24_i32_172 = arith.constant 24 : i32
    %1058 = tpu.dynamic_rotate %1056 by %c24_i32_172 dim 1 : vector<16x128xf32>, i32 -> vector<16x128xf32>
    %1059 = vector.extract_strided_slice %661 {offsets = [28, 0], sizes = [1, 128], strides = [1, 1]} : vector<49x128xf32> to vector<1x128xf32>
    %1060 = vector.shape_cast %1059 : vector<1x128xf32> to vector<128xf32>
    %1061 = vector.shape_cast %1060 : vector<128xf32> to vector<1x128xf32>
    %1062 = vector.broadcast %1061 : vector<1x128xf32> to vector<16x128xf32>
    %1063 = arith.mulf %1058, %1062 : vector<16x128xf32>
    %1064 = arith.addf %1055, %1063 : vector<16x128xf32>
    %c24_i32_173 = arith.constant 24 : i32
    %1065 = tpu.dynamic_rotate %1057 by %c24_i32_173 dim 1 : vector<16x128xf32>, i32 -> vector<16x128xf32>
    %1066 = vector.extract_strided_slice %662 {offsets = [28, 0], sizes = [1, 128], strides = [1, 1]} : vector<49x128xf32> to vector<1x128xf32>
    %1067 = vector.shape_cast %1066 : vector<1x128xf32> to vector<128xf32>
    %1068 = vector.shape_cast %1067 : vector<128xf32> to vector<1x128xf32>
    %1069 = vector.broadcast %1068 : vector<1x128xf32> to vector<16x128xf32>
    %1070 = arith.mulf %1065, %1069 : vector<16x128xf32>
    %1071 = arith.addf %1064, %1070 : vector<16x128xf32>
    %c16_i32_174 = arith.constant 16 : i32
    %1072 = tpu.dynamic_rotate %1056 by %c16_i32_174 dim 1 : vector<16x128xf32>, i32 -> vector<16x128xf32>
    %1073 = vector.extract_strided_slice %661 {offsets = [29, 0], sizes = [1, 128], strides = [1, 1]} : vector<49x128xf32> to vector<1x128xf32>
    %1074 = vector.shape_cast %1073 : vector<1x128xf32> to vector<128xf32>
    %1075 = vector.shape_cast %1074 : vector<128xf32> to vector<1x128xf32>
    %1076 = vector.broadcast %1075 : vector<1x128xf32> to vector<16x128xf32>
    %1077 = arith.mulf %1072, %1076 : vector<16x128xf32>
    %1078 = arith.addf %1071, %1077 : vector<16x128xf32>
    %c16_i32_175 = arith.constant 16 : i32
    %1079 = tpu.dynamic_rotate %1057 by %c16_i32_175 dim 1 : vector<16x128xf32>, i32 -> vector<16x128xf32>
    %1080 = vector.extract_strided_slice %662 {offsets = [29, 0], sizes = [1, 128], strides = [1, 1]} : vector<49x128xf32> to vector<1x128xf32>
    %1081 = vector.shape_cast %1080 : vector<1x128xf32> to vector<128xf32>
    %1082 = vector.shape_cast %1081 : vector<128xf32> to vector<1x128xf32>
    %1083 = vector.broadcast %1082 : vector<1x128xf32> to vector<16x128xf32>
    %1084 = arith.mulf %1079, %1083 : vector<16x128xf32>
    %1085 = arith.addf %1078, %1084 : vector<16x128xf32>
    %c8_i32_176 = arith.constant 8 : i32
    %1086 = tpu.dynamic_rotate %1056 by %c8_i32_176 dim 1 : vector<16x128xf32>, i32 -> vector<16x128xf32>
    %1087 = vector.extract_strided_slice %661 {offsets = [30, 0], sizes = [1, 128], strides = [1, 1]} : vector<49x128xf32> to vector<1x128xf32>
    %1088 = vector.shape_cast %1087 : vector<1x128xf32> to vector<128xf32>
    %1089 = vector.shape_cast %1088 : vector<128xf32> to vector<1x128xf32>
    %1090 = vector.broadcast %1089 : vector<1x128xf32> to vector<16x128xf32>
    %1091 = arith.mulf %1086, %1090 : vector<16x128xf32>
    %1092 = arith.addf %1085, %1091 : vector<16x128xf32>
    %c8_i32_177 = arith.constant 8 : i32
    %1093 = tpu.dynamic_rotate %1057 by %c8_i32_177 dim 1 : vector<16x128xf32>, i32 -> vector<16x128xf32>
    %1094 = vector.extract_strided_slice %662 {offsets = [30, 0], sizes = [1, 128], strides = [1, 1]} : vector<49x128xf32> to vector<1x128xf32>
    %1095 = vector.shape_cast %1094 : vector<1x128xf32> to vector<128xf32>
    %1096 = vector.shape_cast %1095 : vector<128xf32> to vector<1x128xf32>
    %1097 = vector.broadcast %1096 : vector<1x128xf32> to vector<16x128xf32>
    %1098 = arith.mulf %1093, %1097 : vector<16x128xf32>
    %1099 = arith.addf %1092, %1098 : vector<16x128xf32>
    %1100 = vector.extract_strided_slice %661 {offsets = [31, 0], sizes = [1, 128], strides = [1, 1]} : vector<49x128xf32> to vector<1x128xf32>
    %1101 = vector.shape_cast %1100 : vector<1x128xf32> to vector<128xf32>
    %1102 = vector.shape_cast %1101 : vector<128xf32> to vector<1x128xf32>
    %1103 = vector.broadcast %1102 : vector<1x128xf32> to vector<16x128xf32>
    %1104 = arith.mulf %1056, %1103 : vector<16x128xf32>
    %1105 = arith.addf %1099, %1104 : vector<16x128xf32>
    %1106 = vector.extract_strided_slice %662 {offsets = [31, 0], sizes = [1, 128], strides = [1, 1]} : vector<49x128xf32> to vector<1x128xf32>
    %1107 = vector.shape_cast %1106 : vector<1x128xf32> to vector<128xf32>
    %1108 = vector.shape_cast %1107 : vector<128xf32> to vector<1x128xf32>
    %1109 = vector.broadcast %1108 : vector<1x128xf32> to vector<16x128xf32>
    %1110 = arith.mulf %1057, %1109 : vector<16x128xf32>
    %1111 = arith.addf %1105, %1110 : vector<16x128xf32>
    %c120_i32_178 = arith.constant 120 : i32
    %1112 = tpu.dynamic_rotate %1056 by %c120_i32_178 dim 1 : vector<16x128xf32>, i32 -> vector<16x128xf32>
    %1113 = vector.extract_strided_slice %661 {offsets = [32, 0], sizes = [1, 128], strides = [1, 1]} : vector<49x128xf32> to vector<1x128xf32>
    %1114 = vector.shape_cast %1113 : vector<1x128xf32> to vector<128xf32>
    %1115 = vector.shape_cast %1114 : vector<128xf32> to vector<1x128xf32>
    %1116 = vector.broadcast %1115 : vector<1x128xf32> to vector<16x128xf32>
    %1117 = arith.mulf %1112, %1116 : vector<16x128xf32>
    %1118 = arith.addf %1111, %1117 : vector<16x128xf32>
    %c120_i32_179 = arith.constant 120 : i32
    %1119 = tpu.dynamic_rotate %1057 by %c120_i32_179 dim 1 : vector<16x128xf32>, i32 -> vector<16x128xf32>
    %1120 = vector.extract_strided_slice %662 {offsets = [32, 0], sizes = [1, 128], strides = [1, 1]} : vector<49x128xf32> to vector<1x128xf32>
    %1121 = vector.shape_cast %1120 : vector<1x128xf32> to vector<128xf32>
    %1122 = vector.shape_cast %1121 : vector<128xf32> to vector<1x128xf32>
    %1123 = vector.broadcast %1122 : vector<1x128xf32> to vector<16x128xf32>
    %1124 = arith.mulf %1119, %1123 : vector<16x128xf32>
    %1125 = arith.addf %1118, %1124 : vector<16x128xf32>
    %c112_i32_180 = arith.constant 112 : i32
    %1126 = tpu.dynamic_rotate %1056 by %c112_i32_180 dim 1 : vector<16x128xf32>, i32 -> vector<16x128xf32>
    %1127 = vector.extract_strided_slice %661 {offsets = [33, 0], sizes = [1, 128], strides = [1, 1]} : vector<49x128xf32> to vector<1x128xf32>
    %1128 = vector.shape_cast %1127 : vector<1x128xf32> to vector<128xf32>
    %1129 = vector.shape_cast %1128 : vector<128xf32> to vector<1x128xf32>
    %1130 = vector.broadcast %1129 : vector<1x128xf32> to vector<16x128xf32>
    %1131 = arith.mulf %1126, %1130 : vector<16x128xf32>
    %1132 = arith.addf %1125, %1131 : vector<16x128xf32>
    %c112_i32_181 = arith.constant 112 : i32
    %1133 = tpu.dynamic_rotate %1057 by %c112_i32_181 dim 1 : vector<16x128xf32>, i32 -> vector<16x128xf32>
    %1134 = vector.extract_strided_slice %662 {offsets = [33, 0], sizes = [1, 128], strides = [1, 1]} : vector<49x128xf32> to vector<1x128xf32>
    %1135 = vector.shape_cast %1134 : vector<1x128xf32> to vector<128xf32>
    %1136 = vector.shape_cast %1135 : vector<128xf32> to vector<1x128xf32>
    %1137 = vector.broadcast %1136 : vector<1x128xf32> to vector<16x128xf32>
    %1138 = arith.mulf %1133, %1137 : vector<16x128xf32>
    %1139 = arith.addf %1132, %1138 : vector<16x128xf32>
    %c104_i32_182 = arith.constant 104 : i32
    %1140 = tpu.dynamic_rotate %1056 by %c104_i32_182 dim 1 : vector<16x128xf32>, i32 -> vector<16x128xf32>
    %1141 = vector.extract_strided_slice %661 {offsets = [34, 0], sizes = [1, 128], strides = [1, 1]} : vector<49x128xf32> to vector<1x128xf32>
    %1142 = vector.shape_cast %1141 : vector<1x128xf32> to vector<128xf32>
    %1143 = vector.shape_cast %1142 : vector<128xf32> to vector<1x128xf32>
    %1144 = vector.broadcast %1143 : vector<1x128xf32> to vector<16x128xf32>
    %1145 = arith.mulf %1140, %1144 : vector<16x128xf32>
    %1146 = arith.addf %1139, %1145 : vector<16x128xf32>
    %c104_i32_183 = arith.constant 104 : i32
    %1147 = tpu.dynamic_rotate %1057 by %c104_i32_183 dim 1 : vector<16x128xf32>, i32 -> vector<16x128xf32>
    %1148 = vector.extract_strided_slice %662 {offsets = [34, 0], sizes = [1, 128], strides = [1, 1]} : vector<49x128xf32> to vector<1x128xf32>
    %1149 = vector.shape_cast %1148 : vector<1x128xf32> to vector<128xf32>
    %1150 = vector.shape_cast %1149 : vector<128xf32> to vector<1x128xf32>
    %1151 = vector.broadcast %1150 : vector<1x128xf32> to vector<16x128xf32>
    %1152 = arith.mulf %1147, %1151 : vector<16x128xf32>
    %1153 = arith.addf %1146, %1152 : vector<16x128xf32>
    %1154 = vector.extract_strided_slice %658 {offsets = [5, 0], sizes = [16, 128], strides = [1, 1]} : vector<22x128xf32> to vector<16x128xf32>
    %1155 = vector.extract_strided_slice %660 {offsets = [5, 0], sizes = [16, 128], strides = [1, 1]} : vector<22x128xf32> to vector<16x128xf32>
    %c24_i32_184 = arith.constant 24 : i32
    %1156 = tpu.dynamic_rotate %1154 by %c24_i32_184 dim 1 : vector<16x128xf32>, i32 -> vector<16x128xf32>
    %1157 = vector.extract_strided_slice %661 {offsets = [35, 0], sizes = [1, 128], strides = [1, 1]} : vector<49x128xf32> to vector<1x128xf32>
    %1158 = vector.shape_cast %1157 : vector<1x128xf32> to vector<128xf32>
    %1159 = vector.shape_cast %1158 : vector<128xf32> to vector<1x128xf32>
    %1160 = vector.broadcast %1159 : vector<1x128xf32> to vector<16x128xf32>
    %1161 = arith.mulf %1156, %1160 : vector<16x128xf32>
    %1162 = arith.addf %1153, %1161 : vector<16x128xf32>
    %c24_i32_185 = arith.constant 24 : i32
    %1163 = tpu.dynamic_rotate %1155 by %c24_i32_185 dim 1 : vector<16x128xf32>, i32 -> vector<16x128xf32>
    %1164 = vector.extract_strided_slice %662 {offsets = [35, 0], sizes = [1, 128], strides = [1, 1]} : vector<49x128xf32> to vector<1x128xf32>
    %1165 = vector.shape_cast %1164 : vector<1x128xf32> to vector<128xf32>
    %1166 = vector.shape_cast %1165 : vector<128xf32> to vector<1x128xf32>
    %1167 = vector.broadcast %1166 : vector<1x128xf32> to vector<16x128xf32>
    %1168 = arith.mulf %1163, %1167 : vector<16x128xf32>
    %1169 = arith.addf %1162, %1168 : vector<16x128xf32>
    %c16_i32_186 = arith.constant 16 : i32
    %1170 = tpu.dynamic_rotate %1154 by %c16_i32_186 dim 1 : vector<16x128xf32>, i32 -> vector<16x128xf32>
    %1171 = vector.extract_strided_slice %661 {offsets = [36, 0], sizes = [1, 128], strides = [1, 1]} : vector<49x128xf32> to vector<1x128xf32>
    %1172 = vector.shape_cast %1171 : vector<1x128xf32> to vector<128xf32>
    %1173 = vector.shape_cast %1172 : vector<128xf32> to vector<1x128xf32>
    %1174 = vector.broadcast %1173 : vector<1x128xf32> to vector<16x128xf32>
    %1175 = arith.mulf %1170, %1174 : vector<16x128xf32>
    %1176 = arith.addf %1169, %1175 : vector<16x128xf32>
    %c16_i32_187 = arith.constant 16 : i32
    %1177 = tpu.dynamic_rotate %1155 by %c16_i32_187 dim 1 : vector<16x128xf32>, i32 -> vector<16x128xf32>
    %1178 = vector.extract_strided_slice %662 {offsets = [36, 0], sizes = [1, 128], strides = [1, 1]} : vector<49x128xf32> to vector<1x128xf32>
    %1179 = vector.shape_cast %1178 : vector<1x128xf32> to vector<128xf32>
    %1180 = vector.shape_cast %1179 : vector<128xf32> to vector<1x128xf32>
    %1181 = vector.broadcast %1180 : vector<1x128xf32> to vector<16x128xf32>
    %1182 = arith.mulf %1177, %1181 : vector<16x128xf32>
    %1183 = arith.addf %1176, %1182 : vector<16x128xf32>
    %c8_i32_188 = arith.constant 8 : i32
    %1184 = tpu.dynamic_rotate %1154 by %c8_i32_188 dim 1 : vector<16x128xf32>, i32 -> vector<16x128xf32>
    %1185 = vector.extract_strided_slice %661 {offsets = [37, 0], sizes = [1, 128], strides = [1, 1]} : vector<49x128xf32> to vector<1x128xf32>
    %1186 = vector.shape_cast %1185 : vector<1x128xf32> to vector<128xf32>
    %1187 = vector.shape_cast %1186 : vector<128xf32> to vector<1x128xf32>
    %1188 = vector.broadcast %1187 : vector<1x128xf32> to vector<16x128xf32>
    %1189 = arith.mulf %1184, %1188 : vector<16x128xf32>
    %1190 = arith.addf %1183, %1189 : vector<16x128xf32>
    %c8_i32_189 = arith.constant 8 : i32
    %1191 = tpu.dynamic_rotate %1155 by %c8_i32_189 dim 1 : vector<16x128xf32>, i32 -> vector<16x128xf32>
    %1192 = vector.extract_strided_slice %662 {offsets = [37, 0], sizes = [1, 128], strides = [1, 1]} : vector<49x128xf32> to vector<1x128xf32>
    %1193 = vector.shape_cast %1192 : vector<1x128xf32> to vector<128xf32>
    %1194 = vector.shape_cast %1193 : vector<128xf32> to vector<1x128xf32>
    %1195 = vector.broadcast %1194 : vector<1x128xf32> to vector<16x128xf32>
    %1196 = arith.mulf %1191, %1195 : vector<16x128xf32>
    %1197 = arith.addf %1190, %1196 : vector<16x128xf32>
    %1198 = vector.extract_strided_slice %661 {offsets = [38, 0], sizes = [1, 128], strides = [1, 1]} : vector<49x128xf32> to vector<1x128xf32>
    %1199 = vector.shape_cast %1198 : vector<1x128xf32> to vector<128xf32>
    %1200 = vector.shape_cast %1199 : vector<128xf32> to vector<1x128xf32>
    %1201 = vector.broadcast %1200 : vector<1x128xf32> to vector<16x128xf32>
    %1202 = arith.mulf %1154, %1201 : vector<16x128xf32>
    %1203 = arith.addf %1197, %1202 : vector<16x128xf32>
    %1204 = vector.extract_strided_slice %662 {offsets = [38, 0], sizes = [1, 128], strides = [1, 1]} : vector<49x128xf32> to vector<1x128xf32>
    %1205 = vector.shape_cast %1204 : vector<1x128xf32> to vector<128xf32>
    %1206 = vector.shape_cast %1205 : vector<128xf32> to vector<1x128xf32>
    %1207 = vector.broadcast %1206 : vector<1x128xf32> to vector<16x128xf32>
    %1208 = arith.mulf %1155, %1207 : vector<16x128xf32>
    %1209 = arith.addf %1203, %1208 : vector<16x128xf32>
    %c120_i32_190 = arith.constant 120 : i32
    %1210 = tpu.dynamic_rotate %1154 by %c120_i32_190 dim 1 : vector<16x128xf32>, i32 -> vector<16x128xf32>
    %1211 = vector.extract_strided_slice %661 {offsets = [39, 0], sizes = [1, 128], strides = [1, 1]} : vector<49x128xf32> to vector<1x128xf32>
    %1212 = vector.shape_cast %1211 : vector<1x128xf32> to vector<128xf32>
    %1213 = vector.shape_cast %1212 : vector<128xf32> to vector<1x128xf32>
    %1214 = vector.broadcast %1213 : vector<1x128xf32> to vector<16x128xf32>
    %1215 = arith.mulf %1210, %1214 : vector<16x128xf32>
    %1216 = arith.addf %1209, %1215 : vector<16x128xf32>
    %c120_i32_191 = arith.constant 120 : i32
    %1217 = tpu.dynamic_rotate %1155 by %c120_i32_191 dim 1 : vector<16x128xf32>, i32 -> vector<16x128xf32>
    %1218 = vector.extract_strided_slice %662 {offsets = [39, 0], sizes = [1, 128], strides = [1, 1]} : vector<49x128xf32> to vector<1x128xf32>
    %1219 = vector.shape_cast %1218 : vector<1x128xf32> to vector<128xf32>
    %1220 = vector.shape_cast %1219 : vector<128xf32> to vector<1x128xf32>
    %1221 = vector.broadcast %1220 : vector<1x128xf32> to vector<16x128xf32>
    %1222 = arith.mulf %1217, %1221 : vector<16x128xf32>
    %1223 = arith.addf %1216, %1222 : vector<16x128xf32>
    %c112_i32_192 = arith.constant 112 : i32
    %1224 = tpu.dynamic_rotate %1154 by %c112_i32_192 dim 1 : vector<16x128xf32>, i32 -> vector<16x128xf32>
    %1225 = vector.extract_strided_slice %661 {offsets = [40, 0], sizes = [1, 128], strides = [1, 1]} : vector<49x128xf32> to vector<1x128xf32>
    %1226 = vector.shape_cast %1225 : vector<1x128xf32> to vector<128xf32>
    %1227 = vector.shape_cast %1226 : vector<128xf32> to vector<1x128xf32>
    %1228 = vector.broadcast %1227 : vector<1x128xf32> to vector<16x128xf32>
    %1229 = arith.mulf %1224, %1228 : vector<16x128xf32>
    %1230 = arith.addf %1223, %1229 : vector<16x128xf32>
    %c112_i32_193 = arith.constant 112 : i32
    %1231 = tpu.dynamic_rotate %1155 by %c112_i32_193 dim 1 : vector<16x128xf32>, i32 -> vector<16x128xf32>
    %1232 = vector.extract_strided_slice %662 {offsets = [40, 0], sizes = [1, 128], strides = [1, 1]} : vector<49x128xf32> to vector<1x128xf32>
    %1233 = vector.shape_cast %1232 : vector<1x128xf32> to vector<128xf32>
    %1234 = vector.shape_cast %1233 : vector<128xf32> to vector<1x128xf32>
    %1235 = vector.broadcast %1234 : vector<1x128xf32> to vector<16x128xf32>
    %1236 = arith.mulf %1231, %1235 : vector<16x128xf32>
    %1237 = arith.addf %1230, %1236 : vector<16x128xf32>
    %c104_i32_194 = arith.constant 104 : i32
    %1238 = tpu.dynamic_rotate %1154 by %c104_i32_194 dim 1 : vector<16x128xf32>, i32 -> vector<16x128xf32>
    %1239 = vector.extract_strided_slice %661 {offsets = [41, 0], sizes = [1, 128], strides = [1, 1]} : vector<49x128xf32> to vector<1x128xf32>
    %1240 = vector.shape_cast %1239 : vector<1x128xf32> to vector<128xf32>
    %1241 = vector.shape_cast %1240 : vector<128xf32> to vector<1x128xf32>
    %1242 = vector.broadcast %1241 : vector<1x128xf32> to vector<16x128xf32>
    %1243 = arith.mulf %1238, %1242 : vector<16x128xf32>
    %1244 = arith.addf %1237, %1243 : vector<16x128xf32>
    %c104_i32_195 = arith.constant 104 : i32
    %1245 = tpu.dynamic_rotate %1155 by %c104_i32_195 dim 1 : vector<16x128xf32>, i32 -> vector<16x128xf32>
    %1246 = vector.extract_strided_slice %662 {offsets = [41, 0], sizes = [1, 128], strides = [1, 1]} : vector<49x128xf32> to vector<1x128xf32>
    %1247 = vector.shape_cast %1246 : vector<1x128xf32> to vector<128xf32>
    %1248 = vector.shape_cast %1247 : vector<128xf32> to vector<1x128xf32>
    %1249 = vector.broadcast %1248 : vector<1x128xf32> to vector<16x128xf32>
    %1250 = arith.mulf %1245, %1249 : vector<16x128xf32>
    %1251 = arith.addf %1244, %1250 : vector<16x128xf32>
    %1252 = vector.extract_strided_slice %658 {offsets = [6, 0], sizes = [16, 128], strides = [1, 1]} : vector<22x128xf32> to vector<16x128xf32>
    %1253 = vector.extract_strided_slice %660 {offsets = [6, 0], sizes = [16, 128], strides = [1, 1]} : vector<22x128xf32> to vector<16x128xf32>
    %c24_i32_196 = arith.constant 24 : i32
    %1254 = tpu.dynamic_rotate %1252 by %c24_i32_196 dim 1 : vector<16x128xf32>, i32 -> vector<16x128xf32>
    %1255 = vector.extract_strided_slice %661 {offsets = [42, 0], sizes = [1, 128], strides = [1, 1]} : vector<49x128xf32> to vector<1x128xf32>
    %1256 = vector.shape_cast %1255 : vector<1x128xf32> to vector<128xf32>
    %1257 = vector.shape_cast %1256 : vector<128xf32> to vector<1x128xf32>
    %1258 = vector.broadcast %1257 : vector<1x128xf32> to vector<16x128xf32>
    %1259 = arith.mulf %1254, %1258 : vector<16x128xf32>
    %1260 = arith.addf %1251, %1259 : vector<16x128xf32>
    %c24_i32_197 = arith.constant 24 : i32
    %1261 = tpu.dynamic_rotate %1253 by %c24_i32_197 dim 1 : vector<16x128xf32>, i32 -> vector<16x128xf32>
    %1262 = vector.extract_strided_slice %662 {offsets = [42, 0], sizes = [1, 128], strides = [1, 1]} : vector<49x128xf32> to vector<1x128xf32>
    %1263 = vector.shape_cast %1262 : vector<1x128xf32> to vector<128xf32>
    %1264 = vector.shape_cast %1263 : vector<128xf32> to vector<1x128xf32>
    %1265 = vector.broadcast %1264 : vector<1x128xf32> to vector<16x128xf32>
    %1266 = arith.mulf %1261, %1265 : vector<16x128xf32>
    %1267 = arith.addf %1260, %1266 : vector<16x128xf32>
    %c16_i32_198 = arith.constant 16 : i32
    %1268 = tpu.dynamic_rotate %1252 by %c16_i32_198 dim 1 : vector<16x128xf32>, i32 -> vector<16x128xf32>
    %1269 = vector.extract_strided_slice %661 {offsets = [43, 0], sizes = [1, 128], strides = [1, 1]} : vector<49x128xf32> to vector<1x128xf32>
    %1270 = vector.shape_cast %1269 : vector<1x128xf32> to vector<128xf32>
    %1271 = vector.shape_cast %1270 : vector<128xf32> to vector<1x128xf32>
    %1272 = vector.broadcast %1271 : vector<1x128xf32> to vector<16x128xf32>
    %1273 = arith.mulf %1268, %1272 : vector<16x128xf32>
    %1274 = arith.addf %1267, %1273 : vector<16x128xf32>
    %c16_i32_199 = arith.constant 16 : i32
    %1275 = tpu.dynamic_rotate %1253 by %c16_i32_199 dim 1 : vector<16x128xf32>, i32 -> vector<16x128xf32>
    %1276 = vector.extract_strided_slice %662 {offsets = [43, 0], sizes = [1, 128], strides = [1, 1]} : vector<49x128xf32> to vector<1x128xf32>
    %1277 = vector.shape_cast %1276 : vector<1x128xf32> to vector<128xf32>
    %1278 = vector.shape_cast %1277 : vector<128xf32> to vector<1x128xf32>
    %1279 = vector.broadcast %1278 : vector<1x128xf32> to vector<16x128xf32>
    %1280 = arith.mulf %1275, %1279 : vector<16x128xf32>
    %1281 = arith.addf %1274, %1280 : vector<16x128xf32>
    %c8_i32_200 = arith.constant 8 : i32
    %1282 = tpu.dynamic_rotate %1252 by %c8_i32_200 dim 1 : vector<16x128xf32>, i32 -> vector<16x128xf32>
    %1283 = vector.extract_strided_slice %661 {offsets = [44, 0], sizes = [1, 128], strides = [1, 1]} : vector<49x128xf32> to vector<1x128xf32>
    %1284 = vector.shape_cast %1283 : vector<1x128xf32> to vector<128xf32>
    %1285 = vector.shape_cast %1284 : vector<128xf32> to vector<1x128xf32>
    %1286 = vector.broadcast %1285 : vector<1x128xf32> to vector<16x128xf32>
    %1287 = arith.mulf %1282, %1286 : vector<16x128xf32>
    %1288 = arith.addf %1281, %1287 : vector<16x128xf32>
    %c8_i32_201 = arith.constant 8 : i32
    %1289 = tpu.dynamic_rotate %1253 by %c8_i32_201 dim 1 : vector<16x128xf32>, i32 -> vector<16x128xf32>
    %1290 = vector.extract_strided_slice %662 {offsets = [44, 0], sizes = [1, 128], strides = [1, 1]} : vector<49x128xf32> to vector<1x128xf32>
    %1291 = vector.shape_cast %1290 : vector<1x128xf32> to vector<128xf32>
    %1292 = vector.shape_cast %1291 : vector<128xf32> to vector<1x128xf32>
    %1293 = vector.broadcast %1292 : vector<1x128xf32> to vector<16x128xf32>
    %1294 = arith.mulf %1289, %1293 : vector<16x128xf32>
    %1295 = arith.addf %1288, %1294 : vector<16x128xf32>
    %1296 = vector.extract_strided_slice %661 {offsets = [45, 0], sizes = [1, 128], strides = [1, 1]} : vector<49x128xf32> to vector<1x128xf32>
    %1297 = vector.shape_cast %1296 : vector<1x128xf32> to vector<128xf32>
    %1298 = vector.shape_cast %1297 : vector<128xf32> to vector<1x128xf32>
    %1299 = vector.broadcast %1298 : vector<1x128xf32> to vector<16x128xf32>
    %1300 = arith.mulf %1252, %1299 : vector<16x128xf32>
    %1301 = arith.addf %1295, %1300 : vector<16x128xf32>
    %1302 = vector.extract_strided_slice %662 {offsets = [45, 0], sizes = [1, 128], strides = [1, 1]} : vector<49x128xf32> to vector<1x128xf32>
    %1303 = vector.shape_cast %1302 : vector<1x128xf32> to vector<128xf32>
    %1304 = vector.shape_cast %1303 : vector<128xf32> to vector<1x128xf32>
    %1305 = vector.broadcast %1304 : vector<1x128xf32> to vector<16x128xf32>
    %1306 = arith.mulf %1253, %1305 : vector<16x128xf32>
    %1307 = arith.addf %1301, %1306 : vector<16x128xf32>
    %c120_i32_202 = arith.constant 120 : i32
    %1308 = tpu.dynamic_rotate %1252 by %c120_i32_202 dim 1 : vector<16x128xf32>, i32 -> vector<16x128xf32>
    %1309 = vector.extract_strided_slice %661 {offsets = [46, 0], sizes = [1, 128], strides = [1, 1]} : vector<49x128xf32> to vector<1x128xf32>
    %1310 = vector.shape_cast %1309 : vector<1x128xf32> to vector<128xf32>
    %1311 = vector.shape_cast %1310 : vector<128xf32> to vector<1x128xf32>
    %1312 = vector.broadcast %1311 : vector<1x128xf32> to vector<16x128xf32>
    %1313 = arith.mulf %1308, %1312 : vector<16x128xf32>
    %1314 = arith.addf %1307, %1313 : vector<16x128xf32>
    %c120_i32_203 = arith.constant 120 : i32
    %1315 = tpu.dynamic_rotate %1253 by %c120_i32_203 dim 1 : vector<16x128xf32>, i32 -> vector<16x128xf32>
    %1316 = vector.extract_strided_slice %662 {offsets = [46, 0], sizes = [1, 128], strides = [1, 1]} : vector<49x128xf32> to vector<1x128xf32>
    %1317 = vector.shape_cast %1316 : vector<1x128xf32> to vector<128xf32>
    %1318 = vector.shape_cast %1317 : vector<128xf32> to vector<1x128xf32>
    %1319 = vector.broadcast %1318 : vector<1x128xf32> to vector<16x128xf32>
    %1320 = arith.mulf %1315, %1319 : vector<16x128xf32>
    %1321 = arith.addf %1314, %1320 : vector<16x128xf32>
    %c112_i32_204 = arith.constant 112 : i32
    %1322 = tpu.dynamic_rotate %1252 by %c112_i32_204 dim 1 : vector<16x128xf32>, i32 -> vector<16x128xf32>
    %1323 = vector.extract_strided_slice %661 {offsets = [47, 0], sizes = [1, 128], strides = [1, 1]} : vector<49x128xf32> to vector<1x128xf32>
    %1324 = vector.shape_cast %1323 : vector<1x128xf32> to vector<128xf32>
    %1325 = vector.shape_cast %1324 : vector<128xf32> to vector<1x128xf32>
    %1326 = vector.broadcast %1325 : vector<1x128xf32> to vector<16x128xf32>
    %1327 = arith.mulf %1322, %1326 : vector<16x128xf32>
    %1328 = arith.addf %1321, %1327 : vector<16x128xf32>
    %c112_i32_205 = arith.constant 112 : i32
    %1329 = tpu.dynamic_rotate %1253 by %c112_i32_205 dim 1 : vector<16x128xf32>, i32 -> vector<16x128xf32>
    %1330 = vector.extract_strided_slice %662 {offsets = [47, 0], sizes = [1, 128], strides = [1, 1]} : vector<49x128xf32> to vector<1x128xf32>
    %1331 = vector.shape_cast %1330 : vector<1x128xf32> to vector<128xf32>
    %1332 = vector.shape_cast %1331 : vector<128xf32> to vector<1x128xf32>
    %1333 = vector.broadcast %1332 : vector<1x128xf32> to vector<16x128xf32>
    %1334 = arith.mulf %1329, %1333 : vector<16x128xf32>
    %1335 = arith.addf %1328, %1334 : vector<16x128xf32>
    %c104_i32_206 = arith.constant 104 : i32
    %1336 = tpu.dynamic_rotate %1252 by %c104_i32_206 dim 1 : vector<16x128xf32>, i32 -> vector<16x128xf32>
    %1337 = vector.extract_strided_slice %661 {offsets = [48, 0], sizes = [1, 128], strides = [1, 1]} : vector<49x128xf32> to vector<1x128xf32>
    %1338 = vector.shape_cast %1337 : vector<1x128xf32> to vector<128xf32>
    %1339 = vector.shape_cast %1338 : vector<128xf32> to vector<1x128xf32>
    %1340 = vector.broadcast %1339 : vector<1x128xf32> to vector<16x128xf32>
    %1341 = arith.mulf %1336, %1340 : vector<16x128xf32>
    %1342 = arith.addf %1335, %1341 : vector<16x128xf32>
    %c104_i32_207 = arith.constant 104 : i32
    %1343 = tpu.dynamic_rotate %1253 by %c104_i32_207 dim 1 : vector<16x128xf32>, i32 -> vector<16x128xf32>
    %1344 = vector.extract_strided_slice %662 {offsets = [48, 0], sizes = [1, 128], strides = [1, 1]} : vector<49x128xf32> to vector<1x128xf32>
    %1345 = vector.shape_cast %1344 : vector<1x128xf32> to vector<128xf32>
    %1346 = vector.shape_cast %1345 : vector<128xf32> to vector<1x128xf32>
    %1347 = vector.broadcast %1346 : vector<1x128xf32> to vector<16x128xf32>
    %1348 = arith.mulf %1343, %1347 : vector<16x128xf32>
    %1349 = arith.addf %1342, %1348 : vector<16x128xf32>
    %c0_208 = arith.constant 0 : index
    %c0_209 = arith.constant 0 : index
    %1350 = vector.load %arg13[%c0_208, %c0_209] : memref<1x128xf32, #tpu.memory_space<vmem>>, vector<1x128xf32>
    %1351 = vector.broadcast %1350 : vector<1x128xf32> to vector<16x128xf32>
    %1352 = arith.addf %1349, %1351 : vector<16x128xf32>
    %cst_210 = arith.constant 0.000000e+00 : f32
    %1353 = vector.broadcast %cst_210 : f32 to vector<16x128xf32>
    %1354 = arith.subf %1353, %1352 : vector<16x128xf32>
    %1355 = math.exp %1354 : vector<16x128xf32>
    %cst_211 = arith.constant 1.000000e+00 : f32
    %1356 = vector.broadcast %cst_211 : f32 to vector<16x128xf32>
    %1357 = arith.addf %1356, %1355 : vector<16x128xf32>
    %cst_212 = arith.constant 1.000000e+00 : f32
    %1358 = vector.broadcast %cst_212 : f32 to vector<16x128xf32>
    %1359 = arith.divf %1358, %1357 : vector<16x128xf32>
    %1360 = arith.mulf %585, %1359 : vector<16x128xf32>
    %c0_213 = arith.constant 0 : index
    %c0_214 = arith.constant 0 : index
    %1361 = vector.load %arg14[%c0_213, %c0_214] : memref<128x128xf32, #tpu.memory_space<vmem>>, vector<128x128xf32>
    %cst_215 = arith.constant dense<0.000000e+00> : vector<16x128xf32>
    %1362 = tpu.matmul %1360, %1361, %cst_215 {dimension_numbers = #tpu.dot_dimension_numbers<[1], [0], [0], [1], [0, 0, 1, 1], [], []>} : vector<16x128xf32>, vector<128x128xf32>, vector<16x128xf32> -> vector<16x128xf32>
    %c0_216 = arith.constant 0 : index
    %c0_217 = arith.constant 0 : index
    %1363 = vector.load %arg15[%c0_216, %c0_217] : memref<1x128xf32, #tpu.memory_space<vmem>>, vector<1x128xf32>
    %1364 = vector.broadcast %1363 : vector<1x128xf32> to vector<16x128xf32>
    %1365 = arith.addf %1362, %1364 : vector<16x128xf32>
    %1366 = arith.mulf %1365, %45 : vector<16x128xf32>
    %c0_218 = arith.constant 0 : index
    %c0_219 = arith.constant 0 : index
    %1367 = vector.load %arg16[%c0_218, %c0_219] : memref<128x128xf32, #tpu.memory_space<vmem>>, vector<128x128xf32>
    %cst_220 = arith.constant dense<0.000000e+00> : vector<16x128xf32>
    %1368 = tpu.matmul %1366, %1367, %cst_220 {dimension_numbers = #tpu.dot_dimension_numbers<[1], [0], [0], [1], [0, 0, 1, 1], [], []>} : vector<16x128xf32>, vector<128x128xf32>, vector<16x128xf32> -> vector<16x128xf32>
    %c0_221 = arith.constant 0 : index
    %c0_222 = arith.constant 0 : index
    %1369 = vector.load %arg17[%c0_221, %c0_222] : memref<1x128xf32, #tpu.memory_space<vmem>>, vector<1x128xf32>
    %1370 = vector.broadcast %1369 : vector<1x128xf32> to vector<16x128xf32>
    %1371 = arith.addf %1368, %1370 : vector<16x128xf32>
    %1372 = arith.addf %1371, %0 : vector<16x128xf32>
    %c0_223 = arith.constant 0 : index
    %c0_224 = arith.constant 0 : index
    %1373 = vector.load %arg18[%c0_223, %c0_224] : memref<16x128xf32, #tpu.memory_space<vmem>>, vector<16x128xf32>
    tpu.vector_store %arg18[%c0_223, %c0_224], %1372 {strides = array<i32>} : memref<16x128xf32, #tpu.memory_space<vmem>>, vector<16x128xf32>,
    return
  }
  func.func @transform_0(%arg0: i32) -> (i32, i32) {
    %c0_i32 = arith.constant 0 : i32
    %c0_i32_0 = arith.constant 0 : i32
    return %arg0, %c0_i32 : i32, i32
  }
  func.func @transform_1(%arg0: i32) -> (i32, i32) {
    %c0_i32 = arith.constant 0 : i32
    %c0_i32_0 = arith.constant 0 : i32
    %c0_i32_1 = arith.constant 0 : i32
    return %c0_i32, %c0_i32_0 : i32, i32
  }
  func.func @transform_2(%arg0: i32) -> (i32, i32) {
    %c0_i32 = arith.constant 0 : i32
    %c0_i32_0 = arith.constant 0 : i32
    %c0_i32_1 = arith.constant 0 : i32
    return %c0_i32, %c0_i32_0 : i32, i32
  }
  func.func @transform_3(%arg0: i32) -> (i32, i32) {
    %c0_i32 = arith.constant 0 : i32
    %c0_i32_0 = arith.constant 0 : i32
    %c0_i32_1 = arith.constant 0 : i32
    return %c0_i32, %c0_i32_0 : i32, i32
  }
  func.func @transform_4(%arg0: i32) -> (i32, i32) {
    %c0_i32 = arith.constant 0 : i32
    %c0_i32_0 = arith.constant 0 : i32
    %c0_i32_1 = arith.constant 0 : i32
    return %c0_i32, %c0_i32_0 : i32, i32
  }
  func.func @transform_5(%arg0: i32) -> (i32, i32) {
    %c0_i32 = arith.constant 0 : i32
    %c0_i32_0 = arith.constant 0 : i32
    %c0_i32_1 = arith.constant 0 : i32
    return %c0_i32, %c0_i32_0 : i32, i32
  }
  func.func @transform_6(%arg0: i32) -> (i32, i32) {
    %c0_i32 = arith.constant 0 : i32
    %c0_i32_0 = arith.constant 0 : i32
    %c0_i32_1 = arith.constant 0 : i32
    return %c0_i32, %c0_i32_0 : i32, i32
  }
  func.func @transform_7(%arg0: i32) -> (i32, i32) {
    %c0_i32 = arith.constant 0 : i32
    %c0_i32_0 = arith.constant 0 : i32
    %c0_i32_1 = arith.constant 0 : i32
    return %c0_i32, %c0_i32_0 : i32, i32
  }
  func.func @transform_8(%arg0: i32) -> (i32, i32) {
    %c0_i32 = arith.constant 0 : i32
    %c0_i32_0 = arith.constant 0 : i32
    %c0_i32_1 = arith.constant 0 : i32
    return %c0_i32, %c0_i32_0 : i32, i32
  }
  func.func @transform_9(%arg0: i32) -> (i32, i32) {
    %c0_i32 = arith.constant 0 : i32
    %c0_i32_0 = arith.constant 0 : i32
    %c0_i32_1 = arith.constant 0 : i32
    return %c0_i32, %c0_i32_0 : i32, i32
  }
  func.func @transform_10(%arg0: i32) -> (i32, i32) {
    %c0_i32 = arith.constant 0 : i32
    %c0_i32_0 = arith.constant 0 : i32
    %c0_i32_1 = arith.constant 0 : i32
    return %c0_i32, %c0_i32_0 : i32, i32
  }
  func.func @transform_11(%arg0: i32) -> (i32, i32) {
    %c0_i32 = arith.constant 0 : i32
    %c0_i32_0 = arith.constant 0 : i32
    %c0_i32_1 = arith.constant 0 : i32
    return %c0_i32, %c0_i32_0 : i32, i32
  }
  func.func @transform_12(%arg0: i32) -> (i32, i32) {
    %c0_i32 = arith.constant 0 : i32
    %c0_i32_0 = arith.constant 0 : i32
    %c0_i32_1 = arith.constant 0 : i32
    return %c0_i32, %c0_i32_0 : i32, i32
  }
  func.func @transform_13(%arg0: i32) -> (i32, i32) {
    %c0_i32 = arith.constant 0 : i32
    %c0_i32_0 = arith.constant 0 : i32
    %c0_i32_1 = arith.constant 0 : i32
    return %c0_i32, %c0_i32_0 : i32, i32
  }
  func.func @transform_14(%arg0: i32) -> (i32, i32) {
    %c0_i32 = arith.constant 0 : i32
    %c0_i32_0 = arith.constant 0 : i32
    %c0_i32_1 = arith.constant 0 : i32
    return %c0_i32, %c0_i32_0 : i32, i32
  }
  func.func @transform_15(%arg0: i32) -> (i32, i32) {
    %c0_i32 = arith.constant 0 : i32
    %c0_i32_0 = arith.constant 0 : i32
    %c0_i32_1 = arith.constant 0 : i32
    return %c0_i32, %c0_i32_0 : i32, i32
  }
  func.func @transform_16(%arg0: i32) -> (i32, i32) {
    %c0_i32 = arith.constant 0 : i32
    %c0_i32_0 = arith.constant 0 : i32
    %c0_i32_1 = arith.constant 0 : i32
    return %c0_i32, %c0_i32_0 : i32, i32
  }
  func.func @transform_17(%arg0: i32) -> (i32, i32) {
    %c0_i32 = arith.constant 0 : i32
    %c0_i32_0 = arith.constant 0 : i32
    return %arg0, %c0_i32 : i32, i32
  }
}

</mosaic_0001>

<bundles_post_ra>
// kernel: tile.37
= control target key start
LH: loop header
LB: loop body
LE: loop exit
PB: predicated region body
PF: predicated region fallthrough
CT: control target
= control target key end

     0   :  { %s28_s0 = inlined_call_operand.vmem [shape: f32[8], index: 0, kind: input, shape index: {}]   ;;  %s29_s1 = inlined_call_operand.vmem [shape: f32[16,8], index: 1, kind: output, shape index: {}]  }
   0x1   :  { %v4_v0 = vld [vmem:[%s28_s0] ss:$0 sm:$0xff] }
   0x2   :  { %5 = vst [vmem:[%s29_s1] sm:$0xff] %v4_v0  ;;  %8 = vst [vmem:[%s29_s1 + $0x8] sm:$0xff] %v4_v0 }

// kernel: tile.38
= control target key start
LH: loop header
LB: loop body
LE: loop exit
PB: predicated region body
PF: predicated region fallthrough
CT: control target
= control target key end

     0   :  { %s131_s10 = smov 120   ;;  %s132_s11 = smov 104   ;;  %vm3_vm0 = vcmask 64512   ;;  %vm9_vm1 = vcmask 1048512   ;;  %vm15_vm2 = vcmask 982912   ;;  %vm21_vm3 = vcmask 917312   ;;  %s207_s0 = inlined_call_operand.vmem [shape: f32[16,8], index: 0, kind: input, shape index: {}]   ;;  %s208_s1 = inlined_call_operand.vmem [shape: f32[1,128], index: 1, kind: output, shape index: {}]  }
   0x1   :  { %v101_v0 = vld [vmem:[%s207_s0 + $0xf] sm:$0x1]   ;;  %v103_v1 = vld [vmem:[%s207_s0 + $0xd] sm:$0x1]   ;;  %v102_v2 = vld [vmem:[%s207_s0 + $0xe] sm:$0x1]  }
   0x2   :  { %7 = vrot.lane.b32.xlu0 %v101_v0, %s131_s10  ;;  %19 = vrot.lane.b32.xlu1 %v103_v1, %s132_s11  ;;  %v104_v3 = vld [vmem:[%s207_s0 + $0xc] sm:$0x1]   ;;  %s133_s16 = smov 112   ;;  %s134_s17 = smov 96   ;;  %v105_v4 = vld [vmem:[%s207_s0 + $0xb] sm:$0x1]  }
   0x3   :  { %v106_v5 = vld [vmem:[%s207_s0 + $0xa] sm:$0x1]   ;;  %v2_v6 = vld [vmem:[%s207_s0] sm:$0x1]   ;;  %s135_s24 = smov 88   ;;  %s136_s25 = smov 80  }
   0x4   :  { %4 = vst.msk [vmem:[#allocation0] sm:$0x1] %vm3_vm0, %v2_v6   ;;  %v107_v7 = vld [vmem:[%s207_s0 + $0x9] sm:$0x1]   ;;  %v108_v8 = vld [vmem:[%s207_s0 + $0x8] sm:$0x1]  }
   0x5   :  { %s137_s30 = smov 72   ;;  %s138_s2 = smov 64   ;;  %v109_v9 = vld [vmem:[%s207_s0 + $0x7] sm:$0x1]   ;;  %v110_v10 = vld [vmem:[%s207_s0 + $0x6] sm:$0x1]  }
   0x6   :  { %13 = vrot.lane.b32.xlu0 %v102_v2, %s133_s16  ;;  %25 = vrot.lane.b32.xlu1 %v104_v3, %s134_s17  ;;  %s139_s7 = smov 56   ;;  %s140_s8 = smov 48   ;;  %v111_v11 = vld [vmem:[%s207_s0 + $0x5] sm:$0x1]   ;;  %v112_v12 = vld [vmem:[%s207_s0 + $0x4] sm:$0x1]  }
   0x7   :  { %s141_s13 = smov 40   ;;  %s142_s14 = smov 32   ;;  %v113_v13 = vld [vmem:[%s207_s0 + $0x3] sm:$0x1]   ;;  %v114_v14 = vld [vmem:[%s207_s0 + $0x2] sm:$0x1]  }
   0x8   :  { %s143_s19 = smov 24   ;;  %s144_s20 = smov 16   ;;  %v115_v15 = vld [vmem:[%s207_s0 + $0x1] sm:$0x1]   ;;  %vm27_vm4 = vcmask 851712   ;;  %vm33_vm5 = vcmask 786112  }
   0x9   :  { %s145_s0 = smov 8   ;;  %vm39_vm6 = vcmask 720512   ;;  %vm45_vm7 = vcmask 654912   ;;  %vm51_vm8 = vcmask 589312   ;;  %vm57_vm9 = vcmask 523712  }
   0xa   :  { %31 = vrot.lane.b32.xlu0 %v105_v4, %s135_s24  ;;  %37 = vrot.lane.b32.xlu1 %v106_v5, %s136_s25  ;;  %vm63_vm10 = vcmask 458112   ;;  %vm69_vm11 = vcmask 392512   ;;  %vm75_vm12 = vcmask 326912   ;;  %vm81_vm13 = vcmask 261312  }
   0xb   :  { %vm87_vm14 = vcmask 195712   ;;  %vm93_vm15 = vcmask 130112  }
   0xe   :  { %43 = vrot.lane.b32.xlu0 %v107_v7, %s137_s30  ;;  %49 = vrot.lane.b32.xlu1 %v108_v8, %s138_s2 }
  0x12   :  { %55 = vrot.lane.b32.xlu0 %v109_v9, %s139_s7  ;;  %61 = vrot.lane.b32.xlu1 %v110_v10, %s140_s8 }
  0x16   :  { %67 = vrot.lane.b32.xlu0 %v111_v11, %s141_s13  ;;  %73 = vrot.lane.b32.xlu1 %v112_v12, %s142_s14 }
  0x1a   :  { %79 = vrot.lane.b32.xlu0 %v113_v13, %s143_s19  ;;  %85 = vrot.lane.b32.xlu1 %v114_v14, %s144_s20 }
  0x1e   :  { %91 = vrot.lane.b32.xlu0 %v115_v15, %s145_s0 }
  0x74   :  { %v8_v16 = vpop.permute.xlu0 %7   ;;  %v20_v17 = vpop.permute.xlu1 %19  }
  0x75   :  { %10 = vst.msk [vmem:[#allocation0] sm:$0x1] %vm9_vm1, %v8_v16  }
  0x78   :  { %v14_v18 = vpop.permute.xlu0 %13   ;;  %v26_v19 = vpop.permute.xlu1 %25  }
  0x79   :  { %16 = vst.msk [vmem:[#allocation0] sm:$0x1] %vm15_vm2, %v14_v18  }
  0x7a   :  { %22 = vst.msk [vmem:[#allocation0] sm:$0x1] %vm21_vm3, %v20_v17  }
  0x7b   :  { %28 = vst.msk [vmem:[#allocation0] sm:$0x1] %vm27_vm4, %v26_v19  }
  0x7c   :  { %v32_v20 = vpop.permute.xlu0 %31   ;;  %v38_v21 = vpop.permute.xlu1 %37  }
  0x7d   :  { %34 = vst.msk [vmem:[#allocation0] sm:$0x1] %vm33_vm5, %v32_v20  }
  0x7e   :  { %40 = vst.msk [vmem:[#allocation0] sm:$0x1] %vm39_vm6, %v38_v21  }
  0x80   :  { %v44_v22 = vpop.permute.xlu0 %43   ;;  %v50_v23 = vpop.permute.xlu1 %49  }
  0x81   :  { %46 = vst.msk [vmem:[#allocation0] sm:$0x1] %vm45_vm7, %v44_v22  }
  0x82   :  { %52 = vst.msk [vmem:[#allocation0] sm:$0x1] %vm51_vm8, %v50_v23  }
  0x84   :  { %v56_v24 = vpop.permute.xlu0 %55   ;;  %v62_v25 = vpop.permute.xlu1 %61  }
  0x85   :  { %58 = vst.msk [vmem:[#allocation0] sm:$0x1] %vm57_vm9, %v56_v24  }
  0x86   :  { %64 = vst.msk [vmem:[#allocation0] sm:$0x1] %vm63_vm10, %v62_v25  }
  0x88   :  { %v68_v26 = vpop.permute.xlu0 %67   ;;  %v74_v27 = vpop.permute.xlu1 %73  }
  0x89   :  { %70 = vst.msk [vmem:[#allocation0] sm:$0x1] %vm69_vm11, %v68_v26  }
  0x8a   :  { %76 = vst.msk [vmem:[#allocation0] sm:$0x1] %vm75_vm12, %v74_v27  }
  0x8c   :  { %v80_v28 = vpop.permute.xlu0 %79   ;;  %v86_v29 = vpop.permute.xlu1 %85  }
  0x8d   :  { %82 = vst.msk [vmem:[#allocation0] sm:$0x1] %vm81_vm13, %v80_v28  }
  0x8e   :  { %88 = vst.msk [vmem:[#allocation0] sm:$0x1] %vm87_vm14, %v86_v29  }
  0x90   :  { %v92_v30 = vpop.permute.xlu0 %91  }
  0x91   :  { %94 = vst.msk [vmem:[#allocation0] sm:$0x1] %vm93_vm15, %v92_v30  }
  0x98   :  { %v98_v31 = vld [vmem:[#allocation0] sm:$0x1] }
  0x99   :  { %100 = vst [vmem:[%s208_s1] sm:$0x1] %v98_v31 }

// kernel: tile.55
= control target key start
LH: loop header
LB: loop body
LE: loop exit
PB: predicated region body
PF: predicated region fallthrough
CT: control target
= control target key end

     0   :  { %vm7_vm0 = vcmask 31744   ;;  %vm13_vm1 = vcmask 64544   ;;  %s39_s0 = inlined_call_operand.vmem [shape: f32[2,4], index: 0, kind: input, shape index: {}]   ;;  %s40_s1 = inlined_call_operand.vmem [shape: f32[8], index: 1, kind: output, shape index: {}]  }
   0x1   :  { %v4_v0 = vld [vmem:[%s39_s0] sm:$0x3]  ;;  %s22_s0 = smov 4  }
   0x2   :  { %5 = vst [vmem:[#allocation1] sm:$0x3] %v4_v0 }
   0x9   :  { %v10_v1 = vld [vmem:[#allocation1 + $0x1] sm:$0x1]   ;;  %v6_v2 = vld [vmem:[#allocation1] sm:$0x1]  }
   0xa   :  { %11 = vrot.lane.b32.xlu0 %v10_v1, %s22_s0  ;;  %8 = vst.msk [vmem:[#allocation0] sm:$0x1] %vm7_vm0, %v6_v2  }
  0x7c   :  { %v12_v3 = vpop.permute.xlu0 %11  }
  0x7d   :  { %14 = vst.msk [vmem:[#allocation0] sm:$0x1] %vm13_vm1, %v12_v3  }
  0x84   :  { %v18_v4 = vld [vmem:[#allocation0] sm:$0x1] }
  0x85   :  { %20 = vst [vmem:[%s40_s1] sm:$0x1] %v18_v4 }

// kernel: attention_forward.1
= control target key start
LH: loop header
LB: loop body
LE: loop exit
PB: predicated region body
PF: predicated region fallthrough
CT: control target
= control target key end

     0   :  { %s4337_s24 = smov 0   ;;  %s6236_s0 = inlined_call_operand.vmem [shape: f32[32,128], index: 0, kind: input, shape index: {}]   ;;  %s6237_s1 = inlined_call_operand.vmem [shape: f32[128,128], index: 1, kind: input, shape index: {}]   ;;  %s6238_s2 = inlined_call_operand.vmem [shape: f32[1,128], index: 2, kind: input, shape index: {}]   ;;  %s6239_s3 = inlined_call_operand.vmem [shape: f32[25,128], index: 3, kind: input, shape index: {}]   ;;  %s6240_s4 = inlined_call_operand.vmem [shape: f32[1,128], index: 4, kind: input, shape index: {}]   ;;  %s6241_s5 = inlined_call_operand.vmem [shape: f32[49,128], index: 5, kind: input, shape index: {}]   ;;  %s6242_s6 = inlined_call_operand.vmem [shape: f32[1,128], index: 6, kind: input, shape index: {}]   ;;  %s6243_s7 = inlined_call_operand.vmem [shape: f32[128,128], index: 7, kind: input, shape index: {}]   ;;  %s6244_s8 = inlined_call_operand.vmem [shape: f32[128,128], index: 8, kind: input, shape index: {}]   ;;  %s6245_s9 = inlined_call_operand.vmem [shape: f32[1,128], index: 9, kind: input, shape index: {}]   ;;  %s6246_s10 = inlined_call_operand.vmem [shape: f32[49,128], index: 10, kind: input, shape index: {}]   ;;  %s6247_s11 = inlined_call_operand.vmem [shape: f32[49,128], index: 11, kind: input, shape index: {}]   ;;  %s6248_s12 = inlined_call_operand.vmem [shape: f32[1,128], index: 12, kind: input, shape index: {}]   ;;  %s6249_s13 = inlined_call_operand.vmem [shape: f32[128,128], index: 13, kind: input, shape index: {}]   ;;  %s6250_s14 = inlined_call_operand.vmem [shape: f32[1,128], index: 14, kind: input, shape index: {}]   ;;  %s6251_s15 = inlined_call_operand.vmem [shape: f32[128,128], index: 15, kind: input, shape index: {}]   ;;  %s6252_s16 = inlined_call_operand.vmem [shape: f32[1,128], index: 16, kind: input, shape index: {}]   ;;  %s6253_s17 = inlined_call_operand.vmem [shape: f32[32,128], index: 17, kind: output, shape index: {}]  }
   0x1   :  { %6283 = sst [smem:[#allocation26_spill]] %s6236_s0 }
   0x2   :  { %6284 = sst [smem:[#allocation27_spill]] %s6237_s1 }
   0x3 LB: > { %s3722_s25 = sadd.s32 4294967295, %s4228_s24   ;;  %p3726_p0 = scmp.ge.s32.totalorder %s4228_s24, 1  ;;  %s4228_s24 = sphi %s4337_s24, %s27_s24  }
   0x4   : > { %p488_p1 = scmp.lt.s32.totalorder %s4228_s24, 3 }
   0x6   : > { %p489_p2 = pnand %p3726_p0, %p488_p1 }
   0x8   : > { %492 = sbr.rel (%p489_p2) target bundleno = 2337 (0x921), region = 88 }
   0xf   : > { %s6285_s28 = sld [smem:[#allocation27_spill]]  ;;  %s3727_s19 = sshll.u32 %s3722_s25, 1  ;;  %v4230_v26 = vmov 0.0   ;;  %v3731_v27 = vld [vmem:[%s6238_s2] ss:$0 sm:$0xff]  ;;  %vm708_vm2 = vcmask 1041408  }
  0x10   : > { %p541_p3 = scmp.lt.s32.totalorder %s3727_s19, 3  ;;  %s6286_s20 = sld [smem:[#allocation26_spill]]  ;;  %vm779_vm3 = vcmask 1046528   ;;  %vm854_vm4 = vcmask 1045504   ;;  %vm929_vm5 = vcmask 1044480   ;;  %vm1004_vm6 = vcmask 1043456  }
  0x11   : > { %s4231_s30 = smov 72   ;;  %s6273_s18 = smov 24   ;;  %vm1090_vm7 = vcmask 1040384   ;;  %vm2068_vm12 = vcmask 1042432  }
  0x12   : > { %s6356_s19 = smov (!%p541_p3, %s3727_s19), 3  ;;  %1106 = vrot.lane.b32.xlu0 %v4230_v26, %s4231_s30  ;;  %s4233_s1 = smov 48  }
  0x13   : > { %s6255_s25 = sshll.u32 %s6356_s19, 3  ;;  %1118 = vrot.lane.b32.xlu1 %v4230_v26, %s4233_s1  ;;  %s6260_s22 = smov 120  }
  0x14   : > { %s6264_s23 = smov 16   ;;  %s4239_s26 = smov 80  }
  0x15   : > { %v554_v0 = vld [vmem:[%s6285_s28] sm:$0xff]  ;;  %v555_v1 = vld [vmem:[%s6285_s28 + $0x8] sm:$0xff]  ;;  %v556_v2 = vld [vmem:[%s6285_s28 + $0x10] sm:$0xff]  ;;  %s4240_s27 = smov 56   ;;  %s4241_s29 = smov 4  }
  0x16   : > { %v4009_v3 = vpack.c.bf16 %v555_v1, %v554_v0  ;;  %v557_v4 = vld [vmem:[%s6285_s28 + $0x18] sm:$0xff]  ;;  %v558_v6 = vld [vmem:[%s6285_s28 + $0x20] sm:$0xff]  ;;  %v559_v7 = vld [vmem:[%s6285_s28 + $0x28] sm:$0xff]  ;;  %s4377_s21 = scalar_lea.vmem %s6286_s20, %s6255_s25  ;;  %1130 = vrot.lane.b32.xlu0 %v4230_v26, %s6273_s18  ;;  %s6256_s20 = smov 104  }
  0x17   : > { %v4013_v5 = vpack.c.bf16 %v557_v4, %v556_v2  ;;  %v4017_v8 = vpack.c.bf16 %v559_v7, %v558_v6  ;;  %v560_v9 = vld [vmem:[%s6285_s28 + $0x30] sm:$0xff]  ;;  %v561_v10 = vld [vmem:[%s6285_s28 + $0x38] sm:$0xff]  ;;  %v552_v11 = vld [vmem:[%s4377_s21] sm:$0xff]  ;;  %s6258_s25 = smov 112   ;;  %s4242_s0 = smov 124  }
  0x18   : > { %4010 = vmatprep.subr.bf16.mxu0 %v4009_v3  ;;  %3866 = vmatprep.mubr.f32.mxu0 %v552_v11  ;;  %v4021_v12 = vpack.c.bf16 %v561_v10, %v560_v9  ;;  %v562_v13 = vld [vmem:[%s6285_s28 + $0x40] sm:$0xff]  ;;  %v563_v14 = vld [vmem:[%s6285_s28 + $0x48] sm:$0xff]  ;;  %v564_v16 = vld [vmem:[%s6285_s28 + $0x50] sm:$0xff]  ;;  %v6266_v10 = vlaneseq }
  0x19   : > { %4012 = vmatpush3.bf16.msra.mxu0 %v4009_v3  ;;  %v4025_v15 = vpack.c.bf16 %v563_v14, %v562_v13  ;;  %v565_v17 = vld [vmem:[%s6285_s28 + $0x58] sm:$0xff]  ;;  %v566_v19 = vld [vmem:[%s6285_s28 + $0x60] sm:$0xff]  ;;  %v567_v20 = vld [vmem:[%s6285_s28 + $0x68] sm:$0xff] }
  0x1a   : > { %4014 = vmatprep.subr.bf16.mxu0 %v4013_v5  ;;  %v4029_v18 = vpack.c.bf16 %v565_v17, %v564_v16  ;;  %v4033_v21 = vpack.c.bf16 %v567_v20, %v566_v19  ;;  %v568_v22 = vld [vmem:[%s6285_s28 + $0x70] sm:$0xff]  ;;  %v569_v23 = vld [vmem:[%s6285_s28 + $0x78] sm:$0xff]  ;;  %v553_v25 = vld [vmem:[%s4377_s21 + $0x8] sm:$0xff]  ;;  %1150 = vrot.lane.b32.xlu0 %v4230_v26, %s6256_s20  ;;  %s6262_s20 = smov 8  }
  0x1b   : > { %v4037_v24 = vpack.c.bf16 %v569_v23, %v568_v22 }
  0x1d   : > { %4016 = vmatpush3.bf16.msra.mxu0 %v4013_v5 }
  0x1e   : > { %4018 = vmatprep.subr.bf16.mxu0 %v4017_v8 }
  0x21   : > { %4020 = vmatpush3.bf16.msra.mxu0 %v4017_v8 }
  0x22   : > { %4022 = vmatprep.subr.bf16.mxu0 %v4021_v12 }
  0x25   : > { %4024 = vmatpush3.bf16.msra.mxu0 %v4021_v12 }
  0x26   : > { %4026 = vmatprep.subr.bf16.mxu0 %v4025_v15 }
  0x29   : > { %4028 = vmatpush3.bf16.msra.mxu0 %v4025_v15 }
  0x2a   : > { %4030 = vmatprep.subr.bf16.mxu0 %v4029_v18 }
  0x2d   : > { %4032 = vmatpush3.bf16.msra.mxu0 %v4029_v18  ;;  %v4419_v18 = vshrl.u32 %v6266_v10, 7 }
  0x2e   : > { %4034 = vmatprep.subr.bf16.mxu0 %v4033_v21 }
  0x2f   : > { %v4426_v22 = vsub.s32 4, %v4419_v18  ;;  %v4429_v23 = vsub.s32 7, %v4419_v18 }
  0x31   : > { %4036 = vmatpush3.bf16.msra.mxu0 %v4033_v21 }
  0x32   : > { %4038 = vmatprep.subr.bf16.mxu0 %v4037_v24 }
  0x35   : > { %4040 = vmatpush3.bf16.msra.mxu0 %v4037_v24 }
  0x38   : > { %3867 = vmatmul.mubr.f32.vlgmr.msra.gmra.mrb[0].mxu0 %v553_v25  ;;  %v4435_v25 = vsub.s32 1, %v4419_v18 }
 0x10b   : > { %v3868_v28 = vpop.f32.mrb[0].mxu0 }
 0x10c   : > { %v649_v29 = vadd.f32 %v3868_v28, %v3731_v27  ;;  %v643_v30 = vpop.f32.mrb[1].mxu0  ;;  %v4445_v28 = vld [vmem:[%s6239_s3 + $0x8] sm:$0xff] }
 0x10d   : > { %v644_v31 = vadd.f32 %v3731_v27, %v643_v30  ;;  %v4440_v27 = vld [vmem:[%s6239_s3] sm:$0xff]  ;;  %v4457_v30 = vsub.s32 6, %v4419_v18 }
 0x10e   : > { %v655_v32 = vmul.f32 0.70710677, %v649_v29  ;;  %v653_v12 = vmul.f32 0.5, %v649_v29  ;;  %v4454_v29 = vld [vmem:[%s6239_s3 + $0x10] sm:$0xff] }
 0x10f   : > { %v654_v33 = vmul.f32 0.70710677, %v644_v31  ;;  %v652_v15 = vmul.f32 0.5, %v644_v31 }
 0x110   : > { %v657_v34 = vand.u32 2147483647, %v655_v32  ;;  %vm697_vm0 = vcmp.ge.f32.partialorder %v655_v32, 0.0  ;;  %v814_v32 = vrot.slane %v4440_v27, %v4429_v23 }
 0x111   : > { %v656_v35 = vand.u32 2147483647, %v654_v33  ;;  %vm696_vm1 = vcmp.ge.f32.partialorder %v654_v33, 0.0  ;;  %v889_v33 = vrot.slane %v4445_v28, %v4426_v22 }
 0x112   : > { %v659_v36 = vmul.f32 0.3275911, %v657_v34  ;;  %v685_v40 = vsub.f32 0.0, %v657_v34 }
 0x113   : > { %v658_v37 = vmul.f32 0.3275911, %v656_v35  ;;  %v684_v41 = vsub.f32 0.0, %v656_v35 }
 0x114   : > { %v661_v38 = vadd.f32 1.0, %v659_v36  ;;  %v687_v43 = vmul.f32 %v685_v40, %v657_v34  ;;  %v964_v34 = vrot.slane %v4454_v29, %v4435_v25 }
 0x115   : > { %v660_v39 = vadd.f32 1.0, %v658_v37  ;;  %v686_v46 = vmul.f32 %v684_v41, %v656_v35 }
 0x116   : > { %4196 = vrcp.f32 %v661_v38  ;;  %v690_v49 = vmul.f32 1.442695, %v687_v43  ;;  %v1039_v38 = vrot.slane %v4454_v29, %v4457_v30 }
 0x117   : > { %4198 = vrcp.f32 %v660_v39  ;;  %v688_v52 = vmul.f32 1.442695, %v686_v46 }
 0x118   : > { %4200 = vpow2.f32 %v690_v49 }
 0x119   : > { %4202 = vpow2.f32 %v688_v52 }
 0x120   : > { %v4197_v42 = vpop.eup %4196 }
 0x121   : > { %v4199_v44 = vpop.eup %4198  ;;  %v667_v45 = vmul.f32 1.0614054, %v4197_v42 }
 0x122   : > { %v666_v47 = vmul.f32 1.0614054, %v4199_v44  ;;  %v4201_v1 = vpop.eup %4200 }
 0x123   : > { %v669_v48 = vadd.f32 -1.4531521, %v667_v45  ;;  %v4203_v3 = vpop.eup %4202 }
 0x124   : > { %v668_v50 = vadd.f32 -1.4531521, %v666_v47 }
 0x125   : > { %v671_v51 = vmul.f32 %v4197_v42, %v669_v48 }
 0x126   : > { %v670_v53 = vmul.f32 %v4199_v44, %v668_v50 }
 0x127   : > { %v673_v54 = vadd.f32 1.4214138, %v671_v51 }
 0x128   : > { %v672_v55 = vadd.f32 1.4214138, %v670_v53 }
 0x129   : > { %v675_v56 = vmul.f32 %v4197_v42, %v673_v54 }
 0x12a   : > { %v674_v57 = vmul.f32 %v4199_v44, %v672_v55 }
 0x12b   : > { %v677_v58 = vadd.f32 -0.28449672, %v675_v56 }
 0x12c   : > { %v676_v59 = vadd.f32 -0.28449672, %v674_v57 }
 0x12d   : > { %v679_v60 = vmul.f32 %v4197_v42, %v677_v58 }
 0x12e   : > { %v678_v61 = vmul.f32 %v4199_v44, %v676_v59 }
 0x12f   : > { %v681_v62 = vadd.f32 0.2548296, %v679_v60 }
 0x130   : > { %v680_v63 = vadd.f32 0.2548296, %v678_v61 }
 0x131   : > { %v683_v0 = vmul.f32 %v4197_v42, %v681_v62 }
 0x132   : > { %v682_v2 = vmul.f32 %v4199_v44, %v680_v63 }
 0x133   : > { %v693_v4 = vmul.f32 %v4201_v1, %v683_v0 }
 0x134   : > { %v692_v5 = vmul.f32 %v4203_v3, %v682_v2 }
 0x135   : > { %v695_v6 = vsub.f32 1.0, %v693_v4 }
 0x136   : > { %v694_v7 = vsub.f32 1.0, %v692_v5 }
 0x137   : > { %v699_v8 = vsub.f32 0.0, %v695_v6 }
 0x138   : > { %v698_v9 = vsub.f32 0.0, %v694_v7 }
 0x139   : > { %v701_v11 = vsel %vm697_vm0, %v695_v6, %v699_v8 }
 0x13a   : > { %v703_v13 = vadd.f32 1.0, %v701_v11  ;;  %v700_v14 = vsel %vm696_vm1, %v694_v7, %v698_v9 }
 0x13b   : > { %v702_v16 = vadd.f32 1.0, %v700_v14 }
 0x13c   : > { %v4416_v17 = vmul.f32 %v703_v13, %v653_v12 }
 0x13d   : > { %v4421_v19 = vmul.f32 %v702_v16, %v652_v15 }
 0x13e   : > { %6287 = vst [vmem:[#allocation2_spill] sm:$0xff] %v4416_v17  ;;  %v710_v21 = vrot.slane %v4416_v17, 6 }
 0x13f   : > { %6288 = vst [vmem:[#allocation3_spill] sm:$0xff] %v4421_v19  ;;  %v709_v20 = vrot.slane %v4421_v19, 6 }
 0x140   : > { %v4469_v35 = vsel %vm708_vm2, %v710_v21, 0.0 }
 0x141   : > { %v4432_v24 = vsel %vm708_vm2, 0.0, %v709_v20  ;;  %v4460_v31 = vsel %vm708_vm2, %v709_v20, %v710_v21  ;;  %v817_v43 = vmul.f32 %v814_v32, %v4469_v35  ;;  %v892_v56 = vmul.f32 %v889_v33, %v4469_v35 }
 0x142   : > { %753 = vrot.lane.b32.xlu1 %v4432_v24, %s6260_s22  ;;  %721 = vrot.lane.b32.xlu0 %v4432_v24, %s6264_s23  ;;  %v780_v36 = vrot.slane %v4432_v24, 1  ;;  %v781_v37 = vrot.slane %v4460_v31, 1  ;;  %v815_v39 = vmul.f32 %v814_v32, %v4432_v24  ;;  %v816_v40 = vmul.f32 %v814_v32, %v4460_v31 }
 0x143   : > { %v890_v41 = vmul.f32 %v889_v33, %v4432_v24  ;;  %v891_v42 = vmul.f32 %v889_v33, %v4460_v31  ;;  %v965_v44 = vmul.f32 %v964_v34, %v4432_v24  ;;  %v966_v45 = vmul.f32 %v964_v34, %v4460_v31 }
 0x144   : > { %v821_v46 = vrot.slane %v815_v39, 1  ;;  %v822_v47 = vrot.slane %v816_v40, 1  ;;  %v782_v50 = vsel %vm779_vm3, %v780_v36, %v781_v37  ;;  %v824_v51 = vrot.slane %v817_v43, 1 }
 0x145   : > { %v896_v48 = vrot.slane %v890_v41, 2  ;;  %v897_v49 = vrot.slane %v891_v42, 2  ;;  %v971_v52 = vrot.slane %v965_v44, 3  ;;  %v972_v53 = vrot.slane %v966_v45, 3  ;;  %v4583_v42 = vpop.permute.xlu1 %1118 }
 0x146   : > { %765 = vrot.lane.b32.xlu1 %v4432_v24, %s6258_s25  ;;  %733 = vrot.lane.b32.xlu0 %v4432_v24, %s6262_s20  ;;  %v4492_v54 = vsel %vm779_vm3, %v821_v46, %v822_v47  ;;  %v1040_v57 = vmul.f32 %v1039_v38, %v4432_v24  ;;  %v4500_v58 = vsel %vm779_vm3, %v822_v47, %v824_v51  ;;  %v899_v62 = vrot.slane %v892_v56, 2 }
 0x147   : > { %v4495_v55 = vsel %vm854_vm4, %v896_v48, %v897_v49  ;;  %v4503_v59 = vsel %vm929_vm5, %v971_v52, %v972_v53  ;;  %v1041_v60 = vmul.f32 %v1039_v38, %v4460_v31  ;;  %v967_v61 = vmul.f32 %v964_v34, %v4469_v35 }
 0x148   : > { %v1046_v63 = vrot.slane %v1040_v57, 4  ;;  %v1042_v0 = vmul.f32 %v1039_v38, %v4469_v35  ;;  %v4512_v3 = vsel %vm854_vm4, %v897_v49, %v899_v62  ;;  %v855_v8 = vrot.slane %v4432_v24, 2 }
 0x149   : > { %v1047_v1 = vrot.slane %v1041_v60, 4  ;;  %v974_v2 = vrot.slane %v967_v61, 3  ;;  %v856_v9 = vrot.slane %v4460_v31, 2  ;;  %v783_v11 = vrot.slane %v4469_v35, 1 }
 0x14a   : > { %735 = vrot.lane.b32.xlu0 %v4460_v31, %s6262_s20  ;;  %723 = vrot.lane.b32.xlu1 %v4460_v31, %s6264_s23  ;;  %v1049_v4 = vrot.slane %v1042_v0, 4  ;;  %v930_v14 = vrot.slane %v4432_v24, 3  ;;  %v931_v15 = vrot.slane %v4460_v31, 3  ;;  %v858_v16 = vrot.slane %v4469_v35, 2 }
 0x14b   : > { %v4515_v5 = vsel %vm1004_vm6, %v1046_v63, %v1047_v1  ;;  %v4518_v6 = vsel %vm929_vm5, %v972_v53, %v974_v2  ;;  %v857_v12 = vsel %vm854_vm4, %v855_v8, %v856_v9  ;;  %v784_v13 = vsel %vm779_vm3, %v781_v37, %v783_v11 }
 0x14c   : > { %v4524_v7 = vsel %vm1004_vm6, %v1047_v1, %v1049_v4  ;;  %v932_v20 = vsel %vm929_vm5, %v930_v14, %v931_v15  ;;  %v859_v21 = vsel %vm854_vm4, %v856_v9, %v858_v16  ;;  %v1005_v32 = vrot.slane %v4432_v24, 4 }
 0x14d   : > { %v1006_v33 = vrot.slane %v4460_v31, 4  ;;  %v933_v34 = vrot.slane %v4469_v35, 3  ;;  %v1008_v38 = vrot.slane %v4469_v35, 4  ;;  %v4577_v35 = vpop.permute.xlu0 %1106  ;;  %v4586_v45 = vsub.s32 0, %v4419_v18 }
 0x14e   : > { %755 = vrot.lane.b32.xlu0 %v4460_v31, %s6260_s22  ;;  %799 = vrot.lane.b32.xlu1 %v782_v50, %s6262_s20  ;;  %v740_v46 = vrot.slane %v4440_v27, %v4435_v25  ;;  %v4591_v47 = vsub.s32 2, %v4419_v18  ;;  %v4598_v60 = vsub.s32 3, %v4419_v18  ;;  %v4604_v9 = vsub.s32 5, %v4419_v18 }
 0x14f   : > { %v1007_v36 = vsel %vm1004_vm6, %v1005_v32, %v1006_v33  ;;  %v934_v37 = vsel %vm929_vm5, %v931_v15, %v933_v34  ;;  %v1009_v39 = vsel %vm1004_vm6, %v1006_v33, %v1008_v38  ;;  %v728_v48 = vrot.slane %v4440_v27, %v4586_v45 }
 0x150   : > { %v748_v53 = vrot.slane %v4440_v27, %v4591_v47  ;;  %v760_v62 = vrot.slane %v4440_v27, %v4598_v60  ;;  %v806_v32 = vrot.slane %v4440_v27, %v4457_v30 }
 0x151   : > { %v4579_v40 = vpop.permute.xlu0 %1130 }
 0x152   : > { %767 = vrot.lane.b32.xlu0 %v4460_v31, %s6258_s25  ;;  %830 = vrot.lane.b32.xlu1 %v782_v50, %s6260_s22  ;;  %v749_v63 = vmul.f32 %v748_v53, %v4432_v24 }
 0x155   : > { %v4581_v41 = vpop.permute.xlu0 %1150 }
 0x156   : > { %842 = vrot.lane.b32.xlu1 %v782_v50, %s6258_s25  ;;  %787 = vrot.lane.b32.xlu0 %v782_v50, %s6264_s23 }
 0x15a   : > { %862 = vrot.lane.b32.xlu1 %v857_v12, %s6264_s23  ;;  %789 = vrot.lane.b32.xlu0 %v784_v13, %s6264_s23 }
 0x15e   : > { %874 = vrot.lane.b32.xlu1 %v857_v12, %s6262_s20  ;;  %801 = vrot.lane.b32.xlu0 %v784_v13, %s6262_s20 }
 0x162   : > { %905 = vrot.lane.b32.xlu1 %v857_v12, %s6260_s22  ;;  %832 = vrot.lane.b32.xlu0 %v784_v13, %s6260_s22 }
 0x166   : > { %917 = vrot.lane.b32.xlu1 %v857_v12, %s6258_s25  ;;  %844 = vrot.lane.b32.xlu0 %v784_v13, %s6258_s25  ;;  %v772_v12 = vrot.slane %v4440_v27, %v4426_v22 }
 0x16a   : > { %937 = vrot.lane.b32.xlu1 %v932_v20, %s6264_s23  ;;  %864 = vrot.lane.b32.xlu0 %v859_v21, %s6264_s23 }
 0x16e   : > { %949 = vrot.lane.b32.xlu1 %v932_v20, %s6262_s20  ;;  %876 = vrot.lane.b32.xlu0 %v859_v21, %s6262_s20 }
 0x172   : > { %980 = vrot.lane.b32.xlu1 %v932_v20, %s6260_s22  ;;  %907 = vrot.lane.b32.xlu0 %v859_v21, %s6260_s22 }
 0x176   : > { %992 = vrot.lane.b32.xlu1 %v932_v20, %s6258_s25  ;;  %919 = vrot.lane.b32.xlu0 %v859_v21, %s6258_s25  ;;  %v794_v20 = vrot.slane %v4440_v27, %v4604_v9  ;;  %v750_v21 = vmul.f32 %v748_v53, %v4460_v31  ;;  %v849_v31 = vrot.slane %v4445_v28, %v4435_v25 }
 0x17a   : > { %1012 = vrot.lane.b32.xlu1 %v1007_v36, %s6264_s23  ;;  %939 = vrot.lane.b32.xlu0 %v934_v37, %s6264_s23 }
 0x17e   : > { %1024 = vrot.lane.b32.xlu1 %v1007_v36, %s6262_s20  ;;  %951 = vrot.lane.b32.xlu0 %v934_v37, %s6262_s20 }
 0x182   : > { %1055 = vrot.lane.b32.xlu1 %v1007_v36, %s6260_s22  ;;  %982 = vrot.lane.b32.xlu0 %v934_v37, %s6260_s22 }
 0x186   : > { %1067 = vrot.lane.b32.xlu1 %v1007_v36, %s6258_s25  ;;  %994 = vrot.lane.b32.xlu0 %v934_v37, %s6258_s25 }
 0x18a   : > { %1026 = vrot.lane.b32.xlu1 %v1009_v39, %s6262_s20  ;;  %1014 = vrot.lane.b32.xlu0 %v1009_v39, %s6264_s23  ;;  %s4244_s23 = smov 126   ;;  %s4245_s20 = smov 1  }
 0x18e   : > { %1069 = vrot.lane.b32.xlu1 %v1009_v39, %s6258_s25  ;;  %1057 = vrot.lane.b32.xlu0 %v1009_v39, %s6260_s22  ;;  %s6289_s22 = smov 104   ;;  %s4246_s25 = smov 127  }
 0x192   : > { %1162 = vrot.lane.b32.xlu0 %v4230_v26, %s4239_s26 }
 0x196   : > { %1174 = vrot.lane.b32.xlu0 %v4230_v26, %s4240_s27 }
 0x1b4   : > { %v754_v43 = vpop.permute.xlu1 %753  ;;  %v722_v44 = vpop.permute.xlu0 %721 }
 0x1b5   : > { %v729_v52 = vmul.f32 %v728_v48, %v722_v44  ;;  %v761_v11 = vmul.f32 %v760_v62, %v754_v43  ;;  %v837_v44 = vrot.slane %v4445_v28, %v4586_v45 }
 0x1b8   : > { %v766_v49 = vpop.permute.xlu1 %765  ;;  %v734_v50 = vpop.permute.xlu0 %733 }
 0x1b9   : > { %v741_v51 = vmul.f32 %v740_v46, %v734_v50  ;;  %v773_v24 = vmul.f32 %v772_v12, %v766_v49 }
 0x1bb   : > { %v743_v61 = vadd.f32 %v741_v51, %v729_v52 }
 0x1bc   : > { %v736_v56 = vpop.permute.xlu0 %735  ;;  %v724_v57 = vpop.permute.xlu1 %723 }
 0x1bd   : > { %v751_v2 = vadd.f32 %v749_v63, %v743_v61  ;;  %v742_v4 = vmul.f32 %v740_v46, %v736_v56  ;;  %v730_v8 = vmul.f32 %v728_v48, %v724_v57  ;;  %v869_v57 = vrot.slane %v4445_v28, %v4591_v47 }
 0x1be   : > { %v881_v61 = vrot.slane %v4445_v28, %v4598_v60 }
 0x1bf   : > { %v744_v15 = vadd.f32 %v742_v4, %v730_v8  ;;  %v763_v16 = vadd.f32 %v761_v11, %v751_v2 }
 0x1c0   : > { %v756_v0 = vpop.permute.xlu0 %755  ;;  %v800_v1 = vpop.permute.xlu1 %799 }
 0x1c1   : > { %v752_v34 = vadd.f32 %v750_v21, %v744_v15  ;;  %v762_v36 = vmul.f32 %v760_v62, %v756_v0  ;;  %v775_v37 = vadd.f32 %v773_v24, %v763_v16  ;;  %v807_v39 = vmul.f32 %v806_v32, %v800_v1 }
 0x1c2   : > { %v924_v21 = vrot.slane %v4445_v28, %v4457_v30 }
 0x1c3   : > { %v764_v49 = vadd.f32 %v762_v36, %v752_v34 }
 0x1c4   : > { %v768_v13 = vpop.permute.xlu0 %767  ;;  %v831_v14 = vpop.permute.xlu1 %830 }
 0x1c5   : > { %v774_v43 = vmul.f32 %v772_v12, %v768_v13  ;;  %v838_v53 = vmul.f32 %v837_v44, %v831_v14 }
 0x1c7   : > { %v776_v52 = vadd.f32 %v774_v43, %v764_v49 }
 0x1c8   : > { %v843_v33 = vpop.permute.xlu1 %842  ;;  %v788_v18 = vpop.permute.xlu0 %787 }
 0x1c9   : > { %v795_v38 = vmul.f32 %v794_v20, %v788_v18  ;;  %v850_v0 = vmul.f32 %v849_v31, %v843_v33 }
 0x1cb   : > { %v797_v46 = vadd.f32 %v795_v38, %v775_v37  ;;  %v944_v37 = vrot.slane %v4445_v28, %v4429_v23 }
 0x1cc   : > { %v863_v48 = vpop.permute.xlu1 %862  ;;  %v790_v50 = vpop.permute.xlu0 %789 }
 0x1cd   : > { %v809_v51 = vadd.f32 %v807_v39, %v797_v46  ;;  %v796_v27 = vmul.f32 %v794_v20, %v790_v50  ;;  %v870_v11 = vmul.f32 %v869_v57, %v863_v48 }
 0x1cf   : > { %v828_v56 = vadd.f32 %v4492_v54, %v809_v51  ;;  %v798_v2 = vadd.f32 %v796_v27, %v776_v52  ;;  %v912_v54 = vrot.slane %v4445_v28, %v4604_v9 }
 0x1d0   : > { %v875_v62 = vpop.permute.xlu1 %874  ;;  %v802_v63 = vpop.permute.xlu0 %801 }
 0x1d1   : > { %v840_v1 = vadd.f32 %v838_v53, %v828_v56  ;;  %v808_v4 = vmul.f32 %v806_v32, %v802_v63  ;;  %v882_v16 = vmul.f32 %v881_v61, %v875_v62 }
 0x1d3   : > { %v852_v8 = vadd.f32 %v850_v0, %v840_v1  ;;  %v810_v12 = vadd.f32 %v808_v4, %v798_v2  ;;  %v987_v2 = vrot.slane %v4454_v29, %v4591_v47 }
 0x1d4   : > { %v906_v13 = vpop.permute.xlu1 %905  ;;  %v833_v15 = vpop.permute.xlu0 %832 }
 0x1d5   : > { %v872_v14 = vadd.f32 %v870_v11, %v852_v8  ;;  %v829_v20 = vadd.f32 %v4500_v58, %v810_v12  ;;  %v913_v34 = vmul.f32 %v912_v54, %v906_v13  ;;  %v839_v36 = vmul.f32 %v837_v44, %v833_v15 }
 0x1d6   : > { %v956_v58 = vrot.slane %v4454_v29, %v4586_v45 }
 0x1d7   : > { %v884_v24 = vadd.f32 %v882_v16, %v872_v14  ;;  %v841_v50 = vadd.f32 %v839_v36, %v829_v20 }
 0x1d8   : > { %v918_v33 = vpop.permute.xlu1 %917  ;;  %v845_v18 = vpop.permute.xlu0 %844 }
 0x1d9   : > { %v903_v32 = vadd.f32 %v4495_v55, %v884_v24  ;;  %v925_v39 = vmul.f32 %v924_v21, %v918_v33  ;;  %v851_v43 = vmul.f32 %v849_v31, %v845_v18  ;;  %v1031_v33 = vrot.slane %v4454_v29, %v4604_v9 }
 0x1db   : > { %v915_v38 = vadd.f32 %v913_v34, %v903_v32  ;;  %v853_v52 = vadd.f32 %v851_v43, %v841_v50 }
 0x1dc   : > { %v938_v46 = vpop.permute.xlu1 %937  ;;  %v865_v48 = vpop.permute.xlu0 %864 }
 0x1dd   : > { %v927_v49 = vadd.f32 %v925_v39, %v915_v38  ;;  %v945_v51 = vmul.f32 %v944_v37, %v938_v46  ;;  %v871_v27 = vmul.f32 %v869_v57, %v865_v48  ;;  %v999_v57 = vrot.slane %v4454_v29, %v4598_v60 }
 0x1df   : > { %v947_v56 = vadd.f32 %v945_v51, %v927_v49  ;;  %v873_v44 = vadd.f32 %v871_v27, %v853_v52 }
 0x1e0   : > { %v950_v53 = vpop.permute.xlu1 %949  ;;  %v877_v55 = vpop.permute.xlu0 %876 }
 0x1e1   : > { %v957_v62 = vmul.f32 %v956_v58, %v950_v53  ;;  %v883_v63 = vmul.f32 %v881_v61, %v877_v55  ;;  %v1019_v61 = vrot.slane %v4454_v29, %v4426_v22  ;;  %v3732_v55 = vld [vmem:[%s6239_s3 + $0x18] ss:$0 sm:$0xff] }
 0x1e3   : > { %v959_v28 = vadd.f32 %v957_v62, %v947_v56  ;;  %v885_v0 = vadd.f32 %v883_v63, %v873_v44 }
 0x1e4   : > { %v981_v1 = vpop.permute.xlu1 %980  ;;  %v908_v31 = vpop.permute.xlu0 %907 }
 0x1e5   : > { %v978_v4 = vadd.f32 %v4503_v59, %v959_v28  ;;  %v904_v8 = vadd.f32 %v4512_v3, %v885_v0  ;;  %v988_v13 = vmul.f32 %v987_v2, %v981_v1  ;;  %v914_v15 = vmul.f32 %v912_v54, %v908_v31 }
 0x1e6   : > { %v1062_v54 = vrot.slane %v4454_v29, %v4429_v23 }
 0x1e7   : > { %v990_v59 = vadd.f32 %v988_v13, %v978_v4  ;;  %v916_v18 = vadd.f32 %v914_v15, %v904_v8 }
 0x1e8   : > { %v993_v11 = vpop.permute.xlu1 %992  ;;  %v920_v12 = vpop.permute.xlu0 %919 }
 0x1e9   : > { %v1000_v14 = vmul.f32 %v999_v57, %v993_v11  ;;  %v926_v16 = vmul.f32 %v924_v21, %v920_v12 }
 0x1eb   : > { %v1002_v34 = vadd.f32 %v1000_v14, %v990_v59  ;;  %v928_v36 = vadd.f32 %v926_v16, %v916_v18 }
 0x1ec   : > { %v1013_v20 = vpop.permute.xlu1 %1012  ;;  %v940_v24 = vpop.permute.xlu0 %939 }
 0x1ed   : > { %v1020_v3 = vmul.f32 %v1019_v61, %v1013_v20  ;;  %v946_v32 = vmul.f32 %v944_v37, %v940_v24 }
 0x1ef   : > { %v1022_v43 = vadd.f32 %v1020_v3, %v1002_v34  ;;  %v948_v46 = vadd.f32 %v946_v32, %v928_v36  ;;  %v4671_v3 = vld [vmem:[%s6241_s5 + $0x8] sm:$0xff]  ;;  %v4676_v32 = vld [vmem:[%s6241_s5 + $0x10] sm:$0xff]  ;;  %v4685_v34 = vld [vmem:[%s6241_s5 + $0x18] sm:$0xff] }
 0x1f0   : > { %v1025_v38 = vpop.permute.xlu1 %1024  ;;  %v952_v39 = vpop.permute.xlu0 %951  ;;  %v4689_v36 = vrot.slane %v4671_v3, %v4591_v47 }
 0x1f1   : > { %v1032_v48 = vmul.f32 %v1031_v33, %v1025_v38  ;;  %v958_v21 = vmul.f32 %v956_v58, %v952_v39  ;;  %v3733_v58 = vld [vmem:[%s6240_s4] ss:$0 sm:$0xff]  ;;  %v4693_v38 = vrot.slane %v4676_v32, %v4435_v25 }
 0x1f3   : > { %v1034_v50 = vadd.f32 %v1032_v48, %v1022_v43  ;;  %v960_v49 = vadd.f32 %v958_v21, %v948_v46  ;;  %v4706_v43 = vld [vmem:[%s6241_s5 + $0x20] sm:$0xff] }
 0x1f4   : > { %v1056_v51 = vpop.permute.xlu1 %1055  ;;  %v983_v27 = vpop.permute.xlu0 %982 }
 0x1f5   : > { %v1053_v52 = vadd.f32 %v4515_v5, %v1034_v50  ;;  %v1063_v53 = vmul.f32 %v1062_v54, %v1056_v51  ;;  %v979_v37 = vadd.f32 %v4518_v6, %v960_v49  ;;  %v989_v56 = vmul.f32 %v987_v2, %v983_v27 }
 0x1f6   : > { %v1529_v50 = vrot.slane %v4685_v34, %v4429_v23  ;;  %v1627_v27 = vrot.slane %v4706_v43, %v4457_v30 }
 0x1f7   : > { %v1065_v62 = vadd.f32 %v1063_v53, %v1053_v52  ;;  %v991_v0 = vadd.f32 %v989_v56, %v979_v37  ;;  %v4730_v52 = vld [vmem:[%s6241_s5 + $0x28] sm:$0xff] }
 0x1f8   : > { %v1068_v44 = vpop.permute.xlu1 %1067  ;;  %v995_v29 = vpop.permute.xlu0 %994 }
 0x1f9   : > { %v1075_v63 = vmul.f32 %v3732_v55, %v1068_v44  ;;  %v1001_v28 = vmul.f32 %v999_v57, %v995_v29  ;;  %v1188_v57 = vrot.slane %v4230_v26, 3 }
 0x1fb   : > { %v1077_v1 = vadd.f32 %v1075_v63, %v1065_v62  ;;  %v1003_v6 = vadd.f32 %v1001_v28, %v991_v0  ;;  %v4745_v63 = vrot.slane %v4730_v52, %v4604_v9 }
 0x1fc   : > { %v1027_v5 = vpop.permute.xlu1 %1026  ;;  %v1015_v31 = vpop.permute.xlu0 %1014 }
 0x1fd   : > { %v4652_v4 = vadd.f32 %v3733_v58, %v1077_v1  ;;  %v1021_v8 = vmul.f32 %v1019_v61, %v1015_v31  ;;  %v1033_v11 = vmul.f32 %v1031_v33, %v1027_v5 }
 0x1ff   : > { %v1091_v2 = vrot.slane %v4652_v4, 7  ;;  %v1023_v12 = vadd.f32 %v1021_v8, %v1003_v6 }
 0x200   : > { %v1058_v13 = vpop.permute.xlu0 %1057  ;;  %v1070_v16 = vpop.permute.xlu1 %1069 }
 0x201   : > { %v4657_v15 = vsel %vm1090_vm7, 0.0, %v1091_v2  ;;  %v1035_v14 = vadd.f32 %v1033_v11, %v1023_v12  ;;  %v1064_v24 = vmul.f32 %v1062_v54, %v1058_v13  ;;  %v1076_v59 = vmul.f32 %v3732_v55, %v1070_v16 }
 0x202   : > { %1120 = vrot.lane.b32.xlu1 %v4657_v15, %s4233_s1  ;;  %1108 = vrot.lane.b32.xlu0 %v4657_v15, %s4231_s30  ;;  %v1189_v61 = vrot.slane %v4657_v15, 3  ;;  %v1431_v54 = vrot.slane %v4685_v34, %v4586_v45  ;;  %v4711_v48 = vmul.f32 %v4689_v36, %v4657_v15  ;;  %v4715_v21 = vmul.f32 %v4693_v38, %v4657_v15 }
 0x203   : > { %v1054_v20 = vadd.f32 %v4524_v7, %v1035_v14  ;;  %v1581_v37 = vrot.slane %v4657_v15, 7  ;;  %v1530_v62 = vmul.f32 %v1529_v50, %v4657_v15  ;;  %v1628_v1 = vmul.f32 %v1627_v27, %v4657_v15 }
 0x204   : > { %v4666_v33 = vsel %vm929_vm5, %v1188_v57, %v1189_v61  ;;  %v1432_v53 = vmul.f32 %v1431_v54, %v4657_v15  ;;  %v6269_v44 = vrot.slane %v4711_v48, 3  ;;  %v6268_v29 = vrot.slane %v4715_v21, 6 }
 0x205   : > { %v1066_v18 = vadd.f32 %v1064_v24, %v1054_v20  ;;  %v1536_v16 = vrot.slane %v1530_v62, 4 }
 0x206   : > { %1132 = vrot.lane.b32.xlu1 %v4657_v15, %s6273_s18  ;;  %1195 = vrot.lane.b32.xlu0 %v4666_v33, %s4231_s30  ;;  %v1438_v8 = vrot.slane %v1432_v53, 1 }
 0x207   : > { %v1078_v7 = vadd.f32 %v1076_v59, %v1066_v18 }
 0x209   : > { %v4695_v39 = vadd.f32 %v3733_v58, %v1078_v7 }
 0x20a   : > { %1152 = vrot.lane.b32.xlu1 %v4657_v15, %s6289_s22  ;;  %1207 = vrot.lane.b32.xlu0 %v4666_v33, %s4233_s1 }
 0x20b   : > { %v1092_v46 = vrot.slane %v4695_v39, 7 }
 0x20d   : > { %v4720_v49 = vsel %vm1090_vm7, %v1091_v2, %v1092_v46  ;;  %v4723_v51 = vsel %vm1090_vm7, %v1092_v46, 0.0 }
 0x20e   : > { %1164 = vrot.lane.b32.xlu1 %v4657_v15, %s4239_s26  ;;  %1219 = vrot.lane.b32.xlu0 %v4666_v33, %s6273_s18  ;;  %v1582_v55 = vrot.slane %v4720_v49, 7  ;;  %v1584_v56 = vrot.slane %v4723_v51, 7  ;;  %v1191_v28 = vrot.slane %v4720_v49, 3  ;;  %v1679_v5 = vrot.slane %v4720_v49, 2 }
 0x20f   : > { %v6270_v31 = vrot.slane %v4723_v51, 2  ;;  %v1237_v6 = vmul.f32 %v4689_v36, %v4720_v49  ;;  %v1335_v2 = vmul.f32 %v4693_v38, %v4720_v49  ;;  %v1433_v11 = vmul.f32 %v1431_v54, %v4720_v49 }
 0x210   : > { %v4749_v58 = vsel %vm1090_vm7, %v1581_v37, %v1582_v55  ;;  %v4752_v0 = vsel %vm1090_vm7, %v1582_v55, %v1584_v56  ;;  %v1434_v12 = vmul.f32 %v1431_v54, %v4723_v51  ;;  %v1531_v13 = vmul.f32 %v1529_v50, %v4720_v49 }
 0x211   : > { %v4771_v57 = vsel %vm854_vm4, %v1679_v5, %v6270_v31  ;;  %v1244_v14 = vrot.slane %v1237_v6, 3  ;;  %v1532_v20 = vmul.f32 %v1529_v50, %v4723_v51  ;;  %v1192_v24 = vsel %vm929_vm5, %v1189_v61, %v1191_v28 }
 0x212   : > { %1176 = vrot.lane.b32.xlu1 %v4657_v15, %s4240_s27  ;;  %1250 = vrot.lane.b32.xlu0 %v4666_v33, %s6289_s22  ;;  %v1342_v59 = vrot.slane %v1335_v2, 6  ;;  %v1439_v18 = vrot.slane %v1433_v11, 1  ;;  %v1441_v7 = vrot.slane %v1434_v12, 1  ;;  %v1537_v46 = vrot.slane %v1531_v13, 4 }
 0x213   : > { %v4781_v54 = vsel %vm929_vm5, %v6269_v44, %v1244_v14  ;;  %v1539_v53 = vrot.slane %v1532_v20, 4  ;;  %v1629_v37 = vmul.f32 %v1627_v27, %v4720_v49  ;;  %v1634_v56 = vrot.slane %v1628_v1, 7 }
 0x214   : > { %v4787_v61 = vsel %vm708_vm2, %v6268_v29, %v1342_v59  ;;  %v4790_v50 = vsel %vm779_vm3, %v1438_v8, %v1439_v18  ;;  %v4793_v55 = vsel %vm779_vm3, %v1439_v18, %v1441_v7  ;;  %v4796_v62 = vsel %vm1004_vm6, %v1536_v16, %v1537_v46 }
 0x215   : > { %v4799_v28 = vsel %vm1004_vm6, %v1537_v46, %v1539_v53  ;;  %v1635_v5 = vrot.slane %v1629_v37, 7  ;;  %v1630_v6 = vmul.f32 %v1627_v27, %v4723_v51  ;;  %v1286_v2 = vrot.slane %v4230_v26, 6 }
 0x216   : > { %1262 = vrot.lane.b32.xlu0 %v4666_v33, %s4239_s26  ;;  %1197 = vrot.lane.b32.xlu1 %v1192_v24, %s4231_s30  ;;  %v1287_v11 = vrot.slane %v4657_v15, 6  ;;  %v1726_v8 = vmul.f32 %v4745_v63, %v4720_v49  ;;  %v4808_v12 = vmul.f32 %v4745_v63, %v4723_v51  ;;  %v1386_v7 = vrot.slane %v4720_v49, 1 }
 0x217   : > { %v4814_v1 = vsel %vm1090_vm7, %v1634_v56, %v1635_v5  ;;  %v1637_v27 = vrot.slane %v1630_v6, 7  ;;  %v1385_v46 = vrot.slane %v4657_v15, 1  ;;  %v1484_v56 = vrot.slane %v4720_v49, 4 }
 0x218   : > { %v1732_v13 = vrot.slane %v1726_v8, 2  ;;  %v6267_v14 = vrot.slane %v4808_v12, 2  ;;  %v1288_v20 = vsel %vm708_vm2, %v1286_v2, %v1287_v11  ;;  %v1099_v8 = vld [vmem:[%s6241_s5] sm:$0xff] }
 0x219   : > { %v4818_v16 = vsel %vm1090_vm7, %v1635_v5, %v1637_v27  ;;  %v1387_v53 = vsel %vm779_vm3, %v1385_v46, %v1386_v7  ;;  %v1483_v5 = vrot.slane %v4657_v15, 4  ;;  %v1113_v27 = vrot.slane %v1099_v8, %v4586_v45 }
 0x21a   : > { %1274 = vrot.lane.b32.xlu0 %v4666_v33, %s4240_s27  ;;  %1209 = vrot.lane.b32.xlu1 %v1192_v24, %s4233_s1  ;;  %v4824_v59 = vsel %vm854_vm4, %v1732_v13, %v6267_v14  ;;  %v1289_v33 = vrot.slane %v4720_v49, 6  ;;  %v1486_v49 = vrot.slane %v4723_v51, 4  ;;  %v1125_v13 = vrot.slane %v1099_v8, %v4435_v25 }
 0x21b   : > { %v1485_v6 = vsel %vm1004_vm6, %v1483_v5, %v1484_v56 }
 0x21c   : > { %v1290_v18 = vsel %vm708_vm2, %v1287_v11, %v1289_v33  ;;  %v1487_v2 = vsel %vm1004_vm6, %v1484_v56, %v1486_v49  ;;  %v1163_v11 = vpop.permute.xlu0 %1162  ;;  %v1114_v33 = vmul.f32 %v1113_v27, %v4577_v35  ;;  %v1145_v56 = vrot.slane %v1099_v8, %v4598_v60  ;;  %v1802_v49 = vld [vmem:[%s6244_s8] sm:$0xff] }
 0x21e   : > { %1293 = vrot.lane.b32.xlu0 %v1288_v20, %s4231_s30  ;;  %1221 = vrot.lane.b32.xlu1 %v1192_v24, %s6273_s18 }
 0x222   : > { %1305 = vrot.lane.b32.xlu0 %v1288_v20, %s4233_s1  ;;  %1252 = vrot.lane.b32.xlu1 %v1192_v24, %s6289_s22 }
 0x226   : > { %1317 = vrot.lane.b32.xlu0 %v1288_v20, %s6273_s18  ;;  %1264 = vrot.lane.b32.xlu1 %v1192_v24, %s4239_s26 }
 0x22a   : > { %1348 = vrot.lane.b32.xlu0 %v1288_v20, %s6289_s22  ;;  %1276 = vrot.lane.b32.xlu1 %v1192_v24, %s4240_s27  ;;  %v1388_v24 = vrot.slane %v4723_v51, 1 }
 0x22c   : > { %v1389_v37 = vsel %vm779_vm3, %v1386_v7, %v1388_v24  ;;  %v1126_v7 = vmul.f32 %v1125_v13, %v4583_v42 }
 0x22e   : > { %1360 = vrot.lane.b32.xlu0 %v1288_v20, %s4239_s26  ;;  %1295 = vrot.lane.b32.xlu1 %v1290_v18, %s4231_s30 }
 0x232   : > { %1372 = vrot.lane.b32.xlu0 %v1288_v20, %s4240_s27  ;;  %1307 = vrot.lane.b32.xlu1 %v1290_v18, %s4233_s1  ;;  %v1175_v20 = vpop.permute.xlu0 %1174 }
 0x236   : > { %1392 = vrot.lane.b32.xlu0 %v1387_v53, %s4231_s30  ;;  %1319 = vrot.lane.b32.xlu1 %v1290_v18, %s6273_s18 }
 0x23a   : > { %1404 = vrot.lane.b32.xlu0 %v1387_v53, %s4233_s1  ;;  %1350 = vrot.lane.b32.xlu1 %v1290_v18, %s6289_s22 }
 0x23e   : > { %1416 = vrot.lane.b32.xlu0 %v1387_v53, %s6273_s18  ;;  %1362 = vrot.lane.b32.xlu1 %v1290_v18, %s4239_s26 }
 0x242   : > { %1447 = vrot.lane.b32.xlu0 %v1387_v53, %s6289_s22  ;;  %1374 = vrot.lane.b32.xlu1 %v1290_v18, %s4240_s27  ;;  %v1137_v18 = vrot.slane %v1099_v8, %v4591_v47 }
 0x244   : > { %v1138_v24 = vmul.f32 %v1137_v18, %v4579_v40  ;;  %v1803_v40 = vld [vmem:[%s6244_s8 + $0x8] sm:$0xff] }
 0x246   : > { %1459 = vrot.lane.b32.xlu0 %v1387_v53, %s4239_s26  ;;  %1394 = vrot.lane.b32.xlu1 %v1389_v37, %s4231_s30 }
 0x24a   : > { %1471 = vrot.lane.b32.xlu0 %v1387_v53, %s4240_s27  ;;  %1406 = vrot.lane.b32.xlu1 %v1389_v37, %s4233_s1 }
 0x24e   : > { %1490 = vrot.lane.b32.xlu0 %v1485_v6, %s4231_s30  ;;  %1418 = vrot.lane.b32.xlu1 %v1389_v37, %s6273_s18 }
 0x252   : > { %1502 = vrot.lane.b32.xlu0 %v1485_v6, %s4233_s1  ;;  %1449 = vrot.lane.b32.xlu1 %v1389_v37, %s6289_s22 }
 0x256   : > { %1514 = vrot.lane.b32.xlu0 %v1485_v6, %s6273_s18  ;;  %1461 = vrot.lane.b32.xlu1 %v1389_v37, %s4239_s26 }
 0x25a   : > { %1545 = vrot.lane.b32.xlu0 %v1485_v6, %s6289_s22  ;;  %1473 = vrot.lane.b32.xlu1 %v1389_v37, %s4240_s27  ;;  %v1128_v37 = vadd.f32 %v1126_v7, %v1114_v33  ;;  %v1146_v33 = vmul.f32 0.0, %v1145_v56  ;;  %v1157_v7 = vrot.slane %v1099_v8, %v4426_v22 }
 0x25e   : > { %1557 = vrot.lane.b32.xlu0 %v1485_v6, %s4239_s26  ;;  %1492 = vrot.lane.b32.xlu1 %v1487_v2, %s4231_s30 }
 0x262   : > { %1569 = vrot.lane.b32.xlu0 %v1485_v6, %s4240_s27  ;;  %1504 = vrot.lane.b32.xlu1 %v1487_v2, %s4233_s1 }
 0x266   : > { %1588 = vrot.lane.b32.xlu0 %v4749_v58, %s4231_s30  ;;  %1516 = vrot.lane.b32.xlu1 %v1487_v2, %s6273_s18 }
 0x26a   : > { %1600 = vrot.lane.b32.xlu0 %v4749_v58, %s4233_s1  ;;  %1547 = vrot.lane.b32.xlu1 %v1487_v2, %s6289_s22 }
 0x26e   : > { %1612 = vrot.lane.b32.xlu0 %v4749_v58, %s6273_s18  ;;  %1559 = vrot.lane.b32.xlu1 %v1487_v2, %s4239_s26 }
 0x272   : > { %1643 = vrot.lane.b32.xlu0 %v4749_v58, %s6289_s22  ;;  %1571 = vrot.lane.b32.xlu1 %v1487_v2, %s4240_s27  ;;  %v1140_v2 = vadd.f32 %v1138_v24, %v1128_v37 }
 0x274   : > { %v1121_v46 = vpop.permute.xlu1 %1120  ;;  %v1109_v53 = vpop.permute.xlu0 %1108  ;;  %v1148_v24 = vadd.f32 %v1146_v33, %v1140_v2  ;;  %v1202_v2 = vrot.slane %v1099_v8, %v4429_v23 }
 0x275   : > { %v1127_v35 = vmul.f32 %v1125_v13, %v1121_v46  ;;  %v1115_v42 = vmul.f32 %v1113_v27, %v1109_v53  ;;  %v1169_v27 = vrot.slane %v1099_v8, %v4604_v9  ;;  %v1804_v46 = vld [vmem:[%s6244_s8 + $0x10] sm:$0xff]  ;;  %v1805_v53 = vld [vmem:[%s6244_s8 + $0x18] sm:$0xff] }
 0x276   : > { %1655 = vrot.lane.b32.xlu0 %v4749_v58, %s4239_s26  ;;  %1590 = vrot.lane.b32.xlu1 %v4752_v0, %s4231_s30 }
 0x277   : > { %v1129_v13 = vadd.f32 %v1127_v35, %v1115_v42  ;;  %v1170_v35 = vmul.f32 %v1169_v27, %v1163_v11  ;;  %v1147_v42 = vmul.f32 %v1145_v56, %v4657_v15 }
 0x278   : > { %v1133_v5 = vpop.permute.xlu1 %1132  ;;  %v1196_v6 = vpop.permute.xlu0 %1195 }
 0x279   : > { %v1139_v29 = vmul.f32 %v1137_v18, %v1133_v5  ;;  %v1158_v18 = vmul.f32 %v1157_v7, %v4581_v41  ;;  %v1806_v41 = vld [vmem:[%s6244_s8 + $0x20] sm:$0xff]  ;;  %v1203_v31 = vmul.f32 %v1202_v2, %v1196_v6 }
 0x27a   : > { %1667 = vrot.lane.b32.xlu0 %v4749_v58, %s4240_s27  ;;  %1602 = vrot.lane.b32.xlu1 %v4752_v0, %s4233_s1  ;;  %v4041_v58 = vpack.c.bf16 %v1803_v40, %v1802_v49  ;;  %v4045_v49 = vpack.c.bf16 %v1805_v53, %v1804_v46  ;;  %v1181_v40 = vrot.slane %v1099_v8, %v4457_v30 }
 0x27b   : > { %v1141_v44 = vadd.f32 %v1139_v29, %v1129_v13  ;;  %v1807_v29 = vld [vmem:[%s6244_s8 + $0x28] sm:$0xff]  ;;  %v1160_v33 = vadd.f32 %v1158_v18, %v1148_v24  ;;  %v1214_v8 = vrot.slane %v4671_v3, %v4586_v45  ;;  %v1226_v18 = vrot.slane %v4671_v3, %v4435_v25 }
 0x27c   : > { %v1153_v10 = vpop.permute.xlu1 %1152  ;;  %v1208_v14 = vpop.permute.xlu0 %1207  ;;  %4042 = vmatprep.subr.bf16.mxu1 %v4041_v58  ;;  %v4049_v46 = vpack.c.bf16 %v1807_v29, %v1806_v41  ;;  %v1182_v11 = vmul.f32 %v1181_v40, %v1175_v20  ;;  %v1235_v41 = vmul.f32 0.0, %v4689_v36 }
 0x27d   : > { %4044 = vmatpush3.bf16.msra.mxu1 %v4041_v58  ;;  %v1149_v53 = vadd.f32 %v1147_v42, %v1141_v44  ;;  %v1159_v15 = vmul.f32 %v1157_v7, %v1153_v10  ;;  %v1172_v56 = vadd.f32 %v1170_v35, %v1160_v33  ;;  %v1808_v10 = vld [vmem:[%s6244_s8 + $0x30] sm:$0xff]  ;;  %v1809_v44 = vld [vmem:[%s6244_s8 + $0x38] sm:$0xff] }
 0x27e   : > { %1686 = vrot.lane.b32.xlu0 %v4771_v57, %s4231_s30  ;;  %1614 = vrot.lane.b32.xlu1 %v4752_v0, %s6273_s18  ;;  %v4053_v35 = vpack.c.bf16 %v1809_v44, %v1808_v10 }
 0x27f   : > { %4046 = vmatprep.subr.bf16.mxu1 %v4045_v49  ;;  %v1184_v6 = vadd.f32 %v1182_v11, %v1172_v56 }
 0x280   : > { %v1165_v37 = vpop.permute.xlu1 %1164  ;;  %v1220_v5 = vpop.permute.xlu0 %1219 }
 0x281   : > { %4048 = vmatpush3.bf16.msra.mxu1 %v4045_v49  ;;  %v1171_v24 = vmul.f32 %v1169_v27, %v1165_v37  ;;  %v1682_v49 = vrot.slane %v4230_v26, 2  ;;  %v1161_v27 = vadd.f32 %v1159_v15, %v1149_v53  ;;  %v1215_v37 = vmul.f32 %v1214_v8, %v1208_v14  ;;  %v1810_v26 = vld [vmem:[%s6244_s8 + $0x40] sm:$0xff]  ;;  %v1811_v14 = vld [vmem:[%s6244_s8 + $0x48] sm:$0xff] }
 0x282   : > { %1698 = vrot.lane.b32.xlu0 %v4771_v57, %s4233_s1  ;;  %1645 = vrot.lane.b32.xlu1 %v4752_v0, %s6289_s22  ;;  %v1205_v29 = vadd.f32 %v1203_v31, %v1184_v6  ;;  %v1227_v17 = vmul.f32 %v1226_v18, %v1220_v5  ;;  %v6290_v31 = vrot.slane %v4723_v51, 2  ;;  %v1257_v15 = vrot.slane %v4671_v3, %v4598_v60  ;;  %v1812_v51 = vld [vmem:[%s6244_s8 + $0x50] sm:$0xff] }
 0x283   : > { %4050 = vmatprep.subr.bf16.mxu1 %v4049_v46  ;;  %v1173_v33 = vadd.f32 %v1171_v24, %v1161_v27 }
 0x284   : > { %v1177_v58 = vpop.permute.xlu1 %1176  ;;  %v4936_v13 = vpop.permute.xlu0 %1250  ;;  %v4967_v5 = vsel %vm854_vm4, %v6290_v31, %v1682_v49 }
 0x285   : > { %4052 = vmatpush3.bf16.msra.mxu1 %v4049_v46  ;;  %v1183_v42 = vmul.f32 %v1181_v40, %v1177_v58  ;;  %v4057_v58 = vpack.c.bf16 %v1811_v14, %v1810_v26  ;;  %v1217_v46 = vadd.f32 %v1215_v37, %v1205_v29  ;;  %v1258_v27 = vmul.f32 %v1257_v15, %v4936_v13 }
 0x286   : > { %1710 = vrot.lane.b32.xlu0 %v4771_v57, %s6273_s18  ;;  %1657 = vrot.lane.b32.xlu1 %v4752_v0, %s4239_s26  ;;  %v1281_v37 = vrot.slane %v4671_v3, %v4604_v9  ;;  %v1300_v13 = vrot.slane %v4671_v3, %v4457_v30 }
 0x287   : > { %4054 = vmatprep.subr.bf16.mxu1 %v4053_v35  ;;  %v1185_v11 = vadd.f32 %v1183_v42, %v1173_v33  ;;  %v1229_v53 = vadd.f32 %v1227_v17, %v1217_v46  ;;  %v1269_v17 = vrot.slane %v4671_v3, %v4426_v22  ;;  %v1816_v46 = vld [vmem:[%s6244_s8 + $0x70] sm:$0xff] }
 0x288   : > { %v1263_v20 = vpop.permute.xlu0 %1262  ;;  %v1198_v7 = vpop.permute.xlu1 %1197 }
 0x289   : > { %v1204_v19 = vmul.f32 %v1202_v2, %v1198_v7  ;;  %4056 = vmatpush3.bf16.msra.mxu1 %v4053_v35  ;;  %v1241_v2 = vrot.slane %v1235_v41, 3  ;;  %v1270_v33 = vmul.f32 %v1269_v17, %v1263_v20  ;;  %v1817_v20 = vld [vmem:[%s6244_s8 + $0x78] sm:$0xff] }
 0x28a   : > { %1741 = vrot.lane.b32.xlu0 %v4771_v57, %s6289_s22  ;;  %1669 = vrot.lane.b32.xlu1 %v4752_v0, %s4240_s27  ;;  %v4069_v31 = vpack.c.bf16 %v1817_v20, %v1816_v46 }
 0x28b   : > { %v1206_v56 = vadd.f32 %v1204_v19, %v1185_v11  ;;  %4058 = vmatprep.subr.bf16.mxu1 %v4057_v58  ;;  %v6291_v19 = vrot.slane %v4711_v48, 3  ;;  %v1814_v48 = vld [vmem:[%s6244_s8 + $0x60] sm:$0xff] }
 0x28c   : > { %v1275_v36 = vpop.permute.xlu0 %1274  ;;  %v1210_v40 = vpop.permute.xlu1 %1209 }
 0x28d   : > { %v1216_v0 = vmul.f32 %v1214_v8, %v1210_v40  ;;  %v1813_v8 = vld [vmem:[%s6244_s8 + $0x58] sm:$0xff]  ;;  %4060 = vmatpush3.bf16.msra.mxu1 %v4057_v58  ;;  %v1243_v35 = vsel %vm929_vm5, %v1241_v2, %v6291_v19  ;;  %v1282_v40 = vmul.f32 %v1281_v37, %v1275_v36  ;;  %v1312_v58 = vrot.slane %v4671_v3, %v4429_v23  ;;  %v1787_v3 = vld [vmem:[%s6243_s7 + $0x8] sm:$0xff] }
 0x28e   : > { %1753 = vrot.lane.b32.xlu0 %v4771_v57, %s4239_s26  ;;  %1688 = vrot.lane.b32.xlu1 %v4967_v5, %s4231_s30  ;;  %v4061_v44 = vpack.c.bf16 %v1813_v8, %v1812_v51  ;;  %v1248_v6 = vadd.f32 %v1243_v35, %v1229_v53  ;;  %v1324_v53 = vrot.slane %v4676_v32, %v4586_v45  ;;  %s4243_s30 = smov 2  }
 0x28f   : > { %v1218_v7 = vadd.f32 %v1216_v0, %v1206_v56 }
 0x290   : > { %v1294_v24 = vpop.permute.xlu0 %1293  ;;  %v1222_v10 = vpop.permute.xlu1 %1221  ;;  %4062 = vmatprep.subr.bf16.mxu1 %v4061_v44  ;;  %v1260_v14 = vadd.f32 %v1258_v27, %v1248_v6 }
 0x291   : > { %v1228_v49 = vmul.f32 %v1226_v18, %v1222_v10  ;;  %v1815_v18 = vld [vmem:[%s6244_s8 + $0x68] sm:$0xff]  ;;  %4064 = vmatpush3.bf16.msra.mxu1 %v4061_v44  ;;  %v1301_v2 = vmul.f32 %v1300_v13, %v1294_v24  ;;  %v1333_v10 = vmul.f32 0.0, %v4693_v38  ;;  %v1355_v38 = vrot.slane %v4676_v32, %v4591_v47 }
 0x292   : > { %1765 = vrot.lane.b32.xlu0 %v4771_v57, %s4240_s27  ;;  %1700 = vrot.lane.b32.xlu1 %v4967_v5, %s4233_s1  ;;  %v4065_v29 = vpack.c.bf16 %v1815_v18, %v1814_v48  ;;  %v1272_v36 = vadd.f32 %v1270_v33, %v1260_v14  ;;  %v6292_v14 = vrot.slane %v4715_v21, 6  ;;  %v1411_v21 = vrot.slane %v4676_v32, %v4457_v30  ;;  %s6314_s1 = smov 120  }
 0x293   : > { %v1230_v42 = vadd.f32 %v1228_v49, %v1218_v7  ;;  %v1339_v27 = vrot.slane %v1333_v10, 6 }
 0x294   : > { %v1306_v57 = vpop.permute.xlu0 %1305  ;;  %v1253_v41 = vpop.permute.xlu1 %1252  ;;  %4066 = vmatprep.subr.bf16.mxu1 %v4065_v29  ;;  %v1284_v51 = vadd.f32 %v1282_v40, %v1272_v36 }
 0x295   : > { %v1249_v26 = vadd.f32 %v4781_v54, %v1230_v42  ;;  %v1786_v54 = vld [vmem:[%s6243_s7] sm:$0xff]  ;;  %4068 = vmatpush3.bf16.msra.mxu1 %v4065_v29  ;;  %v1313_v8 = vmul.f32 %v1312_v58, %v1306_v57  ;;  %v1259_v19 = vmul.f32 %v1257_v15, %v1253_v41  ;;  %v1367_v41 = vrot.slane %v4676_v32, %v4598_v60 }
 0x296   : > { %1712 = vrot.lane.b32.xlu1 %v4967_v5, %s6273_s18  ;;  %v5020_v56 = vpack.c.bf16 %v1787_v3, %v1786_v54  ;;  %4070 = vmatprep.subr.bf16.mxu1 %v4069_v31  ;;  %v1303_v49 = vadd.f32 %v1301_v2, %v1284_v51  ;;  %s6305_s18 = smov 8  }
 0x297   : > { %v1261_v18 = vadd.f32 %v1259_v19, %v1249_v26  ;;  %v1379_v26 = vrot.slane %v4676_v32, %v4426_v22 }
 0x298   : > { %v1318_v11 = vpop.permute.xlu0 %1317  ;;  %v1265_v0 = vpop.permute.xlu1 %1264  ;;  %v1315_v24 = vadd.f32 %v1313_v8, %v1303_v49 }
 0x299   : > { %4072 = vmatpush3.bf16.msra.mxu1 %v4069_v31  ;;  %v1325_v35 = vmul.f32 %v1324_v53, %v1318_v11  ;;  %v1271_v6 = vmul.f32 %v1269_v17, %v1265_v0  ;;  %v1341_v17 = vsel %vm708_vm2, %v1339_v27, %v6292_v14  ;;  %v1399_v31 = vrot.slane %v4676_v32, %v4604_v9 }
 0x29a   : > { %1743 = vrot.lane.b32.xlu1 %v4967_v5, %s6289_s22  ;;  %4074 = vmatprep.subr.bf16.mxu1 %v5020_v56 }
 0x29b   : > { %v1327_v57 = vadd.f32 %v1325_v35, %v1315_v24  ;;  %v1273_v15 = vadd.f32 %v1271_v6, %v1261_v18  ;;  %v1423_v6 = vrot.slane %v4676_v32, %v4429_v23 }
 0x29c   : > { %v1349_v44 = vpop.permute.xlu0 %1348  ;;  %v1277_v7 = vpop.permute.xlu1 %1276 }
 0x29d   : > { %v1283_v29 = vmul.f32 %v1281_v37, %v1277_v7  ;;  %v1346_v20 = vadd.f32 %v1341_v17, %v1327_v57  ;;  %v1356_v54 = vmul.f32 %v1355_v38, %v1349_v44 }
 0x29e   : > { %1755 = vrot.lane.b32.xlu1 %v4967_v5, %s4239_s26 }
 0x29f   : > { %v1285_v37 = vadd.f32 %v1283_v29, %v1273_v15  ;;  %v1358_v36 = vadd.f32 %v1356_v54, %v1346_v20 }
 0x2a0   : > { %v1361_v42 = vpop.permute.xlu0 %1360  ;;  %v1296_v48 = vpop.permute.xlu1 %1295 }
 0x2a1   : > { %v1302_v33 = vmul.f32 %v1300_v13, %v1296_v48  ;;  %v1368_v0 = vmul.f32 %v1367_v41, %v1361_v42 }
 0x2a2   : > { %1767 = vrot.lane.b32.xlu1 %v4967_v5, %s4240_s27 }
 0x2a3   : > { %v1304_v5 = vadd.f32 %v1302_v33, %v1285_v37  ;;  %v1370_v10 = vadd.f32 %v1368_v0, %v1358_v36  ;;  %v1466_v37 = vrot.slane %v4685_v34, %v4591_v47 }
 0x2a4   : > { %v1373_v40 = vpop.permute.xlu0 %1372  ;;  %v1308_v46 = vpop.permute.xlu1 %1307 }
 0x2a5   : > { %v1314_v11 = vmul.f32 %v1312_v58, %v1308_v46  ;;  %v1380_v2 = vmul.f32 %v1379_v26, %v1373_v40 }
 0x2a7   : > { %v1316_v51 = vadd.f32 %v1314_v11, %v1304_v5  ;;  %v1382_v58 = vadd.f32 %v1380_v2, %v1370_v10  ;;  %v1497_v2 = vrot.slane %v4685_v34, %v4426_v22 }
 0x2a8   : > { %v1393_v3 = vpop.permute.xlu0 %1392  ;;  %v1320_v13 = vpop.permute.xlu1 %1319 }
 0x2a9   : > { %v1326_v8 = vmul.f32 %v1324_v53, %v1320_v13  ;;  %v1400_v7 = vmul.f32 %v1399_v31, %v1393_v3 }
 0x2ab   : > { %v1328_v49 = vadd.f32 %v1326_v8, %v1316_v51  ;;  %v1402_v27 = vadd.f32 %v1400_v7, %v1382_v58  ;;  %v1509_v8 = vrot.slane %v4685_v34, %v4604_v9 }
 0x2ac   : > { %v1405_v44 = vpop.permute.xlu0 %1404  ;;  %v1351_v19 = vpop.permute.xlu1 %1350 }
 0x2ad   : > { %v1412_v35 = vmul.f32 %v1411_v21, %v1405_v44  ;;  %v1347_v24 = vadd.f32 %v4787_v61, %v1328_v49  ;;  %v1357_v33 = vmul.f32 %v1355_v38, %v1351_v19  ;;  %v1454_v61 = vrot.slane %v4685_v34, %v4435_v25 }
 0x2af   : > { %v1414_v18 = vadd.f32 %v1412_v35, %v1402_v27  ;;  %v1359_v20 = vadd.f32 %v1357_v33, %v1347_v24 }
 0x2b0   : > { %v1417_v42 = vpop.permute.xlu0 %1416  ;;  %v1363_v48 = vpop.permute.xlu1 %1362 }
 0x2b1   : > { %v1424_v57 = vmul.f32 %v1423_v6, %v1417_v42  ;;  %v1369_v17 = vmul.f32 %v1367_v41, %v1363_v48  ;;  %v1521_v48 = vrot.slane %v4685_v34, %v4457_v30 }
 0x2b3   : > { %v1426_v29 = vadd.f32 %v1424_v57, %v1414_v18  ;;  %v1371_v32 = vadd.f32 %v1369_v17, %v1359_v20 }
 0x2b4   : > { %v1448_v15 = vpop.permute.xlu0 %1447  ;;  %v1375_v53 = vpop.permute.xlu1 %1374 }
 0x2b5   : > { %v1445_v14 = vadd.f32 %v4790_v50, %v1426_v29  ;;  %v1381_v54 = vmul.f32 %v1379_v26, %v1375_v53  ;;  %v1455_v3 = vmul.f32 %v1454_v61, %v1448_v15  ;;  %v1478_v50 = vrot.slane %v4685_v34, %v4598_v60 }
 0x2b7   : > { %v1383_v13 = vadd.f32 %v1381_v54, %v1371_v32  ;;  %v1457_v10 = vadd.f32 %v1455_v3, %v1445_v14 }
 0x2b8   : > { %v1460_v40 = vpop.permute.xlu0 %1459  ;;  %v1395_v46 = vpop.permute.xlu1 %1394 }
 0x2b9   : > { %v1401_v11 = vmul.f32 %v1399_v31, %v1395_v46  ;;  %v1467_v41 = vmul.f32 %v1466_v37, %v1460_v40 }
 0x2bb   : > { %v1403_v36 = vadd.f32 %v1401_v11, %v1383_v13  ;;  %v1469_v44 = vadd.f32 %v1467_v41, %v1457_v10  ;;  %v1607_v10 = vrot.slane %v4706_v43, %v4426_v22 }
 0x2bc   : > { %v1472_v0 = vpop.permute.xlu0 %1471  ;;  %v1407_v5 = vpop.permute.xlu1 %1406 }
 0x2bd   : > { %v1413_v38 = vmul.f32 %v1411_v21, %v1407_v5  ;;  %v1479_v31 = vmul.f32 %v1478_v50, %v1472_v0  ;;  %v1564_v0 = vrot.slane %v4706_v43, %v4435_v25 }
 0x2bf   : > { %v1415_v7 = vadd.f32 %v1413_v38, %v1403_v36  ;;  %v1481_v21 = vadd.f32 %v1479_v31, %v1469_v44 }
 0x2c0   : > { %v1491_v51 = vpop.permute.xlu0 %1490  ;;  %v1419_v26 = vpop.permute.xlu1 %1418 }
 0x2c1   : > { %v1425_v49 = vmul.f32 %v1423_v6, %v1419_v26  ;;  %v1498_v19 = vmul.f32 %v1497_v2, %v1491_v51  ;;  %v1595_v51 = vrot.slane %v4706_v43, %v4598_v60 }
 0x2c3   : > { %v1427_v58 = vadd.f32 %v1425_v49, %v1415_v7  ;;  %v1500_v18 = vadd.f32 %v1498_v19, %v1481_v21 }
 0x2c4   : > { %v1503_v35 = vpop.permute.xlu0 %1502  ;;  %v1450_v24 = vpop.permute.xlu1 %1449 }
 0x2c5   : > { %v1510_v27 = vmul.f32 %v1509_v8, %v1503_v35  ;;  %v1446_v42 = vadd.f32 %v4793_v55, %v1427_v58  ;;  %v1456_v17 = vmul.f32 %v1454_v61, %v1450_v24  ;;  %v1552_v55 = vrot.slane %v4706_v43, %v4586_v45 }
 0x2c7   : > { %v1512_v15 = vadd.f32 %v1510_v27, %v1500_v18  ;;  %v1458_v32 = vadd.f32 %v1456_v17, %v1446_v42  ;;  %v1619_v42 = vrot.slane %v4706_v43, %v4604_v9 }
 0x2c8   : > { %v1515_v57 = vpop.permute.xlu0 %1514  ;;  %v1462_v29 = vpop.permute.xlu1 %1461 }
 0x2c9   : > { %v1522_v53 = vmul.f32 %v1521_v48, %v1515_v57  ;;  %v1468_v46 = vmul.f32 %v1466_v37, %v1462_v29 }
 0x2cb   : > { %v1524_v33 = vadd.f32 %v1522_v53, %v1512_v15  ;;  %v1470_v34 = vadd.f32 %v1468_v46, %v1458_v32 }
 0x2cc   : > { %v1546_v14 = vpop.permute.xlu0 %1545  ;;  %v1474_v6 = vpop.permute.xlu1 %1473 }
 0x2cd   : > { %v1543_v40 = vadd.f32 %v4796_v62, %v1524_v33  ;;  %v1480_v11 = vmul.f32 %v1478_v50, %v1474_v6  ;;  %v1553_v38 = vmul.f32 %v1552_v55, %v1546_v14  ;;  %v1576_v62 = vrot.slane %v4706_v43, %v4591_v47 }
 0x2cf   : > { %v1482_v41 = vadd.f32 %v1480_v11, %v1470_v34  ;;  %v1555_v31 = vadd.f32 %v1553_v38, %v1543_v40  ;;  %v1662_v34 = vrot.slane %v4730_v52, %v4586_v45 }
 0x2d0   : > { %v1558_v20 = vpop.permute.xlu0 %1557  ;;  %v1493_v54 = vpop.permute.xlu1 %1492 }
 0x2d1   : > { %v1499_v5 = vmul.f32 %v1497_v2, %v1493_v54  ;;  %v1565_v37 = vmul.f32 %v1564_v0, %v1558_v20 }
 0x2d3   : > { %v1501_v36 = vadd.f32 %v1499_v5, %v1482_v41  ;;  %v1567_v44 = vadd.f32 %v1565_v37, %v1555_v31  ;;  %v1693_v37 = vrot.slane %v4730_v52, %v4591_v47 }
 0x2d4   : > { %v1570_v3 = vpop.permute.xlu0 %1569  ;;  %v1505_v13 = vpop.permute.xlu1 %1504 }
 0x2d5   : > { %v1511_v61 = vmul.f32 %v1509_v8, %v1505_v13  ;;  %v1577_v2 = vmul.f32 %v1576_v62, %v1570_v3 }
 0x2d7   : > { %v1513_v7 = vadd.f32 %v1511_v61, %v1501_v36  ;;  %v1579_v8 = vadd.f32 %v1577_v2, %v1567_v44  ;;  %v1705_v36 = vrot.slane %v4730_v52, %v4598_v60 }
 0x2d8   : > { %v1589_v26 = vpop.permute.xlu0 %1588  ;;  %v1517_v50 = vpop.permute.xlu1 %1516 }
 0x2d9   : > { %v1523_v49 = vmul.f32 %v1521_v48, %v1517_v50  ;;  %v1596_v19 = vmul.f32 %v1595_v51, %v1589_v26 }
 0x2db   : > { %v1525_v58 = vadd.f32 %v1523_v49, %v1513_v7  ;;  %v1598_v18 = vadd.f32 %v1596_v19, %v1579_v8 }
 0x2dc   : > { %v1601_v35 = vpop.permute.xlu0 %1600  ;;  %v1548_v24 = vpop.permute.xlu1 %1547 }
 0x2dd   : > { %v1608_v21 = vmul.f32 %v1607_v10, %v1601_v35  ;;  %v1544_v27 = vadd.f32 %v4799_v28, %v1525_v58  ;;  %v1554_v6 = vmul.f32 %v1552_v55, %v1548_v24  ;;  %v1650_v28 = vrot.slane %v4706_v43, %v4429_v23 }
 0x2de   : > { %v1717_v24 = vrot.slane %v4730_v52, %v4426_v22 }
 0x2df   : > { %v1610_v15 = vadd.f32 %v1608_v21, %v1598_v18  ;;  %v1556_v54 = vadd.f32 %v1554_v6, %v1544_v27 }
 0x2e0   : > { %v1613_v57 = vpop.permute.xlu0 %1612  ;;  %v1560_v29 = vpop.permute.xlu1 %1559 }
 0x2e1   : > { %v1620_v53 = vmul.f32 %v1619_v42, %v1613_v57  ;;  %v1566_v40 = vmul.f32 %v1564_v0, %v1560_v29 }
 0x2e3   : > { %v1622_v33 = vadd.f32 %v1620_v53, %v1610_v15  ;;  %v1568_v11 = vadd.f32 %v1566_v40, %v1556_v54 }
 0x2e4   : > { %v1644_v14 = vpop.permute.xlu0 %1643  ;;  %v1572_v48 = vpop.permute.xlu1 %1571 }
 0x2e5   : > { %v1641_v17 = vadd.f32 %v4814_v1, %v1622_v33  ;;  %v1578_v32 = vmul.f32 %v1576_v62, %v1572_v48  ;;  %v1651_v38 = vmul.f32 %v1650_v28, %v1644_v14  ;;  %v1674_v1 = vrot.slane %v4730_v52, %v4435_v25 }
 0x2e7   : > { %v1580_v41 = vadd.f32 %v1578_v32, %v1568_v11  ;;  %v1653_v26 = vadd.f32 %v1651_v38, %v1641_v17  ;;  %v3734_v32 = vld [vmem:[%s6241_s5 + $0x30] ss:$0 sm:$0xff] }
 0x2e8   : > { %v1656_v46 = vpop.permute.xlu0 %1655  ;;  %v1591_v20 = vpop.permute.xlu1 %1590 }
 0x2e9   : > { %v1597_v5 = vmul.f32 %v1595_v51, %v1591_v20  ;;  %v1663_v0 = vmul.f32 %v1662_v34, %v1656_v46 }
 0x2eb   : > { %v1599_v61 = vadd.f32 %v1597_v5, %v1580_v41  ;;  %v1665_v2 = vadd.f32 %v1663_v0, %v1653_v26 }
 0x2ec   : > { %v1668_v3 = vpop.permute.xlu0 %1667  ;;  %v1603_v13 = vpop.permute.xlu1 %1602 }
 0x2ed   : > { %v1609_v55 = vmul.f32 %v1607_v10, %v1603_v13  ;;  %v1675_v51 = vmul.f32 %v1674_v1, %v1668_v3 }
 0x2ef   : > { %v1611_v50 = vadd.f32 %v1609_v55, %v1599_v61  ;;  %v1677_v10 = vadd.f32 %v1675_v51, %v1665_v2 }
 0x2f0   : > { %v1687_v43 = vpop.permute.xlu0 %1686  ;;  %v1615_v62 = vpop.permute.xlu1 %1614 }
 0x2f1   : > { %v1621_v31 = vmul.f32 %v1619_v42, %v1615_v62  ;;  %v1694_v7 = vmul.f32 %v1693_v37, %v1687_v43  ;;  %v1748_v42 = vrot.slane %v4730_v52, %v4457_v30 }
 0x2f3   : > { %v1623_v49 = vadd.f32 %v1621_v31, %v1611_v50  ;;  %v1696_v8 = vadd.f32 %v1694_v7, %v1677_v10  ;;  %v6293_v50 = vrot.slane %v4808_v12, 2 }
 0x2f4   : > { %v1699_v44 = vpop.permute.xlu0 %1698  ;;  %v1646_v19 = vpop.permute.xlu1 %1645 }
 0x2f5   : > { %v1706_v58 = vmul.f32 %v1705_v36, %v1699_v44  ;;  %v1642_v35 = vadd.f32 %v4818_v16, %v1623_v49  ;;  %v1652_v33 = vmul.f32 %v1650_v28, %v1646_v19  ;;  %v1760_v16 = vrot.slane %v4730_v52, %v4429_v23 }
 0x2f7   : > { %v1708_v18 = vadd.f32 %v1706_v58, %v1696_v8  ;;  %v1654_v46 = vadd.f32 %v1652_v33, %v1642_v35  ;;  %v1788_v35 = vld [vmem:[%s6243_s7 + $0x10] sm:$0xff] }
 0x2f8   : > { %v1711_v21 = vpop.permute.xlu0 %1710  ;;  %v1658_v27 = vpop.permute.xlu1 %1657  ;;  %v1796_v33 = vld [vmem:[%s6243_s7 + $0x50] sm:$0xff] }
 0x2f9   : > { %v1718_v57 = vmul.f32 %v1717_v24, %v1711_v21  ;;  %v1664_v48 = vmul.f32 %v1662_v34, %v1658_v27  ;;  %v1790_v27 = vld [vmem:[%s6243_s7 + $0x20] sm:$0xff] }
 0x2fb   : > { %v1720_v29 = vadd.f32 %v1718_v57, %v1708_v18  ;;  %v1666_v11 = vadd.f32 %v1664_v48, %v1654_v46  ;;  %v1791_v18 = vld [vmem:[%s6243_s7 + $0x28] sm:$0xff]  ;;  %v1798_v48 = vld [vmem:[%s6243_s7 + $0x60] sm:$0xff]  ;;  %v1801_v46 = vld [vmem:[%s6243_s7 + $0x78] sm:$0xff] }
 0x2fc   : > { %v1742_v15 = vpop.permute.xlu0 %1741  ;;  %v1670_v53 = vpop.permute.xlu1 %1669  ;;  %v4081_v57 = vpack.c.bf16 %v1791_v18, %v1790_v27 }
 0x2fd   : > { %v1739_v14 = vadd.f32 %v4824_v59, %v1720_v29  ;;  %v1749_v6 = vmul.f32 %v1748_v42, %v1742_v15  ;;  %v1676_v20 = vmul.f32 %v1674_v1, %v1670_v53  ;;  %v1728_v59 = vmul.f32 0.0, %v4745_v63  ;;  %v3735_v1 = vld [vmem:[%s6242_s6] ss:$0 sm:$0xff]  ;;  %v1792_v29 = vld [vmem:[%s6243_s7 + $0x30] sm:$0xff] }
 0x2fe   : > { %v1794_v53 = vld [vmem:[%s6243_s7 + $0x40] sm:$0xff] }
 0x2ff   : > { %v1751_v5 = vadd.f32 %v1749_v6, %v1739_v14  ;;  %v1678_v38 = vadd.f32 %v1676_v20, %v1666_v11  ;;  %v1735_v43 = vrot.slane %v1728_v59, 2  ;;  %v1797_v14 = vld [vmem:[%s6243_s7 + $0x58] sm:$0xff]  ;;  %v1799_v6 = vld [vmem:[%s6243_s7 + $0x68] sm:$0xff] }
 0x300   : > { %v1754_v17 = vpop.permute.xlu0 %1753  ;;  %v1689_v40 = vpop.permute.xlu1 %1688 }
 0x301   : > { %v1761_v54 = vmul.f32 %v1760_v16, %v1754_v17  ;;  %v1695_v3 = vmul.f32 %v1693_v37, %v1689_v40  ;;  %v1736_v63 = vsel %vm854_vm4, %v6293_v50, %v1735_v43  ;;  %v4097_v17 = vpack.c.bf16 %v1799_v6, %v1798_v48  ;;  %v1800_v40 = vld [vmem:[%s6243_s7 + $0x70] sm:$0xff] }
 0x302   : > { %v4101_v20 = vpack.c.bf16 %v1801_v46, %v1800_v40  ;;  %v5197_v46 = vld [vmem:[%s6246_s10 + $0x8] sm:$0xff] }
 0x303   : > { %v1763_v52 = vadd.f32 %v1761_v54, %v1751_v5  ;;  %v1697_v55 = vadd.f32 %v1695_v3, %v1678_v38  ;;  %v3736_v54 = vld [vmem:[%s6245_s9] ss:$0 sm:$0xff] }
 0x304   : > { %v1766_v28 = vpop.permute.xlu0 %1765  ;;  %v1701_v13 = vpop.permute.xlu1 %1700 }
 0x305   : > { %v1773_v34 = vmul.f32 %v3734_v32, %v1766_v28  ;;  %v1707_v41 = vmul.f32 %v1705_v36, %v1701_v13 }
 0x307   : > { %v1775_v0 = vadd.f32 %v1773_v34, %v1763_v52  ;;  %v1709_v62 = vadd.f32 %v1707_v41, %v1697_v55 }
 0x308   : > { %v1713_v61 = vpop.permute.xlu1 %1712 }
 0x309   : > { %v1719_v26 = vmul.f32 %v1717_v24, %v1713_v61  ;;  %v1784_v51 = vadd.f32 %v3735_v1, %v1775_v0  ;;  %v1789_v24 = vld [vmem:[%s6243_s7 + $0x18] sm:$0xff] }
 0x30a   : > { %v4077_v21 = vpack.c.bf16 %v1789_v24, %v1788_v35 }
 0x30b   : > { %v1721_v37 = vadd.f32 %v1719_v26, %v1709_v62  ;;  %3901 = vmatprep.mubr.f32.mxu1 %v1784_v51  ;;  %v2097_v26 = vld [vmem:[%s6247_s11 + $0x18] sm:$0xff] }
 0x30c   : > { %v1744_v31 = vpop.permute.xlu1 %1743 }
 0x30d   : > { %v1740_v2 = vadd.f32 %v1736_v63, %v1721_v37  ;;  %v1750_v36 = vmul.f32 %v1748_v42, %v1744_v31  ;;  %v1793_v42 = vld [vmem:[%s6243_s7 + $0x38] sm:$0xff] }
 0x30e   : > { %v4085_v15 = vpack.c.bf16 %v1793_v42, %v1792_v29 }
 0x30f   : > { %v1752_v44 = vadd.f32 %v1750_v36, %v1740_v2 }
 0x310   : > { %v1756_v7 = vpop.permute.xlu1 %1755 }
 0x311   : > { %v1762_v49 = vmul.f32 %v1760_v16, %v1756_v7  ;;  %v4093_v16 = vpack.c.bf16 %v1797_v14, %v1796_v33 }
 0x313   : > { %v1764_v10 = vadd.f32 %v1762_v49, %v1752_v44 }
 0x314   : > { %v1768_v19 = vpop.permute.xlu1 %1767 }
 0x315   : > { %v1774_v58 = vmul.f32 %v3734_v32, %v1768_v19 }
 0x317   : > { %v1776_v12 = vadd.f32 %v1774_v58, %v1764_v10 }
 0x319   : > { %v1785_v8 = vadd.f32 %v3735_v1, %v1776_v12 }
 0x31b   : > { %3902 = vmatmul.mubr.f32.vlgmr.msra.gmra.mrb[0].mxu1 %v1785_v8 }
 0x31c   : > { %4076 = vmatpush3.bf16.msra.mxu1 %v5020_v56  ;;  %3936 = vmatprep.mubr.f32.mxu1 %v4652_v4  ;;  %v1795_v4 = vld [vmem:[%s6243_s7 + $0x48] sm:$0xff] }
 0x31d   : > { %4078 = vmatprep.subr.bf16.mxu1 %v4077_v21  ;;  %v4089_v56 = vpack.c.bf16 %v1795_v4, %v1794_v53 }
 0x320   : > { %4080 = vmatpush3.bf16.msra.mxu1 %v4077_v21 }
 0x321   : > { %4082 = vmatprep.subr.bf16.mxu1 %v4081_v57 }
 0x324   : > { %4084 = vmatpush3.bf16.msra.mxu1 %v4081_v57 }
 0x325   : > { %4086 = vmatprep.subr.bf16.mxu1 %v4085_v15 }
 0x328   : > { %4088 = vmatpush3.bf16.msra.mxu1 %v4085_v15 }
 0x329   : > { %4090 = vmatprep.subr.bf16.mxu1 %v4089_v56 }
 0x32c   : > { %4092 = vmatpush3.bf16.msra.mxu1 %v4089_v56 }
 0x32d   : > { %4094 = vmatprep.subr.bf16.mxu1 %v4093_v16 }
 0x330   : > { %4096 = vmatpush3.bf16.msra.mxu1 %v4093_v16 }
 0x331   : > { %4098 = vmatprep.subr.bf16.mxu1 %v4097_v17 }
 0x334   : > { %4100 = vmatpush3.bf16.msra.mxu1 %v4097_v17 }
 0x335   : > { %4102 = vmatprep.subr.bf16.mxu1 %v4101_v20 }
 0x338   : > { %4104 = vmatpush3.bf16.msra.mxu1 %v4101_v20 }
 0x33b   : > { %3937 = vmatmul.mubr.f32.vlgmr.msra.gmra.mrb[0].mxu1 %v4695_v39  ;;  %v6296_v39 = vlaneseq }
 0x33d   : > { %v1978_v28 = vand.u32 127, %v6296_v39 }
 0x33f   : > { %v1987_v59 = vand.u32 4, %v1978_v28  ;;  %v2001_v62 = vand.u32 2, %v1978_v28  ;;  %v2015_v8 = vand.u32 1, %v1978_v28  ;;  %v2053_v29 = vand.u32 7, %v1978_v28  ;;  %v2096_v28 = vld [vmem:[%s6247_s11 + $0x10] sm:$0xff] }
 0x341   : > { %vm1988_vm8 = vcmp.eq.s32.totalorder %v1987_v59, 0  ;;  %vm5164_vm9 = vcmp.eq.s32.totalorder %v2001_v62, 0  ;;  %vm5176_vm10 = vcmp.eq.s32.totalorder %v2015_v8, 0  ;;  %vm5182_vm11 = vcmp.lt.s32.totalorder %v2053_v29, 4  ;;  %v2090_v62 = vld [vmem:[%s6246_s10 + $0x18] sm:$0xff] }
 0x342   : > { %v5282_v8 = vrot.slane %v2090_v62, %v4429_v23 }
 0x40e   : > { %v3938_v32 = vpop.f32.mrb[0].mxu1 }
 0x40f   : > { %v1959_v11 = vpop.f32.mrb[1].mxu1  ;;  %v5155_v3 = vadd.f32 %v3938_v32, %v3736_v54  ;;  %v5207_v32 = vld [vmem:[%s6247_s11 + $0x8] sm:$0xff] }
 0x410   : > { %v5151_v5 = vadd.f32 %v3736_v54, %v1959_v11  ;;  %v5202_v54 = vld [vmem:[%s6246_s10 + $0x10] sm:$0xff] }
 0x411   : > { %6295 = vst [vmem:[#allocation5_spill] sm:$0xff] %v5155_v3 }
 0x412   : > { %6294 = vst [vmem:[#allocation4_spill] sm:$0xff] %v5151_v5  ;;  %1983 = vrot.lane.b32.xlu1 %v5151_v5, %s4241_s29  ;;  %1979 = vrot.lane.b32.xlu0 %v5151_v5, %s4242_s0 }
 0x416   : > { %1985 = vrot.lane.b32.xlu1 %v5155_v3, %s4241_s29  ;;  %1981 = vrot.lane.b32.xlu0 %v5155_v3, %s4242_s0  ;;  %s6320_s29 = smov 112  }
 0x484   : > { %v1984_v13 = vpop.permute.xlu1 %1983  ;;  %v1980_v38 = vpop.permute.xlu0 %1979 }
 0x485   : > { %v1989_v0 = vsel %vm1988_vm8, %v1980_v38, %v1984_v13  ;;  %v5214_v38 = vrot.slane %v5197_v46, %v4591_v47 }
 0x486   : > { %v1991_v61 = vadd.f32 %v1989_v0, %v5151_v5  ;;  %v2023_v43 = vmax.f32 %v5151_v5, %v1989_v0 }
 0x488   : > { %v1986_v52 = vpop.permute.xlu1 %1985  ;;  %v1982_v34 = vpop.permute.xlu0 %1981 }
 0x489   : > { %v1990_v41 = vsel %vm1988_vm8, %v1982_v34, %v1986_v52  ;;  %v5220_v34 = vrot.slane %v5207_v32, %v4591_v47 }
 0x48a   : > { %v1992_v1 = vadd.f32 %v1990_v41, %v5155_v3  ;;  %v2024_v55 = vmax.f32 %v5155_v3, %v1990_v41  ;;  %v5224_v41 = vrot.slane %v5202_v54, %v4435_v25 }
 0x48c   : > { %1999 = vrot.lane.b32.xlu1 %v1992_v1, %s4243_s30  ;;  %1995 = vrot.lane.b32.xlu0 %v1992_v1, %s4244_s23 }
 0x490   : > { %2031 = vrot.lane.b32.xlu1 %v2024_v55, %s4243_s30  ;;  %2027 = vrot.lane.b32.xlu0 %v2024_v55, %s4244_s23 }
 0x494   : > { %1997 = vrot.lane.b32.xlu1 %v1991_v61, %s4243_s30  ;;  %1993 = vrot.lane.b32.xlu0 %v1991_v61, %s4244_s23 }
 0x498   : > { %2029 = vrot.lane.b32.xlu1 %v2023_v43, %s4243_s30  ;;  %2025 = vrot.lane.b32.xlu0 %v2023_v43, %s4244_s23  ;;  %s6354_s23 = sshll.u32 %s6356_s19, 3 }
 0x499   : > { %s550_s27 = scalar_lea.vmem %s6253_s17, %s6354_s23 }
 0x4fe   : > { %v2000_v51 = vpop.permute.xlu1 %1999  ;;  %v1996_v37 = vpop.permute.xlu0 %1995 }
 0x4ff   : > { %v2004_v50 = vsel %vm5164_vm9, %v1996_v37, %v2000_v51 }
 0x500   : > { %v2006_v63 = vadd.f32 %v2004_v50, %v1992_v1 }
 0x502   : > { %v2032_v31 = vpop.permute.xlu1 %2031  ;;  %2013 = vrot.lane.b32.xlu1 %v2006_v63, %s4245_s20  ;;  %2009 = vrot.lane.b32.xlu0 %v2006_v63, %s4246_s25  ;;  %v2028_v2 = vpop.permute.xlu0 %2027 }
 0x503   : > { %v2034_v36 = vsel %vm5164_vm9, %v2028_v2, %v2032_v31 }
 0x504   : > { %v2036_v7 = vmax.f32 %v2024_v55, %v2034_v36  ;;  %v5230_v55 = vrot.slane %v2096_v28, %v4435_v25 }
 0x506   : > { %v1998_v49 = vpop.permute.xlu1 %1997  ;;  %2043 = vrot.lane.b32.xlu1 %v2036_v7, %s4245_s20  ;;  %2039 = vrot.lane.b32.xlu0 %v2036_v7, %s4246_s25  ;;  %v1994_v44 = vpop.permute.xlu0 %1993 }
 0x507   : > { %v2003_v19 = vsel %vm5164_vm9, %v1994_v44, %v1998_v49  ;;  %v2098_v49 = vld [vmem:[%s6247_s11 + $0x20] sm:$0xff] }
 0x508   : > { %v2005_v10 = vadd.f32 %v2003_v19, %v1991_v61  ;;  %v5264_v19 = vrot.slane %v2090_v62, %v4586_v45 }
 0x50a   : > { %v2030_v58 = vpop.permute.xlu1 %2029  ;;  %2011 = vrot.lane.b32.xlu1 %v2005_v10, %s4245_s20  ;;  %2007 = vrot.lane.b32.xlu0 %v2005_v10, %s4246_s25  ;;  %v2026_v35 = vpop.permute.xlu0 %2025 }
 0x50b   : > { %v2033_v24 = vsel %vm5164_vm9, %v2026_v35, %v2030_v58  ;;  %v2092_v58 = vld [vmem:[%s6246_s10 + $0x28] sm:$0xff] }
 0x50c   : > { %v2035_v12 = vmax.f32 %v2023_v43, %v2033_v24 }
 0x50e   : > { %2041 = vrot.lane.b32.xlu1 %v2035_v12, %s4245_s20  ;;  %2037 = vrot.lane.b32.xlu0 %v2035_v12, %s4246_s25  ;;  %s6303_s20 = smov 24   ;;  %s6304_s25 = smov 16  }
 0x574   : > { %v2014_v27 = vpop.permute.xlu1 %2013  ;;  %v2010_v18 = vpop.permute.xlu0 %2009 }
 0x575   : > { %v2018_v57 = vsel %vm5176_vm10, %v2010_v18, %v2014_v27  ;;  %v5290_v27 = vrot.slane %v2097_v26, %v4429_v23 }
 0x576   : > { %v2020_v42 = vadd.f32 %v2018_v57, %v2006_v63  ;;  %v5296_v57 = vrot.slane %v2098_v49, %v4457_v30 }
 0x578   : > { %v2044_v15 = vpop.permute.xlu1 %2043  ;;  %v2040_v53 = vpop.permute.xlu0 %2039  ;;  %v2022_v33 = vmul.f32 0.125, %v2020_v42 }
 0x579   : > { %v2046_v56 = vsel %vm5176_vm10, %v2040_v53, %v2044_v15  ;;  %v5302_v53 = vrot.slane %v2092_v58, %v4604_v9 }
 0x57a   : > { %v2048_v14 = vmax.f32 %v2036_v7, %v2046_v56  ;;  %v2091_v7 = vld [vmem:[%s6246_s10 + $0x20] sm:$0xff] }
 0x57b   : > { %v5293_v18 = vrot.slane %v2091_v7, %v4457_v30 }
 0x57c   : > { %v2063_v16 = vsel %vm5182_vm11, %v2022_v33, %v2048_v14  ;;  %v2065_v48 = vsel %vm5182_vm11, %v2048_v14, %v2022_v33  ;;  %v2012_v6 = vpop.permute.xlu1 %2011  ;;  %v2008_v17 = vpop.permute.xlu0 %2007 }
 0x57d   : > { %v2017_v40 = vsel %vm5176_vm10, %v2008_v17, %v2012_v6  ;;  %v2070_v20 = vrot.slane %v2063_v16, 5  ;;  %v2080_v11 = vrot.slane %v2065_v48, 5 }
 0x57e   : > { %v2019_v39 = vadd.f32 %v2017_v40, %v2005_v10  ;;  %v5267_v10 = vrot.slane %v2097_v26, %v4586_v45 }
 0x57f   : > { %v5227_v1 = vsel %vm2068_vm12, %v2070_v20, 0.0  ;;  %v5233_v0 = vsel %vm2068_vm12, %v2080_v11, 0.0 }
 0x580   : > { %v2042_v13 = vpop.permute.xlu1 %2041  ;;  %v2038_v59 = vpop.permute.xlu0 %2037  ;;  %v2021_v61 = vmul.f32 0.125, %v2019_v39  ;;  %v2357_v51 = vmul.f32 %v5214_v38, %v5227_v1  ;;  %v2376_v63 = vmul.f32 %v5220_v34, %v5233_v0  ;;  %v5251_v31 = vmul.f32 %v5224_v41, %v5227_v1 }
 0x581   : > { %v2045_v52 = vsel %vm5176_vm10, %v2038_v59, %v2042_v13  ;;  %v5261_v44 = vmul.f32 %v5230_v55, %v5233_v0  ;;  %v2660_v14 = vrot.slane %v5227_v1, 3  ;;  %v2679_v40 = vrot.slane %v5233_v0, 3 }
 0x582   : > { %v2047_v43 = vmax.f32 %v2035_v12, %v2045_v52  ;;  %v2364_v29 = vrot.slane %v2357_v51, 1  ;;  %v2383_v42 = vrot.slane %v2376_v63, 1  ;;  %v2560_v15 = vrot.slane %v5251_v31, 2 }
 0x583   : > { %v2579_v4 = vrot.slane %v5261_v44, 2  ;;  %v3052_v39 = vrot.slane %v5227_v1, 5  ;;  %v3071_v59 = vrot.slane %v5233_v0, 5  ;;  %v5335_v52 = vmul.f32 %v5264_v19, %v5227_v1 }
 0x584   : > { %v2062_v37 = vsel %vm5182_vm11, %v2021_v61, %v2047_v43  ;;  %v2064_v50 = vsel %vm5182_vm11, %v2047_v43, %v2021_v61 }
 0x585   : > { %v2069_v2 = vrot.slane %v2062_v37, 5  ;;  %v2079_v36 = vrot.slane %v2064_v50, 5 }
 0x587   : > { %v5273_v35 = vsel %vm2068_vm12, %v2069_v2, %v2070_v20  ;;  %v5276_v24 = vsel %vm2068_vm12, 0.0, %v2069_v2  ;;  %v5279_v12 = vsel %vm2068_vm12, 0.0, %v2079_v36  ;;  %v5285_v21 = vsel %vm2068_vm12, %v2079_v36, %v2080_v11 }
 0x588   : > { %2113 = vrot.lane.b32.xlu1 %v5279_v12, %s6303_s20  ;;  %2101 = vrot.lane.b32.xlu0 %v5276_v24, %s6303_s20  ;;  %v2356_v56 = vmul.f32 %v5214_v38, %v5273_v35  ;;  %v6276_v33 = vrot.slane %v5273_v35, 2  ;;  %v2375_v16 = vmul.f32 %v5220_v34, %v5285_v21  ;;  %v2461_v48 = vrot.slane %v5276_v24, 2 }
 0x589   : > { %v6275_v6 = vrot.slane %v5285_v21, 2  ;;  %v2480_v17 = vrot.slane %v5279_v12, 2  ;;  %v2856_v20 = vrot.slane %v5227_v1, 4  ;;  %v2875_v11 = vrot.slane %v5233_v0, 4 }
 0x58a   : > { %v5325_v28 = vsel %vm854_vm4, %v2461_v48, %v6276_v33  ;;  %v2552_v61 = vmul.f32 %v5224_v41, %v5273_v35  ;;  %v2658_v43 = vrot.slane %v5273_v35, 3  ;;  %v2657_v62 = vrot.slane %v5276_v24, 3 }
 0x58b   : > { %v5330_v13 = vsel %vm854_vm4, %v2480_v17, %v6275_v6  ;;  %v2677_v26 = vrot.slane %v5285_v21, 3  ;;  %v2676_v51 = vrot.slane %v5279_v12, 3  ;;  %v2362_v37 = vrot.slane %v2356_v56, 1 }
 0x58c   : > { %2115 = vrot.lane.b32.xlu1 %v5285_v21, %s6303_s20  ;;  %2103 = vrot.lane.b32.xlu0 %v5273_v35, %s6303_s20  ;;  %v2381_v50 = vrot.slane %v2375_v16, 1  ;;  %v2355_v63 = vmul.f32 %v5214_v38, %v5276_v24  ;;  %v5348_v31 = vsel %vm929_vm5, %v2658_v43, %v2660_v14  ;;  %v5351_v2 = vsel %vm929_vm5, %v2657_v62, %v2658_v43 }
 0x58d   : > { %v5354_v36 = vsel %vm929_vm5, %v2677_v26, %v2679_v40  ;;  %v2374_v7 = vmul.f32 %v5220_v34, %v5279_v12  ;;  %v5361_v38 = vsel %vm929_vm5, %v2676_v51, %v2677_v26  ;;  %v5364_v49 = vsel %vm779_vm3, %v2362_v37, %v2364_v29 }
 0x58e   : > { %v5367_v44 = vsel %vm779_vm3, %v2381_v50, %v2383_v42  ;;  %v2361_v58 = vrot.slane %v2355_v63, 1  ;;  %v2854_v14 = vrot.slane %v5273_v35, 4  ;;  %v2853_v16 = vrot.slane %v5276_v24, 4 }
 0x58f   : > { %v2380_v56 = vrot.slane %v2374_v7, 1  ;;  %v2873_v34 = vrot.slane %v5285_v21, 4  ;;  %v2872_v17 = vrot.slane %v5279_v12, 4  ;;  %v2558_v40 = vrot.slane %v2552_v61, 2 }
 0x590   : > { %2127 = vrot.lane.b32.xlu1 %v5273_v35, %s6304_s25  ;;  %2125 = vrot.lane.b32.xlu0 %v5276_v24, %s6304_s25  ;;  %v5373_v48 = vsel %vm779_vm3, %v2361_v58, %v2362_v37  ;;  %v2571_v29 = vmul.f32 %v5230_v55, %v5285_v21  ;;  %v5384_v43 = vsel %vm1004_vm6, %v2854_v14, %v2856_v20  ;;  %v3050_v63 = vrot.slane %v5273_v35, 5 }
 0x591   : > { %v5381_v42 = vsel %vm779_vm3, %v2380_v56, %v2381_v50  ;;  %v5387_v62 = vsel %vm1004_vm6, %v2853_v16, %v2854_v14  ;;  %v5390_v26 = vsel %vm1004_vm6, %v2873_v34, %v2875_v11  ;;  %v5395_v61 = vsel %vm1004_vm6, %v2872_v17, %v2873_v34 }
 0x592   : > { %v5398_v51 = vsel %vm854_vm4, %v2558_v40, %v2560_v15  ;;  %v2577_v37 = vrot.slane %v2571_v29, 2  ;;  %v2551_v20 = vmul.f32 %v5224_v41, %v5276_v24  ;;  %v2570_v50 = vmul.f32 %v5230_v55, %v5279_v12 }
 0x593   : > { %v3049_v11 = vrot.slane %v5276_v24, 5  ;;  %v2768_v7 = vmul.f32 %v5267_v10, %v5233_v0  ;;  %v3069_v15 = vrot.slane %v5285_v21, 5  ;;  %v3068_v14 = vrot.slane %v5279_v12, 5 }
 0x594   : > { %2139 = vrot.lane.b32.xlu1 %v5285_v21, %s6304_s25  ;;  %2137 = vrot.lane.b32.xlu0 %v5279_v12, %s6304_s25  ;;  %v5409_v58 = vsel %vm854_vm4, %v2577_v37, %v2579_v4  ;;  %v2557_v56 = vrot.slane %v2551_v20, 2  ;;  %v2576_v41 = vrot.slane %v2570_v50, 2  ;;  %v5416_v55 = vsel %vm2068_vm12, %v3050_v63, %v3052_v39 }
 0x595   : > { %v5419_v16 = vsel %vm2068_vm12, %v3049_v11, %v3050_v63  ;;  %v3248_v34 = vrot.slane %v5227_v1, 6  ;;  %v5428_v17 = vsel %vm2068_vm12, %v3069_v15, %v3071_v59  ;;  %v5431_v29 = vsel %vm2068_vm12, %v3068_v14, %v3069_v15 }
 0x596   : > { %v5425_v4 = vsel %vm854_vm4, %v2557_v56, %v2558_v40  ;;  %v2748_v39 = vmul.f32 %v5264_v19, %v5273_v35  ;;  %v5436_v20 = vsel %vm854_vm4, %v2576_v41, %v2577_v37  ;;  %v2756_v50 = vrot.slane %v5335_v52, 3 }
 0x597   : > { %v2767_v63 = vmul.f32 %v5267_v10, %v5285_v21  ;;  %v3267_v40 = vrot.slane %v5233_v0, 6  ;;  %v2775_v56 = vrot.slane %v2768_v7, 3  ;;  %v2747_v59 = vmul.f32 %v5264_v19, %v5276_v24 }
 0x598   : > { %2151 = vrot.lane.b32.xlu1 %v5273_v35, %s6305_s18  ;;  %2149 = vrot.lane.b32.xlu0 %v5276_v24, %s6305_s18  ;;  %v2754_v11 = vrot.slane %v2748_v39, 3  ;;  %v2766_v15 = vmul.f32 %v5267_v10, %v5279_v12  ;;  %v3246_v14 = vrot.slane %v5273_v35, 6  ;;  %v3245_v52 = vrot.slane %v5276_v24, 6 }
 0x599   : > { %v2773_v37 = vrot.slane %v2767_v63, 3  ;;  %v3265_v41 = vrot.slane %v5285_v21, 6  ;;  %v2753_v19 = vrot.slane %v2747_v59, 3  ;;  %v3264_v10 = vrot.slane %v5279_v12, 6  ;;  %v2099_v63 = vld [vmem:[%s6247_s11 + $0x28] sm:$0xff] }
 0x59a   : > { %v5454_v7 = vsel %vm929_vm5, %v2754_v11, %v2756_v50  ;;  %v2772_v39 = vrot.slane %v2766_v15, 3  ;;  %v5464_v33 = vsel %vm708_vm2, %v3246_v14, %v3248_v34  ;;  %v5467_v5 = vsel %vm708_vm2, %v3245_v52, %v3246_v14 }
 0x59b   : > { %6306 = vst [vmem:[#allocation6_spill] sm:$0xff] %v5454_v7  ;;  %v5461_v6 = vsel %vm929_vm5, %v2773_v37, %v2775_v56  ;;  %6308 = vst [vmem:[#allocation8_spill] sm:$0xff] %v5464_v33  ;;  %v2945_v50 = vmul.f32 %v5282_v8, %v5227_v1  ;;  %v5472_v59 = vsel %vm929_vm5, %v2753_v19, %v2754_v11 }
 0x59c   : > { %2163 = vrot.lane.b32.xlu1 %v5285_v21, %s6305_s18  ;;  %2161 = vrot.lane.b32.xlu0 %v5279_v12, %s6305_s18  ;;  %6307 = vst [vmem:[#allocation7_spill] sm:$0xff] %v5461_v6  ;;  %6309 = vst [vmem:[#allocation9_spill] sm:$0xff] %v5467_v5  ;;  %v5475_v15 = vsel %vm929_vm5, %v2772_v39, %v2773_v37  ;;  %v5478_v3 = vsel %vm708_vm2, %v3265_v41, %v3267_v40 }
 0x59d   : > { %6310 = vst [vmem:[#allocation10_spill] sm:$0xff] %v5472_v59  ;;  %6311 = vst [vmem:[#allocation11_spill] sm:$0xff] %v5475_v15  ;;  %v5481_v56 = vsel %vm708_vm2, %v3264_v10, %v3265_v41  ;;  %v2944_v34 = vmul.f32 %v5282_v8, %v5273_v35  ;;  %v2943_v14 = vmul.f32 %v5282_v8, %v5276_v24  ;;  %v2952_v39 = vrot.slane %v2945_v50, 4 }
 0x59e   : > { %6312 = vst [vmem:[#allocation12_spill] sm:$0xff] %v5478_v3  ;;  %6313 = vst [vmem:[#allocation13_spill] sm:$0xff] %v5481_v56  ;;  %v2963_v11 = vmul.f32 %v5290_v27, %v5285_v21  ;;  %v3353_v37 = vrot.slane %v2099_v63, %v4604_v9  ;;  %v2964_v40 = vmul.f32 %v5290_v27, %v5233_v0 }
 0x59f   : > { %v2962_v52 = vmul.f32 %v5290_v27, %v5279_v12  ;;  %v3140_v41 = vmul.f32 %v5293_v18, %v5273_v35  ;;  %v3141_v8 = vmul.f32 %v5293_v18, %v5227_v1  ;;  %v2950_v19 = vrot.slane %v2944_v34, 4 }
 0x5a0   : > { %2191 = vrot.lane.b32.xlu1 %v5273_v35, %s6314_s1  ;;  %2189 = vrot.lane.b32.xlu0 %v5276_v24, %s6314_s1  ;;  %v2949_v10 = vrot.slane %v2943_v14, 4  ;;  %v2969_v56 = vrot.slane %v2963_v11, 4  ;;  %v2971_v63 = vrot.slane %v2964_v40, 4  ;;  %v3139_v6 = vmul.f32 %v5293_v18, %v5276_v24 }
 0x5a1   : > { %v2968_v3 = vrot.slane %v2962_v52, 4  ;;  %v3146_v5 = vrot.slane %v3140_v41, 5  ;;  %v3148_v33 = vrot.slane %v3141_v8, 5  ;;  %v5505_v15 = vsel %vm1004_vm6, %v2950_v19, %v2952_v39 }
 0x5a2   : > { %6315 = vst [vmem:[#allocation14_spill] sm:$0xff] %v5505_v15  ;;  %v5508_v27 = vsel %vm1004_vm6, %v2949_v10, %v2950_v19  ;;  %v3159_v50 = vmul.f32 %v5296_v57, %v5285_v21  ;;  %v5517_v34 = vsel %vm1004_vm6, %v2969_v56, %v2971_v63  ;;  %v3160_v40 = vmul.f32 %v5296_v57, %v5233_v0 }
 0x5a3   : > { %6316 = vst [vmem:[#allocation15_spill] sm:$0xff] %v5508_v27  ;;  %6317 = vst [vmem:[#allocation16_spill] sm:$0xff] %v5517_v34  ;;  %v5520_v14 = vsel %vm1004_vm6, %v2968_v3, %v2969_v56  ;;  %v5523_v11 = vsel %vm2068_vm12, %v3146_v5, %v3148_v33  ;;  %v3145_v52 = vrot.slane %v3139_v6, 5  ;;  %v3158_v41 = vmul.f32 %v5296_v57, %v5279_v12 }
 0x5a4   : > { %2203 = vrot.lane.b32.xlu1 %v5285_v21, %s6314_s1  ;;  %2201 = vrot.lane.b32.xlu0 %v5279_v12, %s6314_s1  ;;  %6318 = vst [vmem:[#allocation17_spill] sm:$0xff] %v5520_v14  ;;  %6319 = vst [vmem:[#allocation18_spill] sm:$0xff] %v5523_v11  ;;  %v3165_v18 = vrot.slane %v3159_v50, 5  ;;  %v3167_v8 = vrot.slane %v3160_v40, 5  ;;  %v3336_v19 = vmul.f32 %v5302_v53, %v5273_v35 }
 0x5a5   : > { %v3337_v39 = vmul.f32 %v5302_v53, %v5227_v1  ;;  %v3335_v3 = vmul.f32 %v5302_v53, %v5276_v24  ;;  %v5538_v33 = vsel %vm2068_vm12, %v3145_v52, %v3146_v5  ;;  %v3164_v6 = vrot.slane %v3158_v41, 5 }
 0x5a6   : > { %6321 = vst [vmem:[#allocation19_spill] sm:$0xff] %v5538_v33  ;;  %v3355_v56 = vmul.f32 %v3353_v37, %v5285_v21  ;;  %v3356_v57 = vmul.f32 %v3353_v37, %v5233_v0  ;;  %v5545_v10 = vsel %vm2068_vm12, %v3165_v18, %v3167_v8  ;;  %v3342_v63 = vrot.slane %v3336_v19, 6 }
 0x5a7   : > { %6322 = vst [vmem:[#allocation20_spill] sm:$0xff] %v5545_v10  ;;  %v3344_v50 = vrot.slane %v3337_v39, 6  ;;  %v3341_v53 = vrot.slane %v3335_v3, 6  ;;  %v5548_v40 = vsel %vm2068_vm12, %v3164_v6, %v3165_v18  ;;  %v3354_v33 = vmul.f32 %v3353_v37, %v5279_v12 }
 0x5a8   : > { %2215 = vrot.lane.b32.xlu1 %v5273_v35, %s6320_s29  ;;  %2213 = vrot.lane.b32.xlu0 %v5276_v24, %s6320_s29  ;;  %6323 = vst [vmem:[#allocation21_spill] sm:$0xff] %v5548_v40  ;;  %v3361_v11 = vrot.slane %v3355_v56, 6  ;;  %v3363_v5 = vrot.slane %v3356_v57, 6  ;;  %v2264_v37 = vrot.slane %v5273_v35, 1  ;;  %v2263_v39 = vrot.slane %v5276_v24, 1 }
 0x5a9   : > { %v5551_v52 = vsel %vm708_vm2, %v3342_v63, %v3344_v50  ;;  %v5554_v41 = vsel %vm708_vm2, %v3341_v53, %v3342_v63  ;;  %v3360_v18 = vrot.slane %v3354_v33, 6  ;;  %v2266_v3 = vrot.slane %v5227_v1, 1 }
 0x5aa   : > { %6324 = vst [vmem:[#allocation22_spill] sm:$0xff] %v5551_v52  ;;  %6325 = vst [vmem:[#allocation23_spill] sm:$0xff] %v5554_v41  ;;  %v5560_v8 = vsel %vm708_vm2, %v3361_v11, %v3363_v5  ;;  %v2285_v33 = vrot.slane %v5285_v21, 1  ;;  %v2265_v6 = vsel %vm779_vm3, %v2263_v39, %v2264_v37  ;;  %v2284_v56 = vrot.slane %v5279_v12, 1 }
 0x5ab   : > { %6326 = vst [vmem:[#allocation24_spill] sm:$0xff] %v5560_v8  ;;  %v5565_v19 = vsel %vm708_vm2, %v3360_v18, %v3361_v11  ;;  %v2267_v11 = vsel %vm779_vm3, %v2264_v37, %v2266_v3  ;;  %v2287_v57 = vrot.slane %v5233_v0, 1  ;;  %v2464_v53 = vrot.slane %v5227_v1, 2 }
 0x5ac   : > { %2227 = vrot.lane.b32.xlu1 %v5285_v21, %s6320_s29  ;;  %2225 = vrot.lane.b32.xlu0 %v5279_v12, %s6320_s29  ;;  %6327 = vst [vmem:[#allocation25_spill] sm:$0xff] %v5565_v19  ;;  %v2286_v50 = vsel %vm779_vm3, %v2284_v56, %v2285_v33  ;;  %v6328_v5 = vrot.slane %v5273_v35, 2  ;;  %v2483_v37 = vrot.slane %v5233_v0, 2  ;;  %v6329_v39 = vrot.slane %v5285_v21, 2  ;;  %v5655_v56 = vld [vmem:[%s6247_s11] sm:$0xff] }
 0x5ad   : > { %v2288_v63 = vsel %vm779_vm3, %v2285_v33, %v2287_v57  ;;  %v2120_v57 = vrot.slane %v5655_v56, %v4586_v45  ;;  %v2144_v19 = vrot.slane %v5655_v56, %v4435_v25 }
 0x5ae   : > { %v5613_v18 = vsel %vm854_vm4, %v6328_v5, %v2464_v53  ;;  %v5623_v3 = vsel %vm854_vm4, %v6329_v39, %v2483_v37 }
 0x5b0   : > { %2239 = vrot.lane.b32.xlu1 %v5273_v35, %s6289_s22  ;;  %2237 = vrot.lane.b32.xlu0 %v5276_v24, %s6289_s22 }
 0x5b4   : > { %2251 = vrot.lane.b32.xlu1 %v5285_v21, %s6289_s22  ;;  %2249 = vrot.lane.b32.xlu0 %v5279_v12, %s6289_s22 }
 0x5b8   : > { %2272 = vrot.lane.b32.xlu1 %v2267_v11, %s6303_s20  ;;  %2270 = vrot.lane.b32.xlu0 %v2265_v6, %s6303_s20 }
 0x5bc   : > { %2293 = vrot.lane.b32.xlu1 %v2288_v63, %s6303_s20  ;;  %2291 = vrot.lane.b32.xlu0 %v2286_v50, %s6303_s20 }
 0x5c0   : > { %2305 = vrot.lane.b32.xlu1 %v2267_v11, %s6304_s25  ;;  %2303 = vrot.lane.b32.xlu0 %v2265_v6, %s6304_s25 }
 0x5c4   : > { %2317 = vrot.lane.b32.xlu1 %v2288_v63, %s6304_s25  ;;  %2315 = vrot.lane.b32.xlu0 %v2286_v50, %s6304_s25 }
 0x5c8   : > { %2329 = vrot.lane.b32.xlu1 %v2267_v11, %s6305_s18  ;;  %2327 = vrot.lane.b32.xlu0 %v2265_v6, %s6305_s18 }
 0x5cc   : > { %2341 = vrot.lane.b32.xlu1 %v2288_v63, %s6305_s18  ;;  %2339 = vrot.lane.b32.xlu0 %v2286_v50, %s6305_s18 }
 0x5d0   : > { %2391 = vrot.lane.b32.xlu1 %v2267_v11, %s6314_s1  ;;  %2389 = vrot.lane.b32.xlu0 %v2265_v6, %s6314_s1 }
 0x5d4   : > { %2403 = vrot.lane.b32.xlu1 %v2288_v63, %s6314_s1  ;;  %2401 = vrot.lane.b32.xlu0 %v2286_v50, %s6314_s1 }
 0x5d8   : > { %2415 = vrot.lane.b32.xlu1 %v2267_v11, %s6320_s29  ;;  %2413 = vrot.lane.b32.xlu0 %v2265_v6, %s6320_s29 }
 0x5dc   : > { %2427 = vrot.lane.b32.xlu1 %v2288_v63, %s6320_s29  ;;  %2425 = vrot.lane.b32.xlu0 %v2286_v50, %s6320_s29 }
 0x5e0   : > { %2439 = vrot.lane.b32.xlu1 %v2267_v11, %s6289_s22  ;;  %2437 = vrot.lane.b32.xlu0 %v2265_v6, %s6289_s22  ;;  %v5650_v6 = vld [vmem:[%s6246_s10] sm:$0xff] }
 0x5e1   : > { %v2132_v53 = vrot.slane %v5650_v6, %v4435_v25  ;;  %v2156_v14 = vrot.slane %v5650_v6, %v4591_v47 }
 0x5e4   : > { %2451 = vrot.lane.b32.xlu1 %v2288_v63, %s6289_s22  ;;  %2449 = vrot.lane.b32.xlu0 %v2286_v50, %s6289_s22  ;;  %v2108_v63 = vrot.slane %v5650_v6, %v4586_v45 }
 0x5e8   : > { %2470 = vrot.lane.b32.xlu1 %v5613_v18, %s6303_s20  ;;  %2468 = vrot.lane.b32.xlu0 %v5325_v28, %s6303_s20 }
 0x5ec   : > { %2489 = vrot.lane.b32.xlu1 %v5623_v3, %s6303_s20  ;;  %2487 = vrot.lane.b32.xlu0 %v5330_v13, %s6303_s20 }
 0x5f0   : > { %2501 = vrot.lane.b32.xlu1 %v5613_v18, %s6304_s25  ;;  %2499 = vrot.lane.b32.xlu0 %v5325_v28, %s6304_s25 }
 0x5f4   : > { %2513 = vrot.lane.b32.xlu1 %v5623_v3, %s6304_s25  ;;  %2511 = vrot.lane.b32.xlu0 %v5330_v13, %s6304_s25 }
 0x5f8   : > { %2525 = vrot.lane.b32.xlu1 %v5613_v18, %s6305_s18  ;;  %2523 = vrot.lane.b32.xlu0 %v5325_v28, %s6305_s18 }
 0x5fa   : > { %v2114_v1 = vpop.permute.xlu1 %2113  ;;  %v2102_v0 = vpop.permute.xlu0 %2101 }
 0x5fb   : > { %v2121_v8 = vmul.f32 %v2120_v57, %v2114_v1  ;;  %v2109_v41 = vmul.f32 %v2108_v63, %v2102_v0 }
 0x5fc   : > { %2537 = vrot.lane.b32.xlu1 %v5623_v3, %s6305_s18  ;;  %2535 = vrot.lane.b32.xlu0 %v5330_v13, %s6305_s18 }
 0x5fd   : > { %v2123_v27 = vadd.f32 %v2121_v8, %v2109_v41 }
 0x5fe   : > { %v2116_v11 = vpop.permute.xlu1 %2115  ;;  %v2104_v33 = vpop.permute.xlu0 %2103 }
 0x5ff   : > { %v2122_v37 = vmul.f32 %v2120_v57, %v2116_v11  ;;  %v2110_v39 = vmul.f32 %v2108_v63, %v2104_v33  ;;  %v2168_v63 = vrot.slane %v5655_v56, %v4591_v47 }
 0x600   : > { %2587 = vrot.lane.b32.xlu1 %v5613_v18, %s6314_s1  ;;  %2585 = vrot.lane.b32.xlu0 %v5325_v28, %s6314_s1 }
 0x601   : > { %v2124_v11 = vadd.f32 %v2122_v37, %v2110_v39 }
 0x602   : > { %v2128_v50 = vpop.permute.xlu1 %2127  ;;  %v2126_v5 = vpop.permute.xlu0 %2125 }
 0x603   : > { %v2134_v40 = vmul.f32 %v2132_v53, %v2128_v50  ;;  %v2133_v34 = vmul.f32 %v2132_v53, %v2126_v5 }
 0x604   : > { %2599 = vrot.lane.b32.xlu1 %v5623_v3, %s6314_s1  ;;  %2597 = vrot.lane.b32.xlu0 %v5330_v13, %s6314_s1 }
 0x605   : > { %v2136_v1 = vadd.f32 %v2134_v40, %v2124_v11  ;;  %v2135_v50 = vadd.f32 %v2133_v34, %v2123_v27 }
 0x606   : > { %v2140_v52 = vpop.permute.xlu1 %2139  ;;  %v2138_v10 = vpop.permute.xlu0 %2137 }
 0x607   : > { %v2146_v33 = vmul.f32 %v2144_v19, %v2140_v52  ;;  %v2145_v15 = vmul.f32 %v2144_v19, %v2138_v10  ;;  %v2176_v52 = vrot.slane %v5650_v6, %v4598_v60 }
 0x608   : > { %2611 = vrot.lane.b32.xlu1 %v5613_v18, %s6320_s29  ;;  %2609 = vrot.lane.b32.xlu0 %v5325_v28, %s6320_s29 }
 0x609   : > { %v2148_v53 = vadd.f32 %v2146_v33, %v2136_v1  ;;  %v2147_v10 = vadd.f32 %v2145_v15, %v2135_v50  ;;  %v2177_v15 = vmul.f32 %v2176_v52, %v5276_v24 }
 0x60a   : > { %v2152_v59 = vpop.permute.xlu1 %2151  ;;  %v2150_v57 = vpop.permute.xlu0 %2149 }
 0x60b   : > { %v2158_v0 = vmul.f32 %v2156_v14, %v2152_v59  ;;  %v2157_v7 = vmul.f32 %v2156_v14, %v2150_v57  ;;  %v2184_v59 = vrot.slane %v5655_v56, %v4598_v60  ;;  %v2178_v14 = vmul.f32 %v2176_v52, %v5273_v35 }
 0x60c   : > { %2623 = vrot.lane.b32.xlu1 %v5623_v3, %s6320_s29  ;;  %2621 = vrot.lane.b32.xlu0 %v5330_v13, %s6320_s29  ;;  %v2208_v52 = vrot.slane %v5655_v56, %v4426_v22 }
 0x60d   : > { %v2160_v40 = vadd.f32 %v2158_v0, %v2148_v53  ;;  %v2159_v27 = vadd.f32 %v2157_v7, %v2147_v10  ;;  %v2186_v11 = vmul.f32 %v2184_v59, %v5285_v21  ;;  %v2185_v7 = vmul.f32 %v2184_v59, %v5279_v12 }
 0x60e   : > { %v2164_v41 = vpop.permute.xlu1 %2163  ;;  %v2162_v19 = vpop.permute.xlu0 %2161 }
 0x60f   : > { %v2170_v8 = vmul.f32 %v2168_v63, %v2164_v41  ;;  %v2169_v34 = vmul.f32 %v2168_v63, %v2162_v19  ;;  %v2196_v63 = vrot.slane %v5650_v6, %v4426_v22  ;;  %v2220_v41 = vrot.slane %v5650_v6, %v4604_v9 }
 0x610   : > { %2635 = vrot.lane.b32.xlu1 %v5613_v18, %s6289_s22  ;;  %2633 = vrot.lane.b32.xlu0 %v5325_v28, %s6289_s22 }
 0x611   : > { %v2172_v5 = vadd.f32 %v2170_v8, %v2160_v40  ;;  %v2171_v37 = vadd.f32 %v2169_v34, %v2159_v27  ;;  %v2232_v27 = vrot.slane %v5655_v56, %v4604_v9 }
 0x612   : > { %v2192_v39 = vpop.permute.xlu1 %2191  ;;  %v2190_v1 = vpop.permute.xlu0 %2189 }
 0x613   : > { %v2180_v33 = vadd.f32 %v2178_v14, %v2172_v5  ;;  %v2179_v0 = vadd.f32 %v2177_v15, %v2171_v37  ;;  %v2198_v10 = vmul.f32 %v2196_v63, %v2192_v39  ;;  %v2197_v40 = vmul.f32 %v2196_v63, %v2190_v1 }
 0x614   : > { %2647 = vrot.lane.b32.xlu1 %v5623_v3, %s6289_s22  ;;  %2645 = vrot.lane.b32.xlu0 %v5330_v13, %s6289_s22  ;;  %v2244_v37 = vrot.slane %v5650_v6, %v4457_v30 }
 0x615   : > { %v2188_v18 = vadd.f32 %v2186_v11, %v2180_v33  ;;  %v2187_v35 = vadd.f32 %v2185_v7, %v2179_v0  ;;  %v2256_v7 = vrot.slane %v5655_v56, %v4457_v30 }
 0x616   : > { %v2204_v28 = vpop.permute.xlu1 %2203  ;;  %v2202_v57 = vpop.permute.xlu0 %2201 }
 0x617   : > { %v2200_v8 = vadd.f32 %v2198_v10, %v2188_v18  ;;  %v2210_v19 = vmul.f32 %v2208_v52, %v2204_v28  ;;  %v2199_v34 = vadd.f32 %v2197_v40, %v2187_v35  ;;  %v2209_v14 = vmul.f32 %v2208_v52, %v2202_v57 }
 0x618   : > { %2666 = vrot.lane.b32.xlu1 %v5348_v31, %s6303_s20  ;;  %2664 = vrot.lane.b32.xlu0 %v5351_v2, %s6303_s20 }
 0x619   : > { %v2212_v33 = vadd.f32 %v2210_v19, %v2200_v8  ;;  %v2211_v0 = vadd.f32 %v2209_v14, %v2199_v34 }
 0x61a   : > { %v2216_v24 = vpop.permute.xlu1 %2215  ;;  %v2214_v21 = vpop.permute.xlu0 %2213 }
 0x61b   : > { %v2222_v15 = vmul.f32 %v2220_v41, %v2216_v24  ;;  %v2221_v11 = vmul.f32 %v2220_v41, %v2214_v21  ;;  %v2277_v24 = vrot.slane %v5650_v6, %v4429_v23  ;;  %v2298_v41 = vrot.slane %v5655_v56, %v4429_v23 }
 0x61c   : > { %2685 = vrot.lane.b32.xlu1 %v5354_v36, %s6303_s20  ;;  %2683 = vrot.lane.b32.xlu0 %v5361_v38, %s6303_s20  ;;  %v2310_v6 = vrot.slane %v5197_v46, %v4586_v45  ;;  %v2322_v56 = vrot.slane %v5207_v32, %v4586_v45 }
 0x61d   : > { %v2224_v28 = vadd.f32 %v2222_v15, %v2212_v33  ;;  %v2223_v63 = vadd.f32 %v2221_v11, %v2211_v0 }
 0x61e   : > { %v2228_v12 = vpop.permute.xlu1 %2227  ;;  %v2226_v3 = vpop.permute.xlu0 %2225 }
 0x61f   : > { %v2234_v1 = vmul.f32 %v2232_v27, %v2228_v12  ;;  %v2233_v18 = vmul.f32 %v2232_v27, %v2226_v3 }
 0x620   : > { %2697 = vrot.lane.b32.xlu1 %v5348_v31, %s6304_s25  ;;  %2695 = vrot.lane.b32.xlu0 %v5351_v2, %s6304_s25 }
 0x621   : > { %v2236_v12 = vadd.f32 %v2234_v1, %v2224_v28  ;;  %v2235_v3 = vadd.f32 %v2233_v18, %v2223_v63 }
 0x622   : > { %v2240_v13 = vpop.permute.xlu1 %2239  ;;  %v2238_v50 = vpop.permute.xlu0 %2237 }
 0x623   : > { %v2246_v57 = vmul.f32 %v2244_v37, %v2240_v13  ;;  %v2245_v52 = vmul.f32 %v2244_v37, %v2238_v50 }
 0x624   : > { %2709 = vrot.lane.b32.xlu1 %v5354_v36, %s6304_s25  ;;  %2707 = vrot.lane.b32.xlu0 %v5361_v38, %s6304_s25 }
 0x625   : > { %v2248_v8 = vadd.f32 %v2246_v57, %v2236_v12  ;;  %v2247_v27 = vadd.f32 %v2245_v52, %v2235_v3  ;;  %v2346_v52 = vrot.slane %v5207_v32, %v4435_v25 }
 0x626   : > { %v2252_v53 = vpop.permute.xlu1 %2251  ;;  %v2250_v59 = vpop.permute.xlu0 %2249 }
 0x627   : > { %v2258_v10 = vmul.f32 %v2256_v7, %v2252_v53  ;;  %v2257_v40 = vmul.f32 %v2256_v7, %v2250_v59 }
 0x628   : > { %2721 = vrot.lane.b32.xlu1 %v5348_v31, %s6305_s18  ;;  %2719 = vrot.lane.b32.xlu0 %v5351_v2, %s6305_s18 }
 0x629   : > { %v2260_v53 = vadd.f32 %v2258_v10, %v2248_v8  ;;  %v2259_v59 = vadd.f32 %v2257_v40, %v2247_v27 }
 0x62a   : > { %v2273_v5 = vpop.permute.xlu1 %2272  ;;  %v2271_v39 = vpop.permute.xlu0 %2270 }
 0x62b   : > { %v2279_v19 = vmul.f32 %v2277_v24, %v2273_v5  ;;  %v2278_v34 = vmul.f32 %v2277_v24, %v2271_v39  ;;  %v2334_v39 = vrot.slane %v5197_v46, %v4435_v25 }
 0x62c   : > { %2733 = vrot.lane.b32.xlu1 %v5354_v36, %s6305_s18  ;;  %2731 = vrot.lane.b32.xlu0 %v5361_v38, %s6305_s18 }
 0x62d   : > { %v2281_v37 = vadd.f32 %v2279_v19, %v2260_v53  ;;  %v2280_v1 = vadd.f32 %v2278_v34, %v2259_v59 }
 0x62e   : > { %v2294_v35 = vpop.permute.xlu1 %2293  ;;  %v2292_v21 = vpop.permute.xlu0 %2291 }
 0x62f   : > { %v2300_v14 = vmul.f32 %v2298_v41, %v2294_v35  ;;  %v2299_v15 = vmul.f32 %v2298_v41, %v2292_v21 }
 0x630   : > { %2783 = vrot.lane.b32.xlu1 %v5348_v31, %s6314_s1  ;;  %2781 = vrot.lane.b32.xlu0 %v5351_v2, %s6314_s1 }
 0x631   : > { %v2302_v0 = vadd.f32 %v2300_v14, %v2281_v37  ;;  %v2301_v35 = vadd.f32 %v2299_v15, %v2280_v1  ;;  %v2420_v1 = vrot.slane %v5197_v46, %v4426_v22 }
 0x632   : > { %v2306_v13 = vpop.permute.xlu1 %2305  ;;  %v2304_v50 = vpop.permute.xlu0 %2303 }
 0x633   : > { %v2312_v11 = vmul.f32 %v2310_v6, %v2306_v13  ;;  %v2311_v7 = vmul.f32 %v2310_v6, %v2304_v50 }
 0x634   : > { %2795 = vrot.lane.b32.xlu1 %v5354_v36, %s6314_s1  ;;  %2793 = vrot.lane.b32.xlu0 %v5361_v38, %s6314_s1 }
 0x635   : > { %v2314_v24 = vadd.f32 %v2312_v11, %v2302_v0  ;;  %v2313_v12 = vadd.f32 %v2311_v7, %v2301_v35  ;;  %v2408_v11 = vrot.slane %v5207_v32, %v4598_v60 }
 0x636   : > { %v2318_v5 = vpop.permute.xlu1 %2317  ;;  %v2316_v33 = vpop.permute.xlu0 %2315 }
 0x637   : > { %v2324_v18 = vmul.f32 %v2322_v56, %v2318_v5  ;;  %v2323_v28 = vmul.f32 %v2322_v56, %v2316_v33 }
 0x638   : > { %2807 = vrot.lane.b32.xlu1 %v5348_v31, %s6320_s29  ;;  %2805 = vrot.lane.b32.xlu0 %v5351_v2, %s6320_s29 }
 0x639   : > { %v2326_v41 = vadd.f32 %v2324_v18, %v2314_v24  ;;  %v2325_v3 = vadd.f32 %v2323_v28, %v2313_v12  ;;  %v2432_v28 = vrot.slane %v5207_v32, %v4426_v22 }
 0x63a   : > { %v2330_v57 = vpop.permute.xlu1 %2329  ;;  %v2328_v63 = vpop.permute.xlu0 %2327 }
 0x63b   : > { %v2336_v21 = vmul.f32 %v2334_v39, %v2330_v57  ;;  %v2335_v10 = vmul.f32 %v2334_v39, %v2328_v63 }
 0x63c   : > { %2819 = vrot.lane.b32.xlu1 %v5354_v36, %s6320_s29  ;;  %2817 = vrot.lane.b32.xlu0 %v5361_v38, %s6320_s29 }
 0x63d   : > { %v2338_v13 = vadd.f32 %v2336_v21, %v2326_v41  ;;  %v2337_v6 = vadd.f32 %v2335_v10, %v2325_v3 }
 0x63e   : > { %v2342_v40 = vpop.permute.xlu1 %2341  ;;  %v2340_v19 = vpop.permute.xlu0 %2339 }
 0x63f   : > { %v2348_v8 = vmul.f32 %v2346_v52, %v2342_v40  ;;  %v2347_v50 = vmul.f32 %v2346_v52, %v2340_v19  ;;  %v2444_v52 = vrot.slane %v5197_v46, %v4604_v9  ;;  %v2456_v40 = vrot.slane %v5207_v32, %v4604_v9 }
 0x640   : > { %2831 = vrot.lane.b32.xlu1 %v5348_v31, %s6289_s22  ;;  %2829 = vrot.lane.b32.xlu0 %v5351_v2, %s6289_s22 }
 0x641   : > { %v2350_v27 = vadd.f32 %v2348_v8, %v2338_v13  ;;  %v2349_v34 = vadd.f32 %v2347_v50, %v2337_v6 }
 0x642   : > { %v2392_v53 = vpop.permute.xlu1 %2391  ;;  %v2390_v56 = vpop.permute.xlu0 %2389 }
 0x643   : > { %v2369_v14 = vadd.f32 %v5364_v49, %v2350_v27  ;;  %v2368_v59 = vadd.f32 %v5373_v48, %v2349_v34  ;;  %v2396_v48 = vrot.slane %v5197_v46, %v4598_v60  ;;  %v2475_v27 = vrot.slane %v5197_v46, %v4457_v30 }
 0x644   : > { %2843 = vrot.lane.b32.xlu1 %v5354_v36, %s6289_s22  ;;  %2841 = vrot.lane.b32.xlu0 %v5361_v38, %s6289_s22 }
 0x645   : > { %v2388_v15 = vadd.f32 %v5367_v44, %v2369_v14  ;;  %v2387_v31 = vadd.f32 %v5381_v42, %v2368_v59  ;;  %v2398_v39 = vmul.f32 %v2396_v48, %v2392_v53  ;;  %v2397_v0 = vmul.f32 %v2396_v48, %v2390_v56 }
 0x646   : > { %v2404_v5 = vpop.permute.xlu1 %2403  ;;  %v2402_v37 = vpop.permute.xlu0 %2401 }
 0x647   : > { %v2400_v18 = vadd.f32 %v2398_v39, %v2388_v15  ;;  %v2410_v35 = vmul.f32 %v2408_v11, %v2404_v5  ;;  %v2399_v57 = vadd.f32 %v2397_v0, %v2387_v31  ;;  %v2409_v24 = vmul.f32 %v2408_v11, %v2402_v37 }
 0x648   : > { %2862 = vrot.lane.b32.xlu1 %v5384_v43, %s6303_s20  ;;  %2860 = vrot.lane.b32.xlu0 %v5387_v62, %s6303_s20  ;;  %v2494_v15 = vrot.slane %v5207_v32, %v4457_v30 }
 0x649   : > { %v2412_v41 = vadd.f32 %v2410_v35, %v2400_v18  ;;  %v2411_v13 = vadd.f32 %v2409_v24, %v2399_v57  ;;  %v2530_v35 = vrot.slane %v5202_v54, %v4586_v45  ;;  %v5836_v54 = vld [vmem:[%s6247_s11 + $0x10] sm:$0xff] }
 0x64a   : > { %v2416_v2 = vpop.permute.xlu1 %2415  ;;  %v2414_v49 = vpop.permute.xlu0 %2413 }
 0x64b   : > { %v2422_v63 = vmul.f32 %v2420_v1, %v2416_v2  ;;  %v2421_v10 = vmul.f32 %v2420_v1, %v2414_v49 }
 0x64c   : > { %2881 = vrot.lane.b32.xlu1 %v5390_v26, %s6303_s20  ;;  %2879 = vrot.lane.b32.xlu0 %v5395_v61, %s6303_s20 }
 0x64d   : > { %v2424_v6 = vadd.f32 %v2422_v63, %v2412_v41  ;;  %v2423_v53 = vadd.f32 %v2421_v10, %v2411_v13 }
 0x64e   : > { %v2428_v36 = vpop.permute.xlu1 %2427  ;;  %v2426_v38 = vpop.permute.xlu0 %2425 }
 0x64f   : > { %v2434_v3 = vmul.f32 %v2432_v28, %v2428_v36  ;;  %v2433_v8 = vmul.f32 %v2432_v28, %v2426_v38  ;;  %v2506_v36 = vrot.slane %v5197_v46, %v4429_v23 }
 0x650   : > { %2893 = vrot.lane.b32.xlu1 %v5384_v43, %s6304_s25  ;;  %2891 = vrot.lane.b32.xlu0 %v5387_v62, %s6304_s25 }
 0x651   : > { %v2436_v56 = vadd.f32 %v2434_v3, %v2424_v6  ;;  %v2435_v31 = vadd.f32 %v2433_v8, %v2423_v53  ;;  %v2542_v3 = vrot.slane %v5836_v54, %v4586_v45 }
 0x652   : > { %v2440_v44 = vpop.permute.xlu1 %2439  ;;  %v2438_v42 = vpop.permute.xlu0 %2437 }
 0x653   : > { %v2446_v50 = vmul.f32 %v2444_v52, %v2440_v44  ;;  %v2445_v14 = vmul.f32 %v2444_v52, %v2438_v42 }
 0x654   : > { %2905 = vrot.lane.b32.xlu1 %v5390_v26, %s6304_s25  ;;  %2903 = vrot.lane.b32.xlu0 %v5395_v61, %s6304_s25 }
 0x655   : > { %v2448_v2 = vadd.f32 %v2446_v50, %v2436_v56  ;;  %v2447_v44 = vadd.f32 %v2445_v14, %v2435_v31 }
 0x656   : > { %v2452_v33 = vpop.permute.xlu1 %2451  ;;  %v2450_v7 = vpop.permute.xlu0 %2449 }
 0x657   : > { %v2458_v59 = vmul.f32 %v2456_v40, %v2452_v33  ;;  %v2457_v5 = vmul.f32 %v2456_v40, %v2450_v7  ;;  %v2518_v33 = vrot.slane %v5207_v32, %v4429_v23 }
 0x658   : > { %2917 = vrot.lane.b32.xlu1 %v5384_v43, %s6305_s18  ;;  %2915 = vrot.lane.b32.xlu0 %v5387_v62, %s6305_s18 }
 0x659   : > { %v2460_v42 = vadd.f32 %v2458_v59, %v2448_v2  ;;  %v2459_v39 = vadd.f32 %v2457_v5, %v2447_v44 }
 0x65a   : > { %v2471_v21 = vpop.permute.xlu1 %2470  ;;  %v2469_v12 = vpop.permute.xlu0 %2468 }
 0x65b   : > { %v2477_v49 = vmul.f32 %v2475_v27, %v2471_v21  ;;  %v2476_v48 = vmul.f32 %v2475_v27, %v2469_v12 }
 0x65c   : > { %2929 = vrot.lane.b32.xlu1 %v5390_v26, %s6305_s18  ;;  %2927 = vrot.lane.b32.xlu0 %v5395_v61, %s6305_s18 }
 0x65d   : > { %v2479_v0 = vadd.f32 %v2477_v49, %v2460_v42  ;;  %v2478_v28 = vadd.f32 %v2476_v48, %v2459_v39  ;;  %v2628_v42 = vrot.slane %v5836_v54, %v4598_v60 }
 0x65e   : > { %v2490_v19 = vpop.permute.xlu1 %2489  ;;  %v2488_v34 = vpop.permute.xlu0 %2487 }
 0x65f   : > { %v2496_v11 = vmul.f32 %v2494_v15, %v2490_v19  ;;  %v2495_v1 = vmul.f32 %v2494_v15, %v2488_v34 }
 0x660   : > { %2979 = vrot.lane.b32.xlu1 %v5384_v43, %s6314_s1  ;;  %2977 = vrot.lane.b32.xlu0 %v5387_v62, %s6314_s1 }
 0x661   : > { %v2498_v24 = vadd.f32 %v2496_v11, %v2479_v0  ;;  %v2497_v32 = vadd.f32 %v2495_v1, %v2478_v28 }
 0x662   : > { %v2502_v37 = vpop.permute.xlu1 %2501  ;;  %v2500_v38 = vpop.permute.xlu0 %2499 }
 0x663   : > { %v2508_v18 = vmul.f32 %v2506_v36, %v2502_v37  ;;  %v2507_v57 = vmul.f32 %v2506_v36, %v2500_v38 }
 0x664   : > { %2991 = vrot.lane.b32.xlu1 %v5390_v26, %s6314_s1  ;;  %2989 = vrot.lane.b32.xlu0 %v5395_v61, %s6314_s1 }
 0x665   : > { %v2510_v12 = vadd.f32 %v2508_v18, %v2498_v24  ;;  %v2509_v40 = vadd.f32 %v2507_v57, %v2497_v32 }
 0x666   : > { %v2514_v7 = vpop.permute.xlu1 %2513  ;;  %v2512_v46 = vpop.permute.xlu0 %2511 }
 0x667   : > { %v2520_v21 = vmul.f32 %v2518_v33, %v2514_v7  ;;  %v2519_v63 = vmul.f32 %v2518_v33, %v2512_v46 }
 0x668   : > { %3003 = vrot.lane.b32.xlu1 %v5384_v43, %s6320_s29  ;;  %3001 = vrot.lane.b32.xlu0 %v5387_v62, %s6320_s29 }
 0x669   : > { %v2522_v8 = vadd.f32 %v2520_v21, %v2510_v12  ;;  %v2521_v19 = vadd.f32 %v2519_v63, %v2509_v40 }
 0x66a   : > { %v2526_v52 = vpop.permute.xlu1 %2525  ;;  %v2524_v41 = vpop.permute.xlu0 %2523 }
 0x66b   : > { %v2532_v10 = vmul.f32 %v2530_v35, %v2526_v52  ;;  %v2531_v13 = vmul.f32 %v2530_v35, %v2524_v41  ;;  %v2652_v52 = vrot.slane %v5836_v54, %v4426_v22 }
 0x66c   : > { %3015 = vrot.lane.b32.xlu1 %v5390_v26, %s6320_s29  ;;  %3013 = vrot.lane.b32.xlu0 %v5395_v61, %s6320_s29 }
 0x66d   : > { %v2534_v50 = vadd.f32 %v2532_v10, %v2522_v8  ;;  %v2533_v53 = vadd.f32 %v2531_v13, %v2521_v19 }
 0x66e   : > { %v2538_v6 = vpop.permute.xlu1 %2537  ;;  %v2536_v34 = vpop.permute.xlu0 %2535 }
 0x66f   : > { %v2544_v27 = vmul.f32 %v2542_v3, %v2538_v6  ;;  %v2543_v14 = vmul.f32 %v2542_v3, %v2536_v34 }
 0x670   : > { %3027 = vrot.lane.b32.xlu1 %v5384_v43, %s6289_s22  ;;  %3025 = vrot.lane.b32.xlu0 %v5387_v62, %s6289_s22  ;;  %v5859_v62 = vld [vmem:[%s6246_s10 + $0x10] sm:$0xff] }
 0x671   : > { %v2546_v56 = vadd.f32 %v2544_v27, %v2534_v50  ;;  %v2545_v59 = vadd.f32 %v2543_v14, %v2533_v53  ;;  %v2640_v0 = vrot.slane %v5859_v62, %v4426_v22  ;;  %v2671_v6 = vrot.slane %v5859_v62, %v4604_v9 }
 0x672   : > { %v2588_v15 = vpop.permute.xlu1 %2587  ;;  %v2586_v5 = vpop.permute.xlu0 %2585 }
 0x673   : > { %v2565_v31 = vadd.f32 %v5398_v51, %v2546_v56  ;;  %v2564_v37 = vadd.f32 %v5425_v4, %v2545_v59  ;;  %v2592_v51 = vrot.slane %v5859_v62, %v4591_v47 }
 0x674   : > { %3039 = vrot.lane.b32.xlu1 %v5390_v26, %s6289_s22  ;;  %3037 = vrot.lane.b32.xlu0 %v5395_v61, %s6289_s22  ;;  %v2604_v26 = vrot.slane %v5836_v54, %v4591_v47 }
 0x675   : > { %v2584_v2 = vadd.f32 %v5409_v58, %v2565_v31  ;;  %v2583_v43 = vadd.f32 %v5436_v20, %v2564_v37  ;;  %v2594_v58 = vmul.f32 %v2592_v51, %v2588_v15  ;;  %v2616_v20 = vrot.slane %v5859_v62, %v4598_v60 }
 0x676   : > { %v2600_v49 = vpop.permute.xlu1 %2599  ;;  %v2598_v4 = vpop.permute.xlu0 %2597  ;;  %v2593_v38 = vmul.f32 %v2592_v51, %v2586_v5  ;;  %v2690_v15 = vrot.slane %v5836_v54, %v4604_v9  ;;  %v2702_v51 = vrot.slane %v5859_v62, %v4457_v30 }
 0x677   : > { %v2596_v44 = vadd.f32 %v2594_v58, %v2584_v2  ;;  %v2606_v48 = vmul.f32 %v2604_v26, %v2600_v49  ;;  %v2605_v33 = vmul.f32 %v2604_v26, %v2598_v4 }
 0x678   : > { %3058 = vrot.lane.b32.xlu1 %v5416_v55, %s6303_s20  ;;  %3056 = vrot.lane.b32.xlu0 %v5419_v16, %s6303_s20  ;;  %v2595_v11 = vadd.f32 %v2593_v38, %v2583_v43  ;;  %v2714_v38 = vrot.slane %v5836_v54, %v4457_v30 }
 0x679   : > { %v2608_v46 = vadd.f32 %v2606_v48, %v2596_v44 }
 0x67a   : > { %v2612_v61 = vpop.permute.xlu1 %2611  ;;  %v2610_v36 = vpop.permute.xlu0 %2609  ;;  %v2607_v28 = vadd.f32 %v2605_v33, %v2595_v11 }
 0x67b   : > { %v2618_v1 = vmul.f32 %v2616_v20, %v2612_v61  ;;  %v2617_v18 = vmul.f32 %v2616_v20, %v2610_v36 }
 0x67c   : > { %3077 = vrot.lane.b32.xlu1 %v5428_v17, %s6303_s20  ;;  %3075 = vrot.lane.b32.xlu0 %v5431_v29, %s6303_s20 }
 0x67d   : > { %v2620_v21 = vadd.f32 %v2618_v1, %v2608_v46  ;;  %v2619_v12 = vadd.f32 %v2617_v18, %v2607_v28  ;;  %v2726_v1 = vrot.slane %v5859_v62, %v4429_v23 }
 0x67e   : > { %v2624_v39 = vpop.permute.xlu1 %2623  ;;  %v2622_v7 = vpop.permute.xlu0 %2621 }
 0x67f   : > { %v2630_v35 = vmul.f32 %v2628_v42, %v2624_v39  ;;  %v2629_v57 = vmul.f32 %v2628_v42, %v2622_v7 }
 0x680   : > { %3089 = vrot.lane.b32.xlu1 %v5416_v55, %s6304_s25  ;;  %3087 = vrot.lane.b32.xlu0 %v5419_v16, %s6304_s25 }
 0x681   : > { %v2632_v41 = vadd.f32 %v2630_v35, %v2620_v21  ;;  %v2631_v3 = vadd.f32 %v2629_v57, %v2619_v12  ;;  %v2738_v57 = vrot.slane %v5836_v54, %v4429_v23  ;;  %v5932_v54 = vld [vmem:[%s6246_s10 + $0x18] sm:$0xff] }
 0x682   : > { %v2636_v24 = vpop.permute.xlu1 %2635  ;;  %v2634_v63 = vpop.permute.xlu0 %2633 }
 0x683   : > { %v2642_v32 = vmul.f32 %v2640_v0, %v2636_v24  ;;  %v2641_v10 = vmul.f32 %v2640_v0, %v2634_v63 }
 0x684   : > { %3101 = vrot.lane.b32.xlu1 %v5428_v17, %s6304_s25  ;;  %3099 = vrot.lane.b32.xlu0 %v5431_v29, %s6304_s25 }
 0x685   : > { %v2644_v13 = vadd.f32 %v2642_v32, %v2632_v41  ;;  %v2643_v50 = vadd.f32 %v2641_v10, %v2631_v3  ;;  %v2788_v41 = vrot.slane %v5932_v54, %v4435_v25 }
 0x686   : > { %v2648_v40 = vpop.permute.xlu1 %2647  ;;  %v2646_v19 = vpop.permute.xlu0 %2645 }
 0x687   : > { %v2654_v8 = vmul.f32 %v2652_v52, %v2648_v40  ;;  %v2653_v27 = vmul.f32 %v2652_v52, %v2646_v19 }
 0x688   : > { %3113 = vrot.lane.b32.xlu1 %v5416_v55, %s6305_s18  ;;  %3111 = vrot.lane.b32.xlu0 %v5419_v16, %s6305_s18 }
 0x689   : > { %v2656_v34 = vadd.f32 %v2654_v8, %v2644_v13  ;;  %v2655_v53 = vadd.f32 %v2653_v27, %v2643_v50  ;;  %v6330_v13 = vld [vmem:[#allocation6_spill] sm:$0xff]  ;;  %v6332_v27 = vld [vmem:[#allocation7_spill] sm:$0xff] }
 0x68a   : > { %v2667_v14 = vpop.permute.xlu1 %2666  ;;  %v2665_v59 = vpop.permute.xlu0 %2664 }
 0x68b   : > { %v2673_v56 = vmul.f32 %v2671_v6, %v2667_v14  ;;  %v2672_v31 = vmul.f32 %v2671_v6, %v2665_v59  ;;  %v6331_v6 = vld [vmem:[#allocation10_spill] sm:$0xff]  ;;  %v6333_v14 = vld [vmem:[#allocation11_spill] sm:$0xff] }
 0x68c   : > { %3125 = vrot.lane.b32.xlu1 %v5428_v17, %s6305_s18  ;;  %3123 = vrot.lane.b32.xlu0 %v5431_v29, %s6305_s18 }
 0x68d   : > { %v2675_v5 = vadd.f32 %v2673_v56, %v2656_v34  ;;  %v2674_v37 = vadd.f32 %v2672_v31, %v2655_v53 }
 0x68e   : > { %v2686_v2 = vpop.permute.xlu1 %2685  ;;  %v2684_v49 = vpop.permute.xlu0 %2683 }
 0x68f   : > { %v2692_v43 = vmul.f32 %v2690_v15, %v2686_v2  ;;  %v2691_v4 = vmul.f32 %v2690_v15, %v2684_v49  ;;  %v2812_v2 = vrot.slane %v5932_v54, %v4591_v47 }
 0x690   : > { %3175 = vrot.lane.b32.xlu1 %v5416_v55, %s6314_s1  ;;  %3173 = vrot.lane.b32.xlu0 %v5419_v16, %s6314_s1 }
 0x691   : > { %v2694_v26 = vadd.f32 %v2692_v43, %v2675_v5  ;;  %v2693_v61 = vadd.f32 %v2691_v4, %v2674_v37  ;;  %v6335_v4 = vld [vmem:[#allocation9_spill] sm:$0xff] }
 0x692   : > { %v2698_v58 = vpop.permute.xlu1 %2697  ;;  %v2696_v36 = vpop.permute.xlu0 %2695 }
 0x693   : > { %v2704_v20 = vmul.f32 %v2702_v51, %v2698_v58  ;;  %v2703_v44 = vmul.f32 %v2702_v51, %v2696_v36 }
 0x694   : > { %3187 = vrot.lane.b32.xlu1 %v5428_v17, %s6314_s1  ;;  %3185 = vrot.lane.b32.xlu0 %v5431_v29, %s6314_s1 }
 0x695   : > { %v2706_v48 = vadd.f32 %v2704_v20, %v2694_v26  ;;  %v2705_v42 = vadd.f32 %v2703_v44, %v2693_v61 }
 0x696   : > { %v2710_v11 = vpop.permute.xlu1 %2709  ;;  %v2708_v39 = vpop.permute.xlu0 %2707 }
 0x697   : > { %v2716_v33 = vmul.f32 %v2714_v38, %v2710_v11  ;;  %v2715_v7 = vmul.f32 %v2714_v38, %v2708_v39  ;;  %v6336_v38 = vld [vmem:[#allocation12_spill] sm:$0xff] }
 0x698   : > { %3199 = vrot.lane.b32.xlu1 %v5416_v55, %s6320_s29  ;;  %3197 = vrot.lane.b32.xlu0 %v5419_v16, %s6320_s29 }
 0x699   : > { %v2718_v0 = vadd.f32 %v2716_v33, %v2706_v48  ;;  %v2717_v18 = vadd.f32 %v2715_v7, %v2705_v42  ;;  %v6337_v48 = vld [vmem:[#allocation13_spill] sm:$0xff] }
 0x69a   : > { %v2722_v46 = vpop.permute.xlu1 %2721  ;;  %v2720_v28 = vpop.permute.xlu0 %2719 }
 0x69b   : > { %v2728_v35 = vmul.f32 %v2726_v1, %v2722_v46  ;;  %v2727_v24 = vmul.f32 %v2726_v1, %v2720_v28 }
 0x69c   : > { %3211 = vrot.lane.b32.xlu1 %v5428_v17, %s6320_s29  ;;  %3209 = vrot.lane.b32.xlu0 %v5431_v29, %s6320_s29 }
 0x69d   : > { %v2730_v62 = vadd.f32 %v2728_v35, %v2718_v0  ;;  %v2729_v21 = vadd.f32 %v2727_v24, %v2717_v18  ;;  %v2836_v24 = vrot.slane %v5932_v54, %v4598_v60 }
 0x69e   : > { %v2734_v32 = vpop.permute.xlu1 %2733  ;;  %v2732_v52 = vpop.permute.xlu0 %2731 }
 0x69f   : > { %v2740_v63 = vmul.f32 %v2738_v57, %v2734_v32  ;;  %v2739_v12 = vmul.f32 %v2738_v57, %v2732_v52  ;;  %v2867_v52 = vrot.slane %v5932_v54, %v4426_v22 }
 0x6a0   : > { %3223 = vrot.lane.b32.xlu1 %v5416_v55, %s6289_s22  ;;  %3221 = vrot.lane.b32.xlu0 %v5419_v16, %s6289_s22  ;;  %v5940_v55 = vld [vmem:[%s6247_s11 + $0x18] sm:$0xff] }
 0x6a1   : > { %v2742_v10 = vadd.f32 %v2740_v63, %v2730_v62  ;;  %v2741_v3 = vadd.f32 %v2739_v12, %v2729_v21  ;;  %v2800_v16 = vrot.slane %v5940_v55, %v4435_v25  ;;  %v2824_v20 = vrot.slane %v5940_v55, %v4591_v47 }
 0x6a2   : > { %v2784_v40 = vpop.permute.xlu1 %2783  ;;  %v2782_v19 = vpop.permute.xlu0 %2781  ;;  %v2848_v21 = vrot.slane %v5940_v55, %v4598_v60 }
 0x6a3   : > { %v2761_v8 = vadd.f32 %v6330_v13, %v2742_v10  ;;  %v2760_v50 = vadd.f32 %v6331_v6, %v2741_v3  ;;  %v2790_v53 = vmul.f32 %v2788_v41, %v2784_v40  ;;  %v2789_v59 = vmul.f32 %v2788_v41, %v2782_v19 }
 0x6a4   : > { %3235 = vrot.lane.b32.xlu1 %v5428_v17, %s6289_s22  ;;  %3233 = vrot.lane.b32.xlu0 %v5431_v29, %s6289_s22  ;;  %v6334_v17 = vld [vmem:[#allocation8_spill] sm:$0xff]  ;;  %v2886_v3 = vrot.slane %v5940_v55, %v4426_v22 }
 0x6a5   : > { %v2780_v34 = vadd.f32 %v6332_v27, %v2761_v8  ;;  %v2779_v56 = vadd.f32 %v6333_v14, %v2760_v50  ;;  %v2910_v14 = vrot.slane %v5940_v55, %v4604_v9 }
 0x6a6   : > { %v2796_v15 = vpop.permute.xlu1 %2795  ;;  %v2794_v37 = vpop.permute.xlu0 %2793 }
 0x6a7   : > { %v2792_v31 = vadd.f32 %v2790_v53, %v2780_v34  ;;  %v2802_v5 = vmul.f32 %v2800_v16, %v2796_v15  ;;  %v2791_v43 = vadd.f32 %v2789_v59, %v2779_v56  ;;  %v2801_v49 = vmul.f32 %v2800_v16, %v2794_v37 }
 0x6a8   : > { %3254 = vrot.lane.b32.xlu1 %v6334_v17, %s6303_s20  ;;  %3252 = vrot.lane.b32.xlu0 %v6335_v4, %s6303_s20  ;;  %v2898_v16 = vrot.slane %v5932_v54, %v4604_v9 }
 0x6a9   : > { %v2804_v51 = vadd.f32 %v2802_v5, %v2792_v31  ;;  %v2803_v29 = vadd.f32 %v2801_v49, %v2791_v43 }
 0x6aa   : > { %v2808_v26 = vpop.permute.xlu1 %2807  ;;  %v2806_v58 = vpop.permute.xlu0 %2805 }
 0x6ab   : > { %v2814_v61 = vmul.f32 %v2812_v2, %v2808_v26  ;;  %v2813_v36 = vmul.f32 %v2812_v2, %v2806_v58  ;;  %v2922_v2 = vrot.slane %v5932_v54, %v4457_v30 }
 0x6ac   : > { %3273 = vrot.lane.b32.xlu1 %v6336_v38, %s6303_s20  ;;  %3271 = vrot.lane.b32.xlu0 %v6337_v48, %s6303_s20 }
 0x6ad   : > { %v2816_v44 = vadd.f32 %v2814_v61, %v2804_v51  ;;  %v2815_v42 = vadd.f32 %v2813_v36, %v2803_v29 }
 0x6ae   : > { %v2820_v11 = vpop.permute.xlu1 %2819  ;;  %v2818_v39 = vpop.permute.xlu0 %2817 }
 0x6af   : > { %v2826_v33 = vmul.f32 %v2824_v20, %v2820_v11  ;;  %v2825_v1 = vmul.f32 %v2824_v20, %v2818_v39 }
 0x6b0   : > { %3285 = vrot.lane.b32.xlu1 %v6334_v17, %s6304_s25  ;;  %3283 = vrot.lane.b32.xlu0 %v6335_v4, %s6304_s25 }
 0x6b1   : > { %v2828_v7 = vadd.f32 %v2826_v33, %v2816_v44  ;;  %v2827_v0 = vadd.f32 %v2825_v1, %v2815_v42  ;;  %v2934_v42 = vrot.slane %v5940_v55, %v4457_v30 }
 0x6b2   : > { %v2832_v18 = vpop.permute.xlu1 %2831  ;;  %v2830_v46 = vpop.permute.xlu0 %2829 }
 0x6b3   : > { %v2838_v63 = vmul.f32 %v2836_v24, %v2832_v18  ;;  %v2837_v10 = vmul.f32 %v2836_v24, %v2830_v46  ;;  %v6338_v24 = vld [vmem:[#allocation14_spill] sm:$0xff] }
 0x6b4   : > { %3297 = vrot.lane.b32.xlu1 %v6336_v38, %s6304_s25  ;;  %3295 = vrot.lane.b32.xlu0 %v6337_v48, %s6304_s25 }
 0x6b5   : > { %v2840_v8 = vadd.f32 %v2838_v63, %v2828_v7  ;;  %v2839_v50 = vadd.f32 %v2837_v10, %v2827_v0 }
 0x6b6   : > { %v2844_v35 = vpop.permute.xlu1 %2843  ;;  %v2842_v28 = vpop.permute.xlu0 %2841 }
 0x6b7   : > { %v2850_v41 = vmul.f32 %v2848_v21, %v2844_v35  ;;  %v2849_v40 = vmul.f32 %v2848_v21, %v2842_v28 }
 0x6b8   : > { %3309 = vrot.lane.b32.xlu1 %v6334_v17, %s6305_s18  ;;  %3307 = vrot.lane.b32.xlu0 %v6335_v4, %s6305_s18 }
 0x6b9   : > { %v2852_v34 = vadd.f32 %v2850_v41, %v2840_v8  ;;  %v2851_v56 = vadd.f32 %v2849_v40, %v2839_v50 }
 0x6ba   : > { %v2863_v57 = vpop.permute.xlu1 %2862  ;;  %v2861_v62 = vpop.permute.xlu0 %2860 }
 0x6bb   : > { %v2869_v19 = vmul.f32 %v2867_v52, %v2863_v57  ;;  %v2868_v27 = vmul.f32 %v2867_v52, %v2861_v62  ;;  %v6340_v52 = vld [vmem:[#allocation16_spill] sm:$0xff] }
 0x6bc   : > { %3321 = vrot.lane.b32.xlu1 %v6336_v38, %s6305_s18  ;;  %3319 = vrot.lane.b32.xlu0 %v6337_v48, %s6305_s18 }
 0x6bd   : > { %v2871_v31 = vadd.f32 %v2869_v19, %v2852_v34  ;;  %v2870_v43 = vadd.f32 %v2868_v27, %v2851_v56  ;;  %v3464_v19 = vld [vmem:[%s6249_s13] sm:$0xff]  ;;  %v3469_v34 = vld [vmem:[%s6249_s13 + $0x28] sm:$0xff] }
 0x6be   : > { %v2882_v32 = vpop.permute.xlu1 %2881  ;;  %v2880_v12 = vpop.permute.xlu0 %2879  ;;  %v3468_v27 = vld [vmem:[%s6249_s13 + $0x20] sm:$0xff] }
 0x6bf   : > { %v2888_v53 = vmul.f32 %v2886_v3, %v2882_v32  ;;  %v2887_v59 = vmul.f32 %v2886_v3, %v2880_v12  ;;  %v6339_v32 = vld [vmem:[#allocation15_spill] sm:$0xff] }
 0x6c0   : > { %3371 = vrot.lane.b32.xlu1 %v6334_v17, %s6314_s1  ;;  %3369 = vrot.lane.b32.xlu0 %v6335_v4, %s6314_s1 }
 0x6c1   : > { %v2890_v51 = vadd.f32 %v2888_v53, %v2871_v31  ;;  %v2889_v26 = vadd.f32 %v2887_v59, %v2870_v43  ;;  %v6051_v31 = vld [vmem:[%s6247_s11 + $0x20] sm:$0xff] }
 0x6c2   : > { %v2894_v13 = vpop.permute.xlu1 %2893  ;;  %v2892_v6 = vpop.permute.xlu0 %2891 }
 0x6c3   : > { %v2900_v5 = vmul.f32 %v2898_v16, %v2894_v13  ;;  %v2899_v49 = vmul.f32 %v2898_v16, %v2892_v6  ;;  %v3467_v6 = vld [vmem:[%s6249_s13 + $0x18] sm:$0xff] }
 0x6c4   : > { %3383 = vrot.lane.b32.xlu1 %v6336_v38, %s6314_s1  ;;  %3381 = vrot.lane.b32.xlu0 %v6337_v48, %s6314_s1 }
 0x6c5   : > { %v2902_v20 = vadd.f32 %v2900_v5, %v2890_v51  ;;  %v2901_v54 = vadd.f32 %v2899_v49, %v2889_v26  ;;  %v2996_v5 = vrot.slane %v6051_v31, %v4586_v45 }
 0x6c6   : > { %v2906_v15 = vpop.permute.xlu1 %2905  ;;  %v2904_v37 = vpop.permute.xlu0 %2903 }
 0x6c7   : > { %v2912_v29 = vmul.f32 %v2910_v14, %v2906_v15  ;;  %v2911_v61 = vmul.f32 %v2910_v14, %v2904_v37  ;;  %v6044_v14 = vld [vmem:[%s6246_s10 + $0x20] sm:$0xff]  ;;  %v4113_v15 = vpack.c.bf16 %v3469_v34, %v3468_v27  ;;  %v3470_v37 = vld [vmem:[%s6249_s13 + $0x30] sm:$0xff] }
 0x6c8   : > { %3395 = vrot.lane.b32.xlu1 %v6334_v17, %s6320_s29  ;;  %3393 = vrot.lane.b32.xlu0 %v6335_v4, %s6320_s29  ;;  %v2984_v56 = vrot.slane %v6044_v14, %v4586_v45  ;;  %v3008_v51 = vrot.slane %v6044_v14, %v4435_v25 }
 0x6c9   : > { %v2914_v33 = vadd.f32 %v2912_v29, %v2902_v20  ;;  %v2913_v39 = vadd.f32 %v2911_v61, %v2901_v54 }
 0x6ca   : > { %v2918_v58 = vpop.permute.xlu1 %2917  ;;  %v2916_v44 = vpop.permute.xlu0 %2915 }
 0x6cb   : > { %v2924_v36 = vmul.f32 %v2922_v2, %v2918_v58  ;;  %v2923_v11 = vmul.f32 %v2922_v2, %v2916_v44  ;;  %v3471_v2 = vld [vmem:[%s6249_s13 + $0x38] sm:$0xff]  ;;  %v3472_v44 = vld [vmem:[%s6249_s13 + $0x40] sm:$0xff] }
 0x6cc   : > { %3407 = vrot.lane.b32.xlu1 %v6336_v38, %s6320_s29  ;;  %3405 = vrot.lane.b32.xlu0 %v6337_v48, %s6320_s29  ;;  %v4117_v61 = vpack.c.bf16 %v3471_v2, %v3470_v37  ;;  %v3478_v37 = vld [vmem:[%s6249_s13 + $0x70] sm:$0xff]  ;;  %v3479_v2 = vld [vmem:[%s6249_s13 + $0x78] sm:$0xff] }
 0x6cd   : > { %v2926_v7 = vadd.f32 %v2924_v36, %v2914_v33  ;;  %v2925_v46 = vadd.f32 %v2923_v11, %v2913_v39  ;;  %v3020_v36 = vrot.slane %v6051_v31, %v4435_v25 }
 0x6ce   : > { %v2930_v1 = vpop.permute.xlu1 %2929  ;;  %v2928_v18 = vpop.permute.xlu0 %2927 }
 0x6cf   : > { %v2936_v0 = vmul.f32 %v2934_v42, %v2930_v1  ;;  %v2935_v35 = vmul.f32 %v2934_v42, %v2928_v18  ;;  %v3473_v42 = vld [vmem:[%s6249_s13 + $0x48] sm:$0xff]  ;;  %v3032_v1 = vrot.slane %v6044_v14, %v4591_v47 }
 0x6d0   : > { %3419 = vrot.lane.b32.xlu1 %v6334_v17, %s6289_s22  ;;  %3417 = vrot.lane.b32.xlu0 %v6335_v4, %s6289_s22  ;;  %v6341_v17 = vld [vmem:[#allocation17_spill] sm:$0xff]  ;;  %v4121_v18 = vpack.c.bf16 %v3473_v42, %v3472_v44  ;;  %v4133_v44 = vpack.c.bf16 %v3479_v2, %v3478_v37  ;;  %v3192_v37 = vrot.slane %v6051_v31, %v4429_v23 }
 0x6d1   : > { %v2938_v55 = vadd.f32 %v2936_v0, %v2926_v7  ;;  %v2937_v28 = vadd.f32 %v2935_v35, %v2925_v46 }
 0x6d2   : > { %v2980_v57 = vpop.permute.xlu1 %2979  ;;  %v2978_v21 = vpop.permute.xlu0 %2977 }
 0x6d3   : > { %v2957_v62 = vadd.f32 %v6338_v24, %v2938_v55  ;;  %v2956_v63 = vadd.f32 %v6339_v32, %v2937_v28  ;;  %v2986_v49 = vmul.f32 %v2984_v56, %v2980_v57  ;;  %v2985_v26 = vmul.f32 %v2984_v56, %v2978_v21  ;;  %v3474_v28 = vld [vmem:[%s6249_s13 + $0x50] sm:$0xff]  ;;  %v3475_v57 = vld [vmem:[%s6249_s13 + $0x58] sm:$0xff] }
 0x6d4   : > { %3431 = vrot.lane.b32.xlu1 %v6336_v38, %s6289_s22  ;;  %3429 = vrot.lane.b32.xlu0 %v6337_v48, %s6289_s22  ;;  %v3465_v38 = vld [vmem:[%s6249_s13 + $0x8] sm:$0xff]  ;;  %v3466_v48 = vld [vmem:[%s6249_s13 + $0x10] sm:$0xff]  ;;  %v3044_v55 = vrot.slane %v6051_v31, %v4591_v47 }
 0x6d5   : > { %v2976_v12 = vadd.f32 %v6340_v52, %v2957_v62  ;;  %v2975_v10 = vadd.f32 %v6341_v17, %v2956_v63  ;;  %v4105_v16 = vpack.c.bf16 %v3465_v38, %v3464_v19  ;;  %v4109_v50 = vpack.c.bf16 %v3467_v6, %v3466_v48 }
 0x6d6   : > { %v2992_v41 = vpop.permute.xlu1 %2991  ;;  %v2990_v3 = vpop.permute.xlu0 %2989  ;;  %v3063_v52 = vrot.slane %v6044_v14, %v4598_v60 }
 0x6d7   : > { %4106 = vmatprep.subr.bf16.mxu0 %v4105_v16  ;;  %v2988_v58 = vadd.f32 %v2986_v49, %v2976_v12  ;;  %v2998_v20 = vmul.f32 %v2996_v5, %v2992_v41  ;;  %v2987_v54 = vadd.f32 %v2985_v26, %v2975_v10  ;;  %v2997_v11 = vmul.f32 %v2996_v5, %v2990_v3 }
 0x6d8   : > { %4108 = vmatpush3.bf16.msra.mxu0 %v4105_v16  ;;  %v4125_v41 = vpack.c.bf16 %v3475_v57, %v3474_v28  ;;  %v3106_v5 = vrot.slane %v6051_v31, %v4426_v22 }
 0x6d9   : > { %4110 = vmatprep.subr.bf16.mxu0 %v4109_v50  ;;  %v3000_v46 = vadd.f32 %v2998_v20, %v2988_v58  ;;  %v2999_v24 = vadd.f32 %v2997_v11, %v2987_v54  ;;  %v3118_v58 = vrot.slane %v6044_v14, %v4604_v9  ;;  %v3564_v11 = vld [vmem:[%s6251_s15] sm:$0xff] }
 0x6da   : > { %v3004_v4 = vpop.permute.xlu1 %3003  ;;  %v3002_v40 = vpop.permute.xlu0 %3001 }
 0x6db   : > { %v3010_v39 = vmul.f32 %v3008_v51, %v3004_v4  ;;  %v3009_v0 = vmul.f32 %v3008_v51, %v3002_v40  ;;  %v3082_v40 = vrot.slane %v6051_v31, %v4598_v60 }
 0x6dc   : > { %4112 = vmatpush3.bf16.msra.mxu0 %v4109_v50  ;;  %v3094_v50 = vrot.slane %v6044_v14, %v4426_v22 }
 0x6dd   : > { %4114 = vmatprep.subr.bf16.mxu0 %v4113_v15  ;;  %v3012_v32 = vadd.f32 %v3010_v39, %v3000_v46  ;;  %v3011_v17 = vadd.f32 %v3009_v0, %v2999_v24 }
 0x6de   : > { %v3016_v13 = vpop.permute.xlu1 %3015  ;;  %v3014_v8 = vpop.permute.xlu0 %3013 }
 0x6df   : > { %v3022_v35 = vmul.f32 %v3020_v36, %v3016_v13  ;;  %v3021_v62 = vmul.f32 %v3020_v36, %v3014_v8  ;;  %v3476_v13 = vld [vmem:[%s6249_s13 + $0x60] sm:$0xff]  ;;  %v3477_v8 = vld [vmem:[%s6249_s13 + $0x68] sm:$0xff] }
 0x6e0   : > { %4116 = vmatpush3.bf16.msra.mxu0 %v4113_v15  ;;  %v4129_v56 = vpack.c.bf16 %v3477_v8, %v3476_v13  ;;  %v6343_v13 = vld [vmem:[#allocation19_spill] sm:$0xff] }
 0x6e1   : > { %4118 = vmatprep.subr.bf16.mxu0 %v4117_v61  ;;  %v3024_v3 = vadd.f32 %v3022_v35, %v3012_v32  ;;  %v3023_v19 = vadd.f32 %v3021_v62, %v3011_v17  ;;  %v3130_v35 = vrot.slane %v6051_v31, %v4604_v9 }
 0x6e2   : > { %v3028_v53 = vpop.permute.xlu1 %3027  ;;  %v3026_v59 = vpop.permute.xlu0 %3025 }
 0x6e3   : > { %v3034_v63 = vmul.f32 %v3032_v1, %v3028_v53  ;;  %v3033_v10 = vmul.f32 %v3032_v1, %v3026_v59 }
 0x6e4   : > { %4120 = vmatpush3.bf16.msra.mxu0 %v4117_v61 }
 0x6e5   : > { %4122 = vmatprep.subr.bf16.mxu0 %v4121_v18  ;;  %v3036_v16 = vadd.f32 %v3034_v63, %v3024_v3  ;;  %v3035_v34 = vadd.f32 %v3033_v10, %v3023_v19  ;;  %v6342_v3 = vld [vmem:[#allocation18_spill] sm:$0xff]  ;;  %v6344_v19 = vld [vmem:[#allocation20_spill] sm:$0xff] }
 0x6e6   : > { %v3040_v43 = vpop.permute.xlu1 %3039  ;;  %v3038_v29 = vpop.permute.xlu0 %3037 }
 0x6e7   : > { %v3046_v4 = vmul.f32 %v3044_v55, %v3040_v43  ;;  %v3045_v38 = vmul.f32 %v3044_v55, %v3038_v29 }
 0x6e8   : > { %4124 = vmatpush3.bf16.msra.mxu0 %v4121_v18 }
 0x6e9   : > { %4126 = vmatprep.subr.bf16.mxu0 %v4125_v41  ;;  %v3048_v59 = vadd.f32 %v3046_v4, %v3036_v16  ;;  %v3047_v43 = vadd.f32 %v3045_v38, %v3035_v34 }
 0x6ea   : > { %v3059_v33 = vpop.permute.xlu1 %3058  ;;  %v3057_v7 = vpop.permute.xlu0 %3056 }
 0x6eb   : > { %v3065_v6 = vmul.f32 %v3063_v52, %v3059_v33  ;;  %v3064_v53 = vmul.f32 %v3063_v52, %v3057_v7  ;;  %v3565_v33 = vld [vmem:[%s6251_s15 + $0x8] sm:$0xff] }
 0x6ec   : > { %4128 = vmatpush3.bf16.msra.mxu0 %v4125_v41  ;;  %v6111_v57 = vpack.c.bf16 %v3565_v33, %v3564_v11 }
 0x6ed   : > { %v3067_v29 = vadd.f32 %v3065_v6, %v3048_v59  ;;  %v3066_v20 = vadd.f32 %v3064_v53, %v3047_v43  ;;  %4130 = vmatprep.subr.bf16.mxu0 %v4129_v56 }
 0x6ee   : > { %v3078_v21 = vpop.permute.xlu1 %3077  ;;  %v3076_v12 = vpop.permute.xlu0 %3075 }
 0x6ef   : > { %v3084_v15 = vmul.f32 %v3082_v40, %v3078_v21  ;;  %v3083_v49 = vmul.f32 %v3082_v40, %v3076_v12 }
 0x6f0   : > { %4132 = vmatpush3.bf16.msra.mxu0 %v4129_v56 }
 0x6f1   : > { %v3086_v42 = vadd.f32 %v3084_v15, %v3067_v29  ;;  %v3085_v39 = vadd.f32 %v3083_v49, %v3066_v20  ;;  %4134 = vmatprep.subr.bf16.mxu0 %v4133_v44  ;;  %v3180_v15 = vrot.slane %v6044_v14, %v4429_v23  ;;  %v6125_v49 = vld [vmem:[%s6246_s10 + $0x28] sm:$0xff] }
 0x6f2   : > { %v3090_v48 = vpop.permute.xlu1 %3089  ;;  %v3088_v27 = vpop.permute.xlu0 %3087  ;;  %v6132_v14 = vld [vmem:[%s6247_s11 + $0x28] sm:$0xff] }
 0x6f3   : > { %v3096_v26 = vmul.f32 %v3094_v50, %v3090_v48  ;;  %v3095_v36 = vmul.f32 %v3094_v50, %v3088_v27  ;;  %v6345_v48 = vld [vmem:[#allocation21_spill] sm:$0xff]  ;;  %v3216_v31 = vrot.slane %v6132_v14, %v4586_v45 }
 0x6f4   : > { %4136 = vmatpush3.bf16.msra.mxu0 %v4133_v44 }
 0x6f5   : > { %v3098_v0 = vadd.f32 %v3096_v26, %v3086_v42  ;;  %v3097_v55 = vadd.f32 %v3095_v36, %v3085_v39  ;;  %4138 = vmatprep.subr.bf16.mxu0 %v6111_v57 }
 0x6f6   : > { %v3102_v51 = vpop.permute.xlu1 %3101  ;;  %v3100_v61 = vpop.permute.xlu0 %3099 }
 0x6f7   : > { %v3108_v54 = vmul.f32 %v3106_v5, %v3102_v51  ;;  %v3107_v1 = vmul.f32 %v3106_v5, %v3100_v61  ;;  %v3204_v51 = vrot.slane %v6125_v49, %v4586_v45  ;;  %v3259_v45 = vrot.slane %v6125_v49, %v4591_v47 }
 0x6f9   : > { %v3110_v24 = vadd.f32 %v3108_v54, %v3098_v0  ;;  %v3109_v62 = vadd.f32 %v3107_v1, %v3097_v55  ;;  %v3228_v54 = vrot.slane %v6125_v49, %v4435_v25 }
 0x6fa   : > { %v3114_v7 = vpop.permute.xlu1 %3113  ;;  %v3112_v46 = vpop.permute.xlu0 %3111 }
 0x6fb   : > { %v3120_v18 = vmul.f32 %v3118_v58, %v3114_v7  ;;  %v3119_v28 = vmul.f32 %v3118_v58, %v3112_v46  ;;  %v3240_v7 = vrot.slane %v6132_v14, %v4435_v25 }
 0x6fd   : > { %v3122_v32 = vadd.f32 %v3120_v18, %v3110_v24  ;;  %v3121_v12 = vadd.f32 %v3119_v28, %v3109_v62 }
 0x6fe   : > { %v3126_v21 = vpop.permute.xlu1 %3125  ;;  %v3124_v52 = vpop.permute.xlu0 %3123 }
 0x6ff   : > { %v3132_v63 = vmul.f32 %v3130_v35, %v3126_v21  ;;  %v3131_v17 = vmul.f32 %v3130_v35, %v3124_v52 }
 0x701   : > { %v3134_v10 = vadd.f32 %v3132_v63, %v3122_v32  ;;  %v3133_v41 = vadd.f32 %v3131_v17, %v3121_v12  ;;  %v3278_v63 = vrot.slane %v6132_v14, %v4591_v47 }
 0x702   : > { %v3176_v9 = vpop.permute.xlu1 %3175  ;;  %v3174_v40 = vpop.permute.xlu0 %3173 }
 0x703   : > { %v3153_v4 = vadd.f32 %v6342_v3, %v3134_v10  ;;  %v3152_v8 = vadd.f32 %v6343_v13, %v3133_v41  ;;  %v3182_v43 = vmul.f32 %v3180_v15, %v3176_v9  ;;  %v3181_v26 = vmul.f32 %v3180_v15, %v3174_v40 }
 0x704   : > { %v3290_v41 = vrot.slane %v6125_v49, %v4598_v60 }
 0x705   : > { %v3172_v38 = vadd.f32 %v6344_v19, %v3153_v4  ;;  %v3171_v16 = vadd.f32 %v6345_v48, %v3152_v8  ;;  %v3302_v8 = vrot.slane %v6132_v14, %v4598_v60  ;;  %v3326_v60 = vrot.slane %v6132_v14, %v4426_v22 }
 0x706   : > { %v3188_v6 = vpop.permute.xlu1 %3187  ;;  %v3186_v50 = vpop.permute.xlu0 %3185 }
 0x707   : > { %v3184_v61 = vadd.f32 %v3182_v43, %v3172_v38  ;;  %v3194_v58 = vmul.f32 %v3192_v37, %v3188_v6  ;;  %v3183_v20 = vadd.f32 %v3181_v26, %v3171_v16  ;;  %v3193_v36 = vmul.f32 %v3192_v37, %v3186_v50 }
 0x708   : > { %v3314_v50 = vrot.slane %v6125_v49, %v4426_v22 }
 0x709   : > { %v3196_v39 = vadd.f32 %v3194_v58, %v3184_v61  ;;  %v3195_v0 = vadd.f32 %v3193_v36, %v3183_v20 }
 0x70a   : > { %v3200_v27 = vpop.permute.xlu1 %3199  ;;  %v3198_v34 = vpop.permute.xlu0 %3197 }
 0x70b   : > { %v3206_v42 = vmul.f32 %v3204_v51, %v3200_v27  ;;  %v3205_v33 = vmul.f32 %v3204_v51, %v3198_v34 }
 0x70d   : > { %v3208_v35 = vadd.f32 %v3206_v42, %v3196_v39  ;;  %v3207_v24 = vadd.f32 %v3205_v33, %v3195_v0  ;;  %v6346_v39 = vld [vmem:[#allocation22_spill] sm:$0xff]  ;;  %v6347_v0 = vld [vmem:[#allocation23_spill] sm:$0xff] }
 0x70e   : > { %v3212_v53 = vpop.permute.xlu1 %3211  ;;  %v3210_v56 = vpop.permute.xlu0 %3209 }
 0x70f   : > { %v3218_v1 = vmul.f32 %v3216_v31, %v3212_v53  ;;  %v3217_v18 = vmul.f32 %v3216_v31, %v3210_v56 }
 0x711   : > { %v3220_v21 = vadd.f32 %v3218_v1, %v3208_v35  ;;  %v3219_v52 = vadd.f32 %v3217_v18, %v3207_v24  ;;  %v6349_v35 = vld [vmem:[#allocation25_spill] sm:$0xff] }
 0x712   : > { %v3224_v59 = vpop.permute.xlu1 %3223  ;;  %v3222_v5 = vpop.permute.xlu0 %3221 }
 0x713   : > { %v3230_v55 = vmul.f32 %v3228_v54, %v3224_v59  ;;  %v3229_v62 = vmul.f32 %v3228_v54, %v3222_v5 }
 0x715   : > { %v3232_v25 = vadd.f32 %v3230_v55, %v3220_v21  ;;  %v3231_v3 = vadd.f32 %v3229_v62, %v3219_v52  ;;  %v3388_v62 = vrot.slane %v6132_v14, %v4457_v30 }
 0x716   : > { %v3236_v2 = vpop.permute.xlu1 %3235  ;;  %v3234_v29 = vpop.permute.xlu0 %3233 }
 0x717   : > { %v3242_v32 = vmul.f32 %v3240_v7, %v3236_v2  ;;  %v3241_v12 = vmul.f32 %v3240_v7, %v3234_v29 }
 0x719   : > { %v3244_v40 = vadd.f32 %v3242_v32, %v3232_v25  ;;  %v3243_v19 = vadd.f32 %v3241_v12, %v3231_v3 }
 0x71a   : > { %v3255_v44 = vpop.permute.xlu1 %3254  ;;  %v3253_v11 = vpop.permute.xlu0 %3252 }
 0x71b   : > { %v3261_v10 = vmul.f32 %v3259_v45, %v3255_v44  ;;  %v3260_v4 = vmul.f32 %v3259_v45, %v3253_v11 }
 0x71d   : > { %v3263_v47 = vadd.f32 %v3261_v10, %v3244_v40  ;;  %v3262_v27 = vadd.f32 %v3260_v4, %v3243_v19  ;;  %v3412_v10 = vrot.slane %v6132_v14, %v4429_v23  ;;  %v3738_v14 = vld [vmem:[%s6247_s11 + $0x30] ss:$0 sm:$0xff] }
 0x71e   : > { %v3274_v46 = vpop.permute.xlu1 %3273  ;;  %v3272_v28 = vpop.permute.xlu0 %3271 }
 0x71f   : > { %v3280_v13 = vmul.f32 %v3278_v63, %v3274_v46  ;;  %v3279_v38 = vmul.f32 %v3278_v63, %v3272_v28  ;;  %v6348_v46 = vld [vmem:[#allocation24_spill] sm:$0xff]  ;;  %v3376_v28 = vrot.slane %v6125_v49, %v4457_v30  ;;  %v3400_v63 = vrot.slane %v6125_v49, %v4429_v23 }
 0x720   : > { %v3737_v30 = vld [vmem:[%s6246_s10 + $0x30] ss:$0 sm:$0xff] }
 0x721   : > { %v3282_v53 = vadd.f32 %v3280_v13, %v3263_v47  ;;  %v3281_v59 = vadd.f32 %v3279_v38, %v3262_v27 }
 0x722   : > { %v3286_v17 = vpop.permute.xlu1 %3285  ;;  %v3284_v9 = vpop.permute.xlu0 %3283 }
 0x723   : > { %v3292_v16 = vmul.f32 %v3290_v41, %v3286_v17  ;;  %v3291_v34 = vmul.f32 %v3290_v41, %v3284_v9 }
 0x725   : > { %v3294_v37 = vadd.f32 %v3292_v16, %v3282_v53  ;;  %v3293_v51 = vadd.f32 %v3291_v34, %v3281_v59 }
 0x726   : > { %v3298_v48 = vpop.permute.xlu1 %3297  ;;  %v3296_v6 = vpop.permute.xlu0 %3295 }
 0x727   : > { %v3304_v56 = vmul.f32 %v3302_v8, %v3298_v48  ;;  %v3303_v15 = vmul.f32 %v3302_v8, %v3296_v6 }
 0x729   : > { %v3306_v26 = vadd.f32 %v3304_v56, %v3294_v37  ;;  %v3305_v61 = vadd.f32 %v3303_v15, %v3293_v51  ;;  %v3739_v37 = vld [vmem:[%s6248_s12] ss:$0 sm:$0xff] }
 0x72a   : > { %v3310_v5 = vpop.permute.xlu1 %3309  ;;  %v3308_v43 = vpop.permute.xlu0 %3307 }
 0x72b   : > { %v3316_v2 = vmul.f32 %v3314_v50, %v3310_v5  ;;  %v3315_v29 = vmul.f32 %v3314_v50, %v3308_v43 }
 0x72d   : > { %v3318_v31 = vadd.f32 %v3316_v2, %v3306_v26  ;;  %v3317_v44 = vadd.f32 %v3315_v29, %v3305_v61 }
 0x72e   : > { %v3322_v58 = vpop.permute.xlu1 %3321  ;;  %v3320_v36 = vpop.permute.xlu0 %3319 }
 0x72f   : > { %v3328_v20 = vmul.f32 %v3326_v60, %v3322_v58  ;;  %v3327_v42 = vmul.f32 %v3326_v60, %v3320_v36 }
 0x731   : > { %v3330_v54 = vadd.f32 %v3328_v20, %v3318_v31  ;;  %v3329_v11 = vadd.f32 %v3327_v42, %v3317_v44 }
 0x732   : > { %v3372_v33 = vpop.permute.xlu1 %3371  ;;  %v3370_v7 = vpop.permute.xlu0 %3369 }
 0x733   : > { %v3349_v1 = vadd.f32 %v6346_v39, %v3330_v54  ;;  %v3348_v18 = vadd.f32 %v6347_v0, %v3329_v11  ;;  %v3378_v32 = vmul.f32 %v3376_v28, %v3372_v33  ;;  %v3377_v12 = vmul.f32 %v3376_v28, %v3370_v7  ;;  %v3566_v11 = vld [vmem:[%s6251_s15 + $0x10] sm:$0xff]  ;;  %v3567_v33 = vld [vmem:[%s6251_s15 + $0x18] sm:$0xff] }
 0x734   : > { %v6351_v0 = vld [vmem:[#allocation4_spill] sm:$0xff]  ;;  %v3571_v28 = vld [vmem:[%s6251_s15 + $0x38] sm:$0xff] }
 0x735   : > { %v3368_v22 = vadd.f32 %v6348_v46, %v3349_v1  ;;  %v3367_v55 = vadd.f32 %v6349_v35, %v3348_v18  ;;  %v6350_v1 = vld [vmem:[#allocation5_spill] sm:$0xff]  ;;  %v4141_v46 = vpack.c.bf16 %v3567_v33, %v3566_v11  ;;  %v3569_v35 = vld [vmem:[%s6251_s15 + $0x28] sm:$0xff] }
 0x736   : > { %v3384_v45 = vpop.permute.xlu1 %3383  ;;  %v3382_v24 = vpop.permute.xlu0 %3381 }
 0x737   : > { %v3380_v17 = vadd.f32 %v3378_v32, %v3368_v22  ;;  %v3390_v25 = vmul.f32 %v3388_v62, %v3384_v45  ;;  %v3379_v41 = vadd.f32 %v3377_v12, %v3367_v55  ;;  %v3389_v9 = vmul.f32 %v3388_v62, %v3382_v24  ;;  %v3568_v22 = vld [vmem:[%s6251_s15 + $0x20] sm:$0xff]  ;;  %v3570_v45 = vld [vmem:[%s6251_s15 + $0x30] sm:$0xff] }
 0x738   : > { %v4145_v55 = vpack.c.bf16 %v3569_v35, %v3568_v22  ;;  %v4149_v24 = vpack.c.bf16 %v3571_v28, %v3570_v45  ;;  %v3572_v62 = vld [vmem:[%s6251_s15 + $0x40] sm:$0xff]  ;;  %v3574_v32 = vld [vmem:[%s6251_s15 + $0x50] sm:$0xff] }
 0x739   : > { %v3392_v8 = vadd.f32 %v3390_v25, %v3380_v17  ;;  %v3391_v49 = vadd.f32 %v3389_v9, %v3379_v41  ;;  %v3576_v12 = vld [vmem:[%s6251_s15 + $0x60] sm:$0xff]  ;;  %v3577_v17 = vld [vmem:[%s6251_s15 + $0x68] sm:$0xff]  ;;  %v3579_v41 = vld [vmem:[%s6251_s15 + $0x78] sm:$0xff] }
 0x73a   : > { %v3396_v21 = vpop.permute.xlu1 %3395  ;;  %v3394_v52 = vpop.permute.xlu0 %3393  ;;  %v4161_v25 = vpack.c.bf16 %v3577_v17, %v3576_v12 }
 0x73b   : > { %v3402_v4 = vmul.f32 %v3400_v63, %v3396_v21  ;;  %v3401_v13 = vmul.f32 %v3400_v63, %v3394_v52  ;;  %v3575_v63 = vld [vmem:[%s6251_s15 + $0x58] sm:$0xff] }
 0x73c   : > { %v4157_v52 = vpack.c.bf16 %v3575_v63, %v3574_v32 }
 0x73d   : > { %v3404_v47 = vadd.f32 %v3402_v4, %v3392_v8  ;;  %v3403_v50 = vadd.f32 %v3401_v13, %v3391_v49  ;;  %v6352_v8 = vld [vmem:[#allocation3_spill] sm:$0xff]  ;;  %v6353_v49 = vld [vmem:[#allocation2_spill] sm:$0xff] }
 0x73e   : > { %v3408_v3 = vpop.permute.xlu1 %3407  ;;  %v3406_v40 = vpop.permute.xlu0 %3405 }
 0x73f   : > { %v3414_v19 = vmul.f32 %v3412_v10, %v3408_v3  ;;  %v3413_v38 = vmul.f32 %v3412_v10, %v3406_v40  ;;  %v3578_v10 = vld [vmem:[%s6251_s15 + $0x70] sm:$0xff]  ;;  %v3740_v3 = vld [vmem:[%s6250_s14] ss:$0 sm:$0xff] }
 0x740   : > { %v4165_v9 = vpack.c.bf16 %v3579_v41, %v3578_v10 }
 0x741   : > { %v3416_v27 = vadd.f32 %v3414_v19, %v3404_v47  ;;  %v3415_v34 = vadd.f32 %v3413_v38, %v3403_v50 }
 0x742   : > { %v3420_v48 = vpop.permute.xlu1 %3419  ;;  %v3418_v6 = vpop.permute.xlu0 %3417 }
 0x743   : > { %v3426_v16 = vmul.f32 %v3737_v30, %v3420_v48  ;;  %v3425_v23 = vmul.f32 %v3737_v30, %v3418_v6  ;;  %v3741_v48 = vld [vmem:[%s6252_s16] ss:$0 sm:$0xff] }
 0x745   : > { %v3428_v56 = vadd.f32 %v3426_v16, %v3416_v27  ;;  %v3427_v5 = vadd.f32 %v3425_v23, %v3415_v34  ;;  %v4220_v23 = vld [vmem:[%s4377_s21] sm:$0xff]  ;;  %v4221_v27 = vld [vmem:[%s4377_s21 + $0x8] sm:$0xff] }
 0x746   : > { %v3432_v53 = vpop.permute.xlu1 %3431  ;;  %v3430_v15 = vpop.permute.xlu0 %3429 }
 0x747   : > { %v3438_v59 = vmul.f32 %v3738_v14, %v3432_v53  ;;  %v3437_v2 = vmul.f32 %v3738_v14, %v3430_v15 }
 0x749   : > { %v3440_v43 = vadd.f32 %v3438_v59, %v3428_v56  ;;  %v3439_v60 = vadd.f32 %v3437_v2, %v3427_v5 }
 0x74b   : > { %v3449_v51 = vadd.f32 %v3739_v37, %v3440_v43  ;;  %v3448_v29 = vadd.f32 %v3739_v37, %v3439_v60 }
 0x74d   : > { %v3451_v26 = vsub.f32 0.0, %v3449_v51  ;;  %v3450_v61 = vsub.f32 0.0, %v3448_v29 }
 0x74f   : > { %v3454_v58 = vmul.f32 1.442695, %v3451_v26  ;;  %v3452_v31 = vmul.f32 1.442695, %v3450_v61 }
 0x751   : > { %4204 = vpow2.f32 %v3454_v58 }
 0x752   : > { %4206 = vpow2.f32 %v3452_v31 }
 0x75b   : > { %v4205_v20 = vpop.eup %4204 }
 0x75c   : > { %v4207_v36 = vpop.eup %4206  ;;  %v3457_v44 = vadd.f32 1.0, %v4205_v20 }
 0x75d   : > { %v3456_v42 = vadd.f32 1.0, %v4207_v36 }
 0x75e   : > { %4208 = vrcp.f32 %v3457_v44 }
 0x75f   : > { %4210 = vrcp.f32 %v3456_v42 }
 0x768   : > { %v4209_v54 = vpop.eup %4208 }
 0x769   : > { %v4211_v39 = vpop.eup %4210  ;;  %v3463_v7 = vmul.f32 %v4209_v54, %v6350_v1 }
 0x76a   : > { %v3462_v18 = vmul.f32 %v4211_v39, %v6351_v0 }
 0x76c   : > { %3971 = vmatprep.mubr.f32.mxu0 %v3462_v18 }
 0x76d   : > { %3972 = vmatmul.mubr.f32.vlgmr.msra.gmra.mrb[2].mxu0 %v3463_v7 }
 0x76e   : > { %4140 = vmatpush3.bf16.msra.mxu0 %v6111_v57  ;;  %v3573_v57 = vld [vmem:[%s6251_s15 + $0x48] sm:$0xff] }
 0x76f   : > { %4142 = vmatprep.subr.bf16.mxu0 %v4141_v46  ;;  %v4153_v21 = vpack.c.bf16 %v3573_v57, %v3572_v62 }
 0x772   : > { %4144 = vmatpush3.bf16.msra.mxu0 %v4141_v46 }
 0x773   : > { %4146 = vmatprep.subr.bf16.mxu0 %v4145_v55 }
 0x776   : > { %4148 = vmatpush3.bf16.msra.mxu0 %v4145_v55 }
 0x777   : > { %4150 = vmatprep.subr.bf16.mxu0 %v4149_v24 }
 0x77a   : > { %4152 = vmatpush3.bf16.msra.mxu0 %v4149_v24 }
 0x77b   : > { %4154 = vmatprep.subr.bf16.mxu0 %v4153_v21 }
 0x77e   : > { %4156 = vmatpush3.bf16.msra.mxu0 %v4153_v21 }
 0x77f   : > { %4158 = vmatprep.subr.bf16.mxu0 %v4157_v52 }
 0x782   : > { %4160 = vmatpush3.bf16.msra.mxu0 %v4157_v52 }
 0x783   : > { %4162 = vmatprep.subr.bf16.mxu0 %v4161_v25 }
 0x786   : > { %4164 = vmatpush3.bf16.msra.mxu0 %v4161_v25 }
 0x787   : > { %4166 = vmatprep.subr.bf16.mxu0 %v4165_v9 }
 0x78a   : > { %4168 = vmatpush3.bf16.msra.mxu0 %v4165_v9 }
 0x840   : > { %v3973_v4 = vpop.f32.mrb[2].mxu0 }
 0x841   : > { %v3559_v40 = vadd.f32 %v3973_v4, %v3740_v3  ;;  %v3553_v13 = vpop.f32.mrb[3].mxu0 }
 0x842   : > { %v3554_v30 = vadd.f32 %v3740_v3, %v3553_v13 }
 0x843   : > { %v3563_v38 = vmul.f32 %v3559_v40, %v6353_v49 }
 0x844   : > { %v3562_v19 = vmul.f32 %v3554_v30, %v6352_v8 }
 0x846   : > { %4006 = vmatprep.mubr.f32.mxu0 %v3562_v19 }
 0x847   : > { %4007 = vmatmul.mubr.f32.vlgmr.msra.gmra.mrb[4].mxu0 %v3563_v38 }
 0x91a   : > { %v4008_v47 = vpop.f32.mrb[4].mxu0 }
 0x91b   : > { %v3659_v16 = vadd.f32 %v4008_v47, %v3741_v48  ;;  %v3653_v6 = vpop.f32.mrb[5].mxu0 }
 0x91c   : > { %v3654_v50 = vadd.f32 %v3741_v48, %v3653_v6 }
 0x91d   : > { %v3663_v34 = vadd.f32 %v4221_v27, %v3659_v16 }
 0x91e   : > { %v3662_v14 = vadd.f32 %v4220_v23, %v3654_v50 }
 0x91f   : > { %3665 = vst [vmem:[%s550_s27 + $0x8] sm:$0xff] %v3663_v34 }
 0x920   : > { %3664 = vst [vmem:[%s550_s27] sm:$0xff] %v3662_v14 }
 0x921 PF: > { %s27_s24 = sadd.s32 1, %s4228_s24  }
 0x922   : > { %p24_p4 = scmp.ge.s32.totalorder %s27_s24, 4  }
 0x924   :  { %26 = sbr.rel (!%p24_p4) target bundleno = 3 (0x3), region = 118 }

</bundles_post_ra>
